<compile_context>
chip_gen: v7x
topology: tpu7x:2x2x1
jax: 0.10.0
libtpu: 0.0.40
codegen_flags: <defaults>
</compile_context>

<pallas_src>
import jax
import jax.numpy as jnp
from jax import lax
from jax.experimental import pallas as pl
from jax.experimental.pallas import tpu as pltpu


def _block_kernel(x_ref, res_ref, w1_ref, b1_ref, w2_ref, b2_ref, w3_ref, b3_ref,
                  o_ref, him_ref, acc_ref):
    # x_ref  : (1, H+2, Wsp, Cp) bf16  zero-padded image, resident across strips
    # res_ref: (1, TH, W, Op)    f32   identity-residual strip
    # o_ref  : (1, TH, W, Op)    f32   output strip
    # him_ref: (TH+2, W, 3*Wp)   bf16  im2col (x-taps stacked on K) conv2 input
    # acc_ref: (TH*W, Wp)        f32   conv2 accumulator
    TH = o_ref.shape[1]
    W = o_ref.shape[2]
    Cp = x_ref.shape[3]
    Wsp = x_ref.shape[2]
    Wp = w1_ref.shape[1]
    K3 = 3 * Wp

    s = pl.program_id(1)
    ns = pl.num_programs(1)
    r0 = pl.multiple_of(s * TH, TH)              # first output row of this strip

    # ---- conv1 + bn1 + relu over the (TH+2)-row halo window: one matmul --------
    xw = x_ref[:, pl.ds(r0, TH + 2), :, :].reshape((TH + 2) * Wsp, Cp)
    h1 = jnp.dot(xw, w1_ref[...], preferred_element_type=jnp.float32)
    h1 = jnp.maximum(h1 + b1_ref[...], 0.0)
    h1 = h1.astype(jnp.bfloat16).reshape(TH + 2, Wsp, Wp)

    # ---- im2col along width: stack the 3 x-taps on the K (lane) axis ------------
    him_ref[:, :, 0:Wp] = h1[:, 0:W, :]
    him_ref[:, :, Wp:2 * Wp] = h1[:, 1:W + 1, :]
    him_ref[:, :, 2 * Wp:3 * Wp] = h1[:, 2:W + 2, :]

    # conv2 zero padding: positions fed by the image's zero-pad columns contain
    # relu(b1) after conv1 -- overwrite the only two slivers conv2 actually reads.
    zc = jnp.zeros((TH + 2, 1, Wp), jnp.bfloat16)
    him_ref[:, 0:1, 0:Wp] = zc                          # left pad column  (dx = 0)
    him_ref[:, W - 1:W, 2 * Wp:3 * Wp] = zc             # right pad column (dx = 2)

    @pl.when(s == 0)                                    # strip touches top edge
    def _():
        him_ref[0:1, :, :] = jnp.zeros((1, W, K3), jnp.bfloat16)

    @pl.when(s == ns - 1)                               # strip touches bottom edge
    def _():
        him_ref[TH + 1:TH + 2, :, :] = jnp.zeros((1, W, K3), jnp.bfloat16)

    # ---- conv2 (grouped 3x3 via block-diagonal weights): 3 dots with K = 3*Wp ---
    acc_ref[...] = jnp.dot(him_ref[0:TH, :, :].reshape(TH * W, K3), w2_ref[0],
                           preferred_element_type=jnp.float32)
    acc_ref[...] += jnp.dot(him_ref[1:TH + 1, :, :].reshape(TH * W, K3), w2_ref[1],
                            preferred_element_type=jnp.float32)
    acc_ref[...] += jnp.dot(him_ref[2:TH + 2, :, :].reshape(TH * W, K3), w2_ref[2],
                            preferred_element_type=jnp.float32)
    h2 = jnp.maximum(acc_ref[...] + b2_ref[...], 0.0).astype(jnp.bfloat16)

    # ---- conv3 + bn3 + identity residual + relu ---------------------------------
    h3 = jnp.dot(h2, w3_ref[...], preferred_element_type=jnp.float32)
    h3 = h3 + b3_ref[...]
    res = res_ref[...].reshape(TH * W, res_ref.shape[-1])
    out = jnp.maximum(h3 + res, 0.0)
    o_ref[...] = out.reshape(o_ref.shape).astype(o_ref.dtype)


def resnext_block(x_nchw, w1, w2, w3, bn1, bn2, bn3, *, groups, eps=1e-5,
                  strip_rows=None):
    """x_nchw: (B, Cin, H, W) float32. Returns (B, Cout, H, W) float32."""
    Cin, width = w1.shape
    cout = w3.shape[1]
    wg = width // groups
    assert Cin == cout, "identity residual requires Cin == Cout"
    # TODO(synk): downsample / stride > 1 residual branch not implemented.

    def fold(bn):
        gamma, beta, mean, var = bn
        scale = gamma / jnp.sqrt(var + eps)
        return scale, beta - mean * scale

    s1, b1 = fold(bn1)
    s2, b2 = fold(bn2)
    s3, b3 = fold(bn3)

    # Fold BN scales into conv weights (per output channel).
    w1f = w1 * s1[None, :]
    w3f = w3 * s3[None, :]
    # Block-diagonal grouped-conv weight (3, 3, width, width), bn2-scaled.
    w2_bd = jnp.zeros((3, 3, width, width), jnp.float32)
    for g in range(groups):
        w2_bd = w2_bd.at[:, :, g * wg:(g + 1) * wg, g * wg:(g + 1) * wg].set(
            w2[:, :, g])
    w2f = w2_bd * s2[None, None, None, :]

    # Lane-dense (128) channel padding; sublane(8)-aligned spatial width.
    LANE = 128
    rup = lambda n, m: ((n + m - 1) // m) * m
    Cp, Wp, Op = rup(Cin, LANE), rup(width, LANE), rup(cout, LANE)

    pad2 = lambda a, r, c: jnp.pad(a, ((0, r - a.shape[0]), (0, c - a.shape[1])))
    w1p = pad2(w1f, Cp, Wp).astype(jnp.bfloat16)
    w3p = pad2(w3f, Wp, Op).astype(jnp.bfloat16)
    # conv2 weights with the 3 x-taps stacked along K: (3, 3*Wp, Wp).
    w2p = jnp.pad(w2f, ((0, 0), (0, 0), (0, Wp - width), (0, Wp - width)))
    w2k = w2p.reshape(3, 3 * Wp, Wp).astype(jnp.bfloat16)
    b1p = jnp.pad(b1, (0, Wp - width)).reshape(1, Wp).astype(jnp.float32)
    b2p = jnp.pad(b2, (0, Wp - width)).reshape(1, Wp).astype(jnp.float32)
    b3p = jnp.pad(b3, (0, Op - cout)).reshape(1, Op).astype(jnp.float32)

    x = jnp.transpose(x_nchw, (0, 2, 3, 1))                  # NCHW -> NHWC
    B, H, W, _ = x.shape
    # Spatially zero-padded (conv2 halo), sublane-aligned, bf16 image for conv1.
    Wsp = rup(W + 2, 8)
    xp = jnp.pad(x, ((0, 0), (1, 1), (1, Wsp - W - 1),
                     (0, Cp - Cin))).astype(jnp.bfloat16)
    # f32 residual, channel-padded to the lane-dense output width (Cin == cout).
    resid = jnp.pad(x, ((0, 0), (0, 0), (0, 0), (0, Op - cout)))

    # Strip height: smallest divisor of H giving >= 256 matmul rows per strip.
    if strip_rows is None:
        TH = H
        for cand in range(1, H + 1):
            if H % cand == 0 and cand * W >= 256:
                TH = cand
                break
    else:
        TH = strip_rows
    assert H % TH == 0
    n_strips = H // TH

    # Explicit VMEM budget: double-buffered blocks + scratch + temp headroom.
    vmem_budget = (
        2 * (H + 2) * Wsp * Cp * 2                        # resident bf16 image
        + 4 * TH * W * Op * 4                             # residual + output strips
        + 2 * 2 * (Cp * Wp + 9 * Wp * Wp + Wp * Op)       # bf16 weights
        + (TH + 2) * W * 3 * Wp * 2 + TH * W * Wp * 4     # him + acc scratch
        + 6 * (TH + 2) * Wsp * Wp * 4)                    # compiler temporaries
    vmem_limit = int(min(max(vmem_budget, 8 << 20), 48 << 20))

    out_p = pl.pallas_call(
        _block_kernel,
        out_shape=jax.ShapeDtypeStruct((B, H, W, Op), jnp.float32),
        grid=(B, n_strips),
        in_specs=[
            pl.BlockSpec((1, H + 2, Wsp, Cp), lambda b, s: (b, 0, 0, 0)),  # resident
            pl.BlockSpec((1, TH, W, Op), lambda b, s: (b, s, 0, 0)),       # residual
            pl.BlockSpec((Cp, Wp), lambda b, s: (0, 0)),
            pl.BlockSpec((1, Wp), lambda b, s: (0, 0)),
            pl.BlockSpec((3, 3 * Wp, Wp), lambda b, s: (0, 0, 0)),
            pl.BlockSpec((1, Wp), lambda b, s: (0, 0)),
            pl.BlockSpec((Wp, Op), lambda b, s: (0, 0)),
            pl.BlockSpec((1, Op), lambda b, s: (0, 0)),
        ],
        out_specs=pl.BlockSpec((1, TH, W, Op), lambda b, s: (b, s, 0, 0)),
        scratch_shapes=[pltpu.VMEM((TH + 2, W, 3 * Wp), jnp.bfloat16),
                        pltpu.VMEM((TH * W, Wp), jnp.float32)],
        compiler_params=pltpu.CompilerParams(
            dimension_semantics=("parallel", "parallel"),
            vmem_limit_bytes=vmem_limit),
    )(xp, resid, w1p, b1p, w2k, b2p, w3p, b3p)

    out = out_p[..., :cout]
    return jnp.transpose(out, (0, 3, 1, 2))                  # NHWC -> NCHW


# ---------------- pure-JAX reference (PyTorch semantics, f32) ----------------
def ref_block(x, w1, w2, w3, bn1, bn2, bn3, *, groups, eps=1e-5):
    def bn(y, p):
        g, b, m, v = (t[None, :, None, None] for t in p)
        return (y - m) / jnp.sqrt(v + eps) * g + b

    dn = ("NCHW", "OIHW", "NCHW")
    w1_oihw = w1.T[:, :, None, None]                              # (width,Cin,1,1)
    wg = w2.shape[3]
    w2_oihw = jnp.transpose(w2, (2, 4, 3, 0, 1)).reshape(groups * wg, wg, 3, 3)
    w3_oihw = w3.T[:, :, None, None]

    out = lax.conv_general_dilated(x, w1_oihw, (1, 1), "VALID",
                                   dimension_numbers=dn)
    out = jax.nn.relu(bn(out, bn1))
    out = lax.conv_general_dilated(out, w2_oihw, (1, 1), ((1, 1), (1, 1)),
                                   dimension_numbers=dn,
                                   feature_group_count=groups)
    out = jax.nn.relu(bn(out, bn2))
    out = lax.conv_general_dilated(out, w3_oihw, (1, 1), "VALID",
                                   dimension_numbers=dn)
    out = bn(out, bn3)
    return jax.nn.relu(out + x)


if __name__ == "__main__":
    # Block(in_channels=16, out_channels=4, stride=1, groups=2, width_per_group=64)
    #   width = int(4 * 64/64) * 2 = 8 ; output channels = 4 * expansion(4) = 16
    B, Cin, Hs, Ws = 2, 16, 16, 16
    out_channels, groups, width_per_group = 4, 2, 64
    width = int(out_channels * (width_per_group / 64.0)) * groups   # 8
    cout = out_channels * 4                                         # 16 (== Cin)
    wg = width // groups

    key = jax.random.PRNGKey(0)
    ks = jax.random.split(key, 8)

    x = jax.random.normal(ks[0], (B, Cin, Hs, Ws), jnp.float32)

    # PyTorch conv weights (OIHW) stored here in matmul-friendly layouts.
    w1 = jax.random.normal(ks[1], (Cin, width), jnp.float32) * 0.1     # 1x1
    w2 = jax.random.normal(ks[2], (3, 3, groups, wg, wg), jnp.float32) * 0.1
    w3 = jax.random.normal(ks[3], (width, cout), jnp.float32) * 0.1    # 1x1

    def make_bn(k, c):
        k1, k2, k3, k4 = jax.random.split(k, 4)
        gamma = 1.0 + 0.1 * jax.random.normal(k1, (c,), jnp.float32)
        beta = 0.1 * jax.random.normal(k2, (c,), jnp.float32)
        mean = 0.1 * jax.random.normal(k3, (c,), jnp.float32)
        var = jnp.abs(jax.random.normal(k4, (c,), jnp.float32)) + 0.5
        return (gamma, beta, mean, var)

    bn1 = make_bn(ks[4], width)
    bn2 = make_bn(ks[5], width)
    bn3 = make_bn(ks[6], cout)

    out = resnext_block(x, w1, w2, w3, bn1, bn2, bn3, groups=groups)
    out = jax.block_until_ready(out)

    ref = ref_block(x, w1, w2, w3, bn1, bn2, bn3, groups=groups)
    assert out.shape == (B, cout, Hs, Ws)
    err = float(jnp.max(jnp.abs(out - ref)))
    # bf16 MXU operands with f32 accumulation -> loosened tolerance vs f32 reference
    assert jnp.allclose(out, ref, atol=3e-2, rtol=3e-2), err

    print("KERNEL_OK")
</pallas_src>

<mosaic_0001>
module attributes {stable_mosaic.version = 11 : i64} {
  func.func @_block_kernel(%arg0: i32, %arg1: i32, %arg2: memref<1x18x24x128xbf16, #tpu.memory_space<vmem>>, %arg3: memref<1x16x16x128xf32, #tpu.memory_space<vmem>>, %arg4: memref<128x128xbf16, #tpu.memory_space<vmem>>, %arg5: memref<1x128xf32, #tpu.memory_space<vmem>>, %arg6: memref<3x384x128xbf16, #tpu.memory_space<vmem>>, %arg7: memref<1x128xf32, #tpu.memory_space<vmem>>, %arg8: memref<128x128xbf16, #tpu.memory_space<vmem>>, %arg9: memref<1x128xf32, #tpu.memory_space<vmem>>, %arg10: memref<1x16x16x128xf32, #tpu.memory_space<vmem>>, %arg11: memref<18x16x384xbf16, #tpu.memory_space<vmem>>, %arg12: memref<256x128xf32, #tpu.memory_space<vmem>>) attributes {dimension_semantics = [#tpu.dimension_semantics<parallel>, #tpu.dimension_semantics<parallel>], iteration_bounds = array<i64: 2, 1>, scalar_prefetch = 0 : i64, scratch_operands = 2 : i64, tpu.core_type = #tpu.core_type<tc>, window_params = [{transform_indices = @transform_0, window_bounds = array<i64: 1, 18, 24, 128>}, {transform_indices = @transform_1, window_bounds = array<i64: 1, 16, 16, 128>}, {pipeline_mode = #tpu.pipeline_mode<synchronous>, transform_indices = @transform_2, window_bounds = array<i64: 128, 128>}, {pipeline_mode = #tpu.pipeline_mode<synchronous>, transform_indices = @transform_3, window_bounds = array<i64: 1, 128>}, {pipeline_mode = #tpu.pipeline_mode<synchronous>, transform_indices = @transform_4, window_bounds = array<i64: 3, 384, 128>}, {pipeline_mode = #tpu.pipeline_mode<synchronous>, transform_indices = @transform_5, window_bounds = array<i64: 1, 128>}, {pipeline_mode = #tpu.pipeline_mode<synchronous>, transform_indices = @transform_6, window_bounds = array<i64: 128, 128>}, {pipeline_mode = #tpu.pipeline_mode<synchronous>, transform_indices = @transform_7, window_bounds = array<i64: 1, 128>}, {transform_indices = @transform_8, window_bounds = array<i64: 1, 16, 16, 128>}]} {
    %c16_i32 = arith.constant 16 : i32
    %0 = arith.muli %arg1, %c16_i32 : i32
    %1 = tpu.assume_multiple %0, 16 : i32
    %c0 = arith.constant 0 : index
    %2 = arith.index_cast %1 : i32 to index
    %c0_0 = arith.constant 0 : index
    %c0_1 = arith.constant 0 : index
    %3 = vector.load %arg2[%c0, %2, %c0_0, %c0_1] : memref<1x18x24x128xbf16, #tpu.memory_space<vmem>>, vector<1x18x24x128xbf16>
    %4 = vector.shape_cast %3 : vector<1x18x24x128xbf16> to vector<432x128xbf16>
    %c0_2 = arith.constant 0 : index
    %c0_3 = arith.constant 0 : index
    %5 = vector.load %arg4[%c0_2, %c0_3] : memref<128x128xbf16, #tpu.memory_space<vmem>>, vector<128x128xbf16>
    %cst = arith.constant dense<0.000000e+00> : vector<432x128xf32>
    %6 = tpu.matmul %4, %5, %cst {dimension_numbers = #tpu.dot_dimension_numbers<[1], [0], [0], [1], [0, 0, 1, 1], [], []>} : vector<432x128xbf16>, vector<128x128xbf16>, vector<432x128xf32> -> vector<432x128xf32>
    %c0_4 = arith.constant 0 : index
    %c0_5 = arith.constant 0 : index
    %7 = vector.load %arg5[%c0_4, %c0_5] : memref<1x128xf32, #tpu.memory_space<vmem>>, vector<1x128xf32>
    %8 = vector.broadcast %7 : vector<1x128xf32> to vector<432x128xf32>
    %9 = arith.addf %6, %8 : vector<432x128xf32>
    %cst_6 = arith.constant 0.000000e+00 : f32
    %10 = vector.broadcast %cst_6 : f32 to vector<432x128xf32>
    %11 = arith.maximumf %9, %10 : vector<432x128xf32>
    %12 = arith.truncf %11 : vector<432x128xf32> to vector<432x128xbf16>
    %13 = vector.shape_cast %12 : vector<432x128xbf16> to vector<18x24x128xbf16>
    %14 = vector.extract_strided_slice %13 {offsets = [0, 0, 0], sizes = [18, 16, 128], strides = [1, 1, 1]} : vector<18x24x128xbf16> to vector<18x16x128xbf16>
    %c0_7 = arith.constant 0 : index
    %c0_8 = arith.constant 0 : index
    %c0_9 = arith.constant 0 : index
    %15 = vector.load %arg11[%c0_7, %c0_8, %c0_9] : memref<18x16x384xbf16, #tpu.memory_space<vmem>>, vector<18x16x128xbf16>
    tpu.vector_store %arg11[%c0_7, %c0_8, %c0_9], %14 {strides = array<i32>} : memref<18x16x384xbf16, #tpu.memory_space<vmem>>, vector<18x16x128xbf16>,
    %16 = vector.extract_strided_slice %13 {offsets = [0, 1, 0], sizes = [18, 16, 128], strides = [1, 1, 1]} : vector<18x24x128xbf16> to vector<18x16x128xbf16>
    %c0_10 = arith.constant 0 : index
    %c0_11 = arith.constant 0 : index
    %c128 = arith.constant 128 : index
    %17 = vector.load %arg11[%c0_10, %c0_11, %c128] : memref<18x16x384xbf16, #tpu.memory_space<vmem>>, vector<18x16x128xbf16>
    tpu.vector_store %arg11[%c0_10, %c0_11, %c128], %16 {strides = array<i32>} : memref<18x16x384xbf16, #tpu.memory_space<vmem>>, vector<18x16x128xbf16>,
    %18 = vector.extract_strided_slice %13 {offsets = [0, 2, 0], sizes = [18, 16, 128], strides = [1, 1, 1]} : vector<18x24x128xbf16> to vector<18x16x128xbf16>
    %c0_12 = arith.constant 0 : index
    %c0_13 = arith.constant 0 : index
    %c256 = arith.constant 256 : index
    %19 = vector.load %arg11[%c0_12, %c0_13, %c256] : memref<18x16x384xbf16, #tpu.memory_space<vmem>>, vector<18x16x128xbf16>
    tpu.vector_store %arg11[%c0_12, %c0_13, %c256], %18 {strides = array<i32>} : memref<18x16x384xbf16, #tpu.memory_space<vmem>>, vector<18x16x128xbf16>,
    %cst_14 = arith.constant 0.000000e+00 : bf16
    %20 = vector.broadcast %cst_14 : bf16 to vector<18x1x128xbf16>
    %c0_15 = arith.constant 0 : index
    %c0_16 = arith.constant 0 : index
    %c0_17 = arith.constant 0 : index
    %21 = vector.load %arg11[%c0_15, %c0_16, %c0_17] : memref<18x16x384xbf16, #tpu.memory_space<vmem>>, vector<18x1x128xbf16>
    tpu.vector_store %arg11[%c0_15, %c0_16, %c0_17], %20 {strides = array<i32>} : memref<18x16x384xbf16, #tpu.memory_space<vmem>>, vector<18x1x128xbf16>,
    %c0_18 = arith.constant 0 : index
    %c15 = arith.constant 15 : index
    %c256_19 = arith.constant 256 : index
    %22 = vector.load %arg11[%c0_18, %c15, %c256_19] : memref<18x16x384xbf16, #tpu.memory_space<vmem>>, vector<18x1x128xbf16>
    tpu.vector_store %arg11[%c0_18, %c15, %c256_19], %20 {strides = array<i32>} : memref<18x16x384xbf16, #tpu.memory_space<vmem>>, vector<18x1x128xbf16>,
    %c0_i32 = arith.constant 0 : i32
    %23 = arith.cmpi eq, %arg1, %c0_i32 : i32
    %24 = arith.extui %23 : i1 to i32
    %c0_i32_20 = arith.constant 0 : i32
    %25 = arith.cmpi ne, %24, %c0_i32_20 : i32
    scf.if %25 {
      %cst_71 = arith.constant 0.000000e+00 : bf16
      %70 = vector.broadcast %cst_71 : bf16 to vector<1x16x384xbf16>
      %c0_72 = arith.constant 0 : index
      %c0_73 = arith.constant 0 : index
      %c0_74 = arith.constant 0 : index
      %71 = vector.load %arg11[%c0_72, %c0_73, %c0_74] : memref<18x16x384xbf16, #tpu.memory_space<vmem>>, vector<1x16x384xbf16>
      tpu.vector_store %arg11[%c0_72, %c0_73, %c0_74], %70 {strides = array<i32>} : memref<18x16x384xbf16, #tpu.memory_space<vmem>>, vector<1x16x384xbf16>,
    } else {
    }
    %c0_i32_21 = arith.constant 0 : i32
    %26 = arith.cmpi eq, %arg1, %c0_i32_21 : i32
    %27 = arith.extui %26 : i1 to i32
    %c0_i32_22 = arith.constant 0 : i32
    %28 = arith.cmpi ne, %27, %c0_i32_22 : i32
    scf.if %28 {
      %cst_71 = arith.constant 0.000000e+00 : bf16
      %70 = vector.broadcast %cst_71 : bf16 to vector<1x16x384xbf16>
      %c17 = arith.constant 17 : index
      %c0_72 = arith.constant 0 : index
      %c0_73 = arith.constant 0 : index
      %71 = vector.load %arg11[%c17, %c0_72, %c0_73] : memref<18x16x384xbf16, #tpu.memory_space<vmem>>, vector<1x16x384xbf16>
      tpu.vector_store %arg11[%c17, %c0_72, %c0_73], %70 {strides = array<i32>} : memref<18x16x384xbf16, #tpu.memory_space<vmem>>, vector<1x16x384xbf16>,
    } else {
    }
    %c0_23 = arith.constant 0 : index
    %c0_24 = arith.constant 0 : index
    %c0_25 = arith.constant 0 : index
    %29 = vector.load %arg11[%c0_23, %c0_24, %c0_25] : memref<18x16x384xbf16, #tpu.memory_space<vmem>>, vector<16x16x384xbf16>
    %30 = vector.shape_cast %29 : vector<16x16x384xbf16> to vector<256x384xbf16>
    %c0_26 = arith.constant 0 : index
    %c0_27 = arith.constant 0 : index
    %c0_28 = arith.constant 0 : index
    %31 = vector.load %arg6[%c0_26, %c0_27, %c0_28] : memref<3x384x128xbf16, #tpu.memory_space<vmem>>, vector<1x384x128xbf16>
    %32 = vector.shape_cast %31 : vector<1x384x128xbf16> to vector<384x128xbf16>
    %cst_29 = arith.constant dense<0.000000e+00> : vector<256x128xf32>
    %33 = tpu.matmul %30, %32, %cst_29 {dimension_numbers = #tpu.dot_dimension_numbers<[1], [0], [0], [1], [0, 0, 1, 1], [], []>} : vector<256x384xbf16>, vector<384x128xbf16>, vector<256x128xf32> -> vector<256x128xf32>
    %c0_30 = arith.constant 0 : index
    %c0_31 = arith.constant 0 : index
    %34 = vector.load %arg12[%c0_30, %c0_31] : memref<256x128xf32, #tpu.memory_space<vmem>>, vector<256x128xf32>
    tpu.vector_store %arg12[%c0_30, %c0_31], %33 {strides = array<i32>} : memref<256x128xf32, #tpu.memory_space<vmem>>, vector<256x128xf32>,
    %c0_32 = arith.constant 0 : index
    %c0_33 = arith.constant 0 : index
    %35 = vector.load %arg12[%c0_32, %c0_33] : memref<256x128xf32, #tpu.memory_space<vmem>>, vector<256x128xf32>
    %c1 = arith.constant 1 : index
    %c0_34 = arith.constant 0 : index
    %c0_35 = arith.constant 0 : index
    %36 = vector.load %arg11[%c1, %c0_34, %c0_35] : memref<18x16x384xbf16, #tpu.memory_space<vmem>>, vector<16x16x384xbf16>
    %37 = vector.shape_cast %36 : vector<16x16x384xbf16> to vector<256x384xbf16>
    %c1_36 = arith.constant 1 : index
    %c0_37 = arith.constant 0 : index
    %c0_38 = arith.constant 0 : index
    %38 = vector.load %arg6[%c1_36, %c0_37, %c0_38] : memref<3x384x128xbf16, #tpu.memory_space<vmem>>, vector<1x384x128xbf16>
    %39 = vector.shape_cast %38 : vector<1x384x128xbf16> to vector<384x128xbf16>
    %cst_39 = arith.constant dense<0.000000e+00> : vector<256x128xf32>
    %40 = tpu.matmul %37, %39, %cst_39 {dimension_numbers = #tpu.dot_dimension_numbers<[1], [0], [0], [1], [0, 0, 1, 1], [], []>} : vector<256x384xbf16>, vector<384x128xbf16>, vector<256x128xf32> -> vector<256x128xf32>
    %41 = arith.addf %35, %40 : vector<256x128xf32>
    %c0_40 = arith.constant 0 : index
    %c0_41 = arith.constant 0 : index
    %42 = vector.load %arg12[%c0_40, %c0_41] : memref<256x128xf32, #tpu.memory_space<vmem>>, vector<256x128xf32>
    tpu.vector_store %arg12[%c0_40, %c0_41], %41 {strides = array<i32>} : memref<256x128xf32, #tpu.memory_space<vmem>>, vector<256x128xf32>,
    %c0_42 = arith.constant 0 : index
    %c0_43 = arith.constant 0 : index
    %43 = vector.load %arg12[%c0_42, %c0_43] : memref<256x128xf32, #tpu.memory_space<vmem>>, vector<256x128xf32>
    %c2 = arith.constant 2 : index
    %c0_44 = arith.constant 0 : index
    %c0_45 = arith.constant 0 : index
    %44 = vector.load %arg11[%c2, %c0_44, %c0_45] : memref<18x16x384xbf16, #tpu.memory_space<vmem>>, vector<16x16x384xbf16>
    %45 = vector.shape_cast %44 : vector<16x16x384xbf16> to vector<256x384xbf16>
    %c2_46 = arith.constant 2 : index
    %c0_47 = arith.constant 0 : index
    %c0_48 = arith.constant 0 : index
    %46 = vector.load %arg6[%c2_46, %c0_47, %c0_48] : memref<3x384x128xbf16, #tpu.memory_space<vmem>>, vector<1x384x128xbf16>
    %47 = vector.shape_cast %46 : vector<1x384x128xbf16> to vector<384x128xbf16>
    %cst_49 = arith.constant dense<0.000000e+00> : vector<256x128xf32>
    %48 = tpu.matmul %45, %47, %cst_49 {dimension_numbers = #tpu.dot_dimension_numbers<[1], [0], [0], [1], [0, 0, 1, 1], [], []>} : vector<256x384xbf16>, vector<384x128xbf16>, vector<256x128xf32> -> vector<256x128xf32>
    %49 = arith.addf %43, %48 : vector<256x128xf32>
    %c0_50 = arith.constant 0 : index
    %c0_51 = arith.constant 0 : index
    %50 = vector.load %arg12[%c0_50, %c0_51] : memref<256x128xf32, #tpu.memory_space<vmem>>, vector<256x128xf32>
    tpu.vector_store %arg12[%c0_50, %c0_51], %49 {strides = array<i32>} : memref<256x128xf32, #tpu.memory_space<vmem>>, vector<256x128xf32>,
    %c0_52 = arith.constant 0 : index
    %c0_53 = arith.constant 0 : index
    %51 = vector.load %arg12[%c0_52, %c0_53] : memref<256x128xf32, #tpu.memory_space<vmem>>, vector<256x128xf32>
    %c0_54 = arith.constant 0 : index
    %c0_55 = arith.constant 0 : index
    %52 = vector.load %arg7[%c0_54, %c0_55] : memref<1x128xf32, #tpu.memory_space<vmem>>, vector<1x128xf32>
    %53 = vector.broadcast %52 : vector<1x128xf32> to vector<256x128xf32>
    %54 = arith.addf %51, %53 : vector<256x128xf32>
    %cst_56 = arith.constant 0.000000e+00 : f32
    %55 = vector.broadcast %cst_56 : f32 to vector<256x128xf32>
    %56 = arith.maximumf %54, %55 : vector<256x128xf32>
    %57 = arith.truncf %56 : vector<256x128xf32> to vector<256x128xbf16>
    %c0_57 = arith.constant 0 : index
    %c0_58 = arith.constant 0 : index
    %58 = vector.load %arg8[%c0_57, %c0_58] : memref<128x128xbf16, #tpu.memory_space<vmem>>, vector<128x128xbf16>
    %cst_59 = arith.constant dense<0.000000e+00> : vector<256x128xf32>
    %59 = tpu.matmul %57, %58, %cst_59 {dimension_numbers = #tpu.dot_dimension_numbers<[1], [0], [0], [1], [0, 0, 1, 1], [], []>} : vector<256x128xbf16>, vector<128x128xbf16>, vector<256x128xf32> -> vector<256x128xf32>
    %c0_60 = arith.constant 0 : index
    %c0_61 = arith.constant 0 : index
    %60 = vector.load %arg9[%c0_60, %c0_61] : memref<1x128xf32, #tpu.memory_space<vmem>>, vector<1x128xf32>
    %61 = vector.broadcast %60 : vector<1x128xf32> to vector<256x128xf32>
    %62 = arith.addf %59, %61 : vector<256x128xf32>
    %c0_62 = arith.constant 0 : index
    %c0_63 = arith.constant 0 : index
    %c0_64 = arith.constant 0 : index
    %c0_65 = arith.constant 0 : index
    %63 = vector.load %arg3[%c0_62, %c0_63, %c0_64, %c0_65] : memref<1x16x16x128xf32, #tpu.memory_space<vmem>>, vector<1x16x16x128xf32>
    %64 = vector.shape_cast %63 : vector<1x16x16x128xf32> to vector<256x128xf32>
    %65 = arith.addf %62, %64 : vector<256x128xf32>
    %cst_66 = arith.constant 0.000000e+00 : f32
    %66 = vector.broadcast %cst_66 : f32 to vector<256x128xf32>
    %67 = arith.maximumf %65, %66 : vector<256x128xf32>
    %68 = vector.shape_cast %67 : vector<256x128xf32> to vector<1x16x16x128xf32>
    %c0_67 = arith.constant 0 : index
    %c0_68 = arith.constant 0 : index
    %c0_69 = arith.constant 0 : index
    %c0_70 = arith.constant 0 : index
    %69 = vector.load %arg10[%c0_67, %c0_68, %c0_69, %c0_70] : memref<1x16x16x128xf32, #tpu.memory_space<vmem>>, vector<1x16x16x128xf32>
    tpu.vector_store %arg10[%c0_67, %c0_68, %c0_69, %c0_70], %68 {strides = array<i32>} : memref<1x16x16x128xf32, #tpu.memory_space<vmem>>, vector<1x16x16x128xf32>,
    return
  }
  func.func @transform_0(%arg0: i32, %arg1: i32) -> (i32, i32, i32, i32) {
    %c0_i32 = arith.constant 0 : i32
    %c0_i32_0 = arith.constant 0 : i32
    %c0_i32_1 = arith.constant 0 : i32
    %c0_i32_2 = arith.constant 0 : i32
    return %arg0, %c0_i32, %c0_i32_0, %c0_i32_1 : i32, i32, i32, i32
  }
  func.func @transform_1(%arg0: i32, %arg1: i32) -> (i32, i32, i32, i32) {
    %c0_i32 = arith.constant 0 : i32
    %c0_i32_0 = arith.constant 0 : i32
    %c0_i32_1 = arith.constant 0 : i32
    return %arg0, %arg1, %c0_i32, %c0_i32_0 : i32, i32, i32, i32
  }
  func.func @transform_2(%arg0: i32, %arg1: i32) -> (i32, i32) {
    %c0_i32 = arith.constant 0 : i32
    %c0_i32_0 = arith.constant 0 : i32
    %c0_i32_1 = arith.constant 0 : i32
    return %c0_i32, %c0_i32_0 : i32, i32
  }
  func.func @transform_3(%arg0: i32, %arg1: i32) -> (i32, i32) {
    %c0_i32 = arith.constant 0 : i32
    %c0_i32_0 = arith.constant 0 : i32
    %c0_i32_1 = arith.constant 0 : i32
    return %c0_i32, %c0_i32_0 : i32, i32
  }
  func.func @transform_4(%arg0: i32, %arg1: i32) -> (i32, i32, i32) {
    %c0_i32 = arith.constant 0 : i32
    %c0_i32_0 = arith.constant 0 : i32
    %c0_i32_1 = arith.constant 0 : i32
    %c0_i32_2 = arith.constant 0 : i32
    return %c0_i32, %c0_i32_0, %c0_i32_1 : i32, i32, i32
  }
  func.func @transform_5(%arg0: i32, %arg1: i32) -> (i32, i32) {
    %c0_i32 = arith.constant 0 : i32
    %c0_i32_0 = arith.constant 0 : i32
    %c0_i32_1 = arith.constant 0 : i32
    return %c0_i32, %c0_i32_0 : i32, i32
  }
  func.func @transform_6(%arg0: i32, %arg1: i32) -> (i32, i32) {
    %c0_i32 = arith.constant 0 : i32
    %c0_i32_0 = arith.constant 0 : i32
    %c0_i32_1 = arith.constant 0 : i32
    return %c0_i32, %c0_i32_0 : i32, i32
  }
  func.func @transform_7(%arg0: i32, %arg1: i32) -> (i32, i32) {
    %c0_i32 = arith.constant 0 : i32
    %c0_i32_0 = arith.constant 0 : i32
    %c0_i32_1 = arith.constant 0 : i32
    return %c0_i32, %c0_i32_0 : i32, i32
  }
  func.func @transform_8(%arg0: i32, %arg1: i32) -> (i32, i32, i32, i32) {
    %c0_i32 = arith.constant 0 : i32
    %c0_i32_0 = arith.constant 0 : i32
    %c0_i32_1 = arith.constant 0 : i32
    return %arg0, %arg1, %c0_i32, %c0_i32_0 : i32, i32, i32, i32
  }
}

</mosaic_0001>

<bundles_post_ra>
// kernel: tpu_custom_call.1
= control target key start
LH: loop header
LB: loop body
LE: loop exit
PB: predicated region body
PF: predicated region fallthrough
CT: control target
= control target key end

     0   :  { %s7163_s0 = inlined_call_operand.hbm [shape: bf16[2,18,24,128], index: 0, kind: input, shape index: {}]   ;;  %s7164_s1 = inlined_call_operand.hbm [shape: f32[2,16,16,128], index: 1, kind: input, shape index: {}]   ;;  %s7165_s2 = inlined_call_operand.hbm [shape: bf16[128,128], index: 2, kind: input, shape index: {}]   ;;  %s7166_s3 = inlined_call_operand.vmem [shape: f32[1,128], index: 3, kind: input, shape index: {}]   ;;  %s7167_s4 = inlined_call_operand.hbm [shape: bf16[3,384,128], index: 4, kind: input, shape index: {}]   ;;  %s7168_s5 = inlined_call_operand.vmem [shape: f32[1,128], index: 5, kind: input, shape index: {}]   ;;  %s7169_s6 = inlined_call_operand.hbm [shape: bf16[128,128], index: 6, kind: input, shape index: {}]   ;;  %s7170_s7 = inlined_call_operand.vmem [shape: f32[1,128], index: 7, kind: input, shape index: {}]   ;;  %s7171_s8 = inlined_call_operand.hbm [shape: f32[2,16,16,128], index: 8, kind: output, shape index: {}]  }
   0x1   :  { %7180 = sst [smem:[#allocation38_spill]] %s7163_s0 }
   0x2   :  { %7181 = sst [smem:[#allocation39_spill]] %s7165_s2 }
   0x3   :  { %7182 = sst [smem:[#allocation40_spill]] %s7167_s4 }
   0x4   :  { %7183 = sst [smem:[#allocation41_spill]] %s7169_s6 }
   0x5   :  { %7184 = sst [smem:[#allocation42_spill]] %s7171_s8 }
   0x6   :  { %13 = vsyncpa [#allocation5], 0 }
   0x7   :  { %15 = vsyncpa [#allocation5 + $0x1], 0 }
   0x8   :  { %16 = vsyncpa [#allocation8], 0 }
   0x9   :  { %18 = vsyncpa [#allocation8 + $0x1], 0 }
   0xa   :  { %19 = vsyncpa [#allocation11], 0 }
   0xb   :  { %20 = vsyncpa [#allocation6], 0 }
   0xc   :  { %22 = vsyncpa [#allocation6 + $0x1], 0  ;;  %s5902_s27 = smov 0   ;;  %s5904_s28 = smov 0  }
   0xd   :  { %s5906_s29 = smov 0   ;;  %s5908_s30 = smov 0  }
   0xe   :  { %s5910_s9 = smov 0   ;;  %s5912_s10 = smov 0  }
   0xf LB: > { %7185 = sst [smem:[#allocation19_spill]] %s5820_s27  ;;  %s5933_s11 = sadd.s32 4294967295, %s5840_s10   ;;  %s5840_s10 = sphi %s5912_s10, %s28_s10   ;;  %s5836_s9 = sphi %s5910_s9, %s7256_s9   ;;  %s5832_s30 = sphi %s5908_s30, %s7255_s30   ;;  %s5828_s29 = sphi %s5906_s29, %s7254_s29   ;;  %s5824_s28 = sphi %s5904_s28, %s7253_s28   ;;  %s5820_s27 = sphi %s5902_s27, %s7252_s27  }
  0x10   : > { %7186 = sst [smem:[#allocation20_spill]] %s5832_s30  ;;  %s4223_s12 = sadd.s32 4294967294, %s5840_s10  }
  0x11   : > { %p60_p0 = scmp.ne.s32.totalorder %s5824_s28, %s5820_s27  ;;  %p7172_p1 = scmp.eq.s32.totalorder %s5933_s11, 0 }
  0x12   : > { %p246_p3 = scmp.eq.s32.totalorder %s4223_s12, 1  ;;  %p4224_p5 = scmp.ge.s32.totalorder %s5840_s10, 1 }
  0x13   : > { %p5942_p4 = por %p7172_p1, %p60_p0  ;;  %p253_p7 = scmp.lt.s32.totalorder %s5840_s10, 3 }
  0x14   : > { %p5947_p6 = por %p246_p3, %p60_p0  ;;  %s5842_s16 = smov [#allocation9]  }
  0x15   : > { %s7187_s13 = scalar_select %p5942_p4, 1, 0 }
  0x16   : > { %s7188_s14 = scalar_select %p5947_p6, 1, 0 }
  0x17   : > { %p5952_p8 = pnand %p4224_p5, %p253_p7  ;;  %s265_s17 = sshll.u32 %s5842_s16, 4  ;;  %s5956_s17 = int_to_ptr.vmem [resolvable:$true] %s265_s17 }
  0x18   : > { %7189 = sst [smem:[#allocation21_spill]] %s7188_s14  ;;  %s5843_s19 = smov [#allocation10]  }
  0x19   : > { %s7190_s15 = scalar_select %p5952_p8, 1, 0 }
  0x1a   : > { %p5396_p9 = pneg %p5952_p8  ;;  %s281_s20 = sshll.u32 %s5843_s19, 4  ;;  %s5967_s20 = int_to_ptr.vmem [resolvable:$true] %s281_s20 }
  0x1b   : > { %s5844_s21 = smov [#allocation12]   ;;  %s7192_s2 = sld [smem:[#allocation39_spill]] }
  0x1c   : > { %p5963_p11 = pnand %p5396_p9, %p7172_p1  ;;  %s5969_s22 = sshll.u32 %s5844_s21, 4  ;;  %s298_s22 = int_to_ptr.vmem [resolvable:$true] %s5969_s22 }
  0x1e   : > { %p5979_p13 = pneg %p5963_p11 }
  0x21   : > { %s5602_s25 = scalar_lea.hbm %s7192_s2, 1024 }
  0x22   : > { %p5603_p12 = scmp.ne.s32.totalorder %s7192_s2, %s5602_s25  ;;  %p5609_p5 = scmp.lt.u32.totalorder %s5602_s25, %s7192_s2 }
  0x24   : > { %p5605_p0 = pnand %p5979_p13, %p5603_p12 }
  0x26   : > { %p5606_p3 = pneg %p5605_p0 }
  0x28   : > { %p5611_p7 = pnand %p5609_p5, %p5606_p3 }
  0x2a   : > { %5614 = shalt.err (!%p5611_p7)
}
  0x2b   : > { %s5615_s23 = scalar_lea.vmem %s5956_s17, 1024  ;;  %p5623_p2 = scmp.lt.s32.totalorder %s5956_s17, %s5956_s17 }
  0x2c   : > { %p5616_p9 = scmp.ne.s32.totalorder %s5956_s17, %s5615_s23  ;;  %p5624_p6 = scmp.lt.s32.totalorder %s5615_s23, %s5615_s23 }
  0x2e   : > { %p5618_p10 = pnand %p5616_p9, %p5979_p13  ;;  %p5625_p12 = por %p5624_p6, %p5623_p2 }
  0x30   : > { %p5619_p1 = pneg %p5618_p10 }
  0x32   : > { %p5626_p0 = pnand %p5625_p12, %p5619_p1 }
  0x34   : > { %5629 = shalt.err (!%p5626_p0)
}
  0x35   : > { %s7178_s24 = smov 64   ;;  %s7179_s25 = smov 4  }
  0x36   : > { %5399 = dma.hbm_to_vmem [thread:$0]  (!%p5963_p11), %s7192_s2, 1024, %s5956_s17, [#allocation8], %s7178_s24, %s7178_s24, %s7179_s25  }
  0x37   : > { %s7194_s4 = sld [smem:[#allocation40_spill]] }
  0x3d   : > { %s5630_s23 = scalar_lea.hbm %s7194_s4, 9216 }
  0x3e   : > { %p5631_p1 = scmp.ne.s32.totalorder %s7194_s4, %s5630_s23  ;;  %p5637_p10 = scmp.lt.u32.totalorder %s5630_s23, %s7194_s4 }
  0x40   : > { %p5633_p2 = pnand %p5631_p1, %p5979_p13 }
  0x42   : > { %p5634_p6 = pneg %p5633_p2 }
  0x44   : > { %p5639_p3 = pnand %p5637_p10, %p5634_p6 }
  0x46   : > { %5642 = shalt.err (!%p5639_p3)
}
  0x47   : > { %s5643_s17 = scalar_lea.vmem %s5967_s20, 9216  ;;  %p5651_p12 = scmp.lt.s32.totalorder %s5967_s20, %s5967_s20 }
  0x48   : > { %p5644_p5 = scmp.ne.s32.totalorder %s5967_s20, %s5643_s17  ;;  %p5652_p0 = scmp.lt.s32.totalorder %s5643_s17, %s5643_s17 }
  0x4a   : > { %p5646_p7 = pnand %p5644_p5, %p5979_p13  ;;  %p5653_p1 = por %p5652_p0, %p5651_p12 }
  0x4c   : > { %p5647_p9 = pneg %p5646_p7 }
  0x4e   : > { %p5654_p2 = pnand %p5653_p1, %p5647_p9 }
  0x50   : > { %5657 = shalt.err (!%p5654_p2)
}
  0x51   : > { %5402 = dma.hbm_to_vmem [thread:$0]  (!%p5963_p11), %s7194_s4, 9216, %s5967_s20, [#allocation11], %s7178_s24, %s7178_s24, %s7179_s25  }
  0x52   : > { %s7195_s6 = sld [smem:[#allocation41_spill]] }
  0x58   : > { %s5658_s26 = scalar_lea.hbm %s7195_s6, 1024 }
  0x59   : > { %p5659_p6 = scmp.ne.s32.totalorder %s7195_s6, %s5658_s26  ;;  %p5665_p5 = scmp.lt.u32.totalorder %s5658_s26, %s7195_s6 }
  0x5b   : > { %p5661_p10 = pnand %p5659_p6, %p5979_p13 }
  0x5d   : > { %p5662_p3 = pneg %p5661_p10 }
  0x5f   : > { %p5667_p7 = pnand %p5665_p5, %p5662_p3 }
  0x61   : > { %5670 = shalt.err (!%p5667_p7)
}
  0x62   : > { %s5671_s17 = scalar_lea.vmem %s298_s22, 1024  ;;  %p5679_p1 = scmp.lt.s32.totalorder %s298_s22, %s298_s22 }
  0x63   : > { %p5672_p9 = scmp.ne.s32.totalorder %s298_s22, %s5671_s17  ;;  %p5680_p2 = scmp.lt.s32.totalorder %s5671_s17, %s5671_s17 }
  0x65   : > { %p5674_p12 = pnand %p5672_p9, %p5979_p13  ;;  %p5681_p4 = por %p5680_p2, %p5679_p1 }
  0x67   : > { %p5675_p0 = pneg %p5674_p12 }
  0x69   : > { %p5682_p8 = pnand %p5681_p4, %p5675_p0 }
  0x6b   : > { %5685 = shalt.err (!%p5682_p8)
}
  0x6c   : > { %5405 = dma.hbm_to_vmem [thread:$0]  (!%p5963_p11), %s7195_s6, 1024, %s298_s22, [#allocation11], %s7178_s24, %s7178_s24, %s7179_s25  }
  0x6d   : > { %s47_s16 = sadd.s32 1, %s5828_s29  ;;  %s40_s18 = sadd.s32 1, %s5836_s9 }
  0x6e   : > { %p54_p4 = scmp.ne.s32.totalorder %s5828_s29, %s5824_s28  ;;  %p42_p8 = scmp.ge.s32.totalorder %s40_s18, 2 }
  0x6f   : > { %p55_p13 = scmp.eq.s32.totalorder %s5840_s10, 0  ;;  %p7196_p6 = scmp.eq.s32.totalorder %s5933_s11, 1 }
  0x70   : > { %p5420_p3 = scmp.lt.s32.totalorder %s5840_s10, 2  ;;  %s7258_s18 = smov (%p42_p8, %s40_s18), 0 }
  0x71   : > { %p6058_p10 = por %p7196_p6, %p54_p4  ;;  %p56_p5 = por %p55_p13, %p54_p4 }
  0x72   : > { %s6066_s30 = sand.u32 1, %s5828_s29   ;;  %s44_s22 = ssub.s32 %s5836_s9, %s7258_s18 }
  0x73   : > { %p45_p11 = scmp.eq.s32.totalorder %s44_s22, 0  ;;  %s5375_s14 = smul.u32 216, %s6066_s30 }
  0x74   : > { %s5376_s26 = smul.u32 3456, %s5836_s9  ;;  %p6072_p7 = pnand %p5420_p3, %p56_p5 }
  0x75   : > { %s6077_s19 = scalar_select %p45_p11, %s5828_s29, %s47_s16  }
  0x76   : > { %s7199_s0 = sld [smem:[#allocation38_spill]]  ;;  %s318_s20 = scalar_lea.vmem [#allocation4], %s5375_s14 }
  0x77   : > { %s325_s8 = sshll.u32 %s318_s20, 4  ;;  %s315_s24 = scalar_lea.sflag [#allocation5], %s6066_s30  ;;  %s6084_s8 = int_to_ptr.vmem [resolvable:$true] %s325_s8 }
  0x78   : > { %p5688_p12 = pneg %p6072_p7 }
  0x7c   : > { %s6082_s17 = scalar_lea.hbm %s7199_s0, %s5376_s26  ;;  %s5691_s21 = scalar_lea.hbm %s7199_s0, 6912 }
  0x7d   : > { %s5686_s25 = scalar_lea.hbm %s6082_s17, 3456  ;;  %p5692_p2 = scmp.lt.u32.totalorder %s6082_s17, %s7199_s0 }
  0x7e   : > { %p5687_p9 = scmp.ne.s32.totalorder %s6082_s17, %s5686_s25  ;;  %p5693_p4 = scmp.lt.u32.totalorder %s5691_s21, %s5686_s25 }
  0x7f   : > { %p5695_p13 = scmp.lt.u32.totalorder %s5686_s25, %s6082_s17 }
  0x80   : > { %p5689_p0 = pnand %p5688_p12, %p5687_p9  ;;  %p5694_p8 = por %p5693_p4, %p5692_p2 }
  0x82   : > { %p5690_p1 = pneg %p5689_p0  ;;  %p5696_p6 = por %p5695_p13, %p5694_p8 }
  0x84   : > { %p5697_p3 = pnand %p5696_p6, %p5690_p1 }
  0x86   : > { %5700 = shalt.err (!%p5697_p3)
}
  0x87   : > { %s5701_s14 = scalar_lea.vmem %s6084_s8, 3456  ;;  %s5847_s20 = smov [#allocation4]  }
  0x88   : > { %p5702_p5 = scmp.ne.s32.totalorder %s6084_s8, %s5701_s14  ;;  %s5706_s16 = sshll.u32 %s5847_s20, 4  ;;  %s5707_s16 = int_to_ptr.vmem [resolvable:$false] %s5706_s16 }
  0x89   : > { %s5708_s2 = scalar_lea.vmem %s5707_s16, 6912  ;;  %p5709_p0 = scmp.lt.s32.totalorder %s6084_s8, %s5707_s16 }
  0x8a   : > { %p5704_p11 = pnand %p5702_p5, %p5688_p12  ;;  %p5710_p2 = scmp.lt.s32.totalorder %s5708_s2, %s5701_s14 }
  0x8c   : > { %p5705_p9 = pneg %p5704_p11  ;;  %p5711_p4 = por %p5710_p2, %p5709_p0 }
  0x8e   : > { %p5712_p8 = pnand %p5711_p4, %p5705_p9 }
  0x90   : > { %5715 = shalt.err (!%p5712_p8)
}
  0x91   : > { %s7200_s25 = smov 4   ;;  %s7201_s26 = smov 64  }
  0x92   : > { %5409 = dma.hbm_to_vmem [thread:$0]  (!%p6072_p7), %s6082_s17, 3456, %s6084_s8, %s315_s24, %s7201_s26, %s7201_s26, %s7200_s25  }
  0x93   : > { %s4230_s21 = sshll.u32 %s6066_s30, 8  ;;  %s4380_s23 = sshll.u32 %s5836_s9, 12 }
  0x94   : > { %s6123_s16 = scalar_lea.hbm %s7164_s1, %s4380_s23  ;;  %s339_s2 = scalar_lea.vmem [#allocation7], %s4230_s21 }
  0x95   : > { %s349_s22 = sshll.u32 %s339_s2, 4  ;;  %s7202_s0 = sand.u32 1, %s5840_s10   ;;  %s6125_s22 = int_to_ptr.vmem [resolvable:$true] %s349_s22 }
  0x96   : > { %s6129_s4 = scalar_lea.sflag [#allocation8], %s7202_s0  ;;  %s5716_s6 = scalar_lea.hbm %s6123_s16, 4096 }
  0x97   : > { %p5717_p1 = scmp.ne.s32.totalorder %s6123_s16, %s5716_s6  ;;  %s5721_s17 = scalar_lea.hbm %s7164_s1, 8192 }
  0x98   : > { %p5722_p3 = scmp.lt.u32.totalorder %s6123_s16, %s7164_s1  ;;  %p5723_p5 = scmp.lt.u32.totalorder %s5721_s17, %s5716_s6 }
  0x99   : > { %p5719_p13 = pnand %p5717_p1, %p5688_p12  ;;  %p5725_p9 = scmp.lt.u32.totalorder %s5716_s6, %s6123_s16 }
  0x9a   : > { %p5724_p11 = por %p5723_p5, %p5722_p3 }
  0x9b   : > { %p5720_p6 = pneg %p5719_p13 }
  0x9c   : > { %p5726_p0 = por %p5725_p9, %p5724_p11 }
  0x9e   : > { %p5727_p2 = pnand %p5726_p0, %p5720_p6 }
  0xa0   : > { %5730 = shalt.err (!%p5727_p2)
}
  0xa1   : > { %s5731_s0 = scalar_lea.vmem %s6125_s22, 4096  ;;  %s5848_s26 = smov [#allocation7]  }
  0xa2   : > { %p5732_p4 = scmp.ne.s32.totalorder %s6125_s22, %s5731_s0  ;;  %s5736_s21 = sshll.u32 %s5848_s26, 4  ;;  %s5737_s21 = int_to_ptr.vmem [resolvable:$false] %s5736_s21 }
  0xa3   : > { %s5738_s23 = scalar_lea.vmem %s5737_s21, 8192  ;;  %p5739_p13 = scmp.lt.s32.totalorder %s6125_s22, %s5737_s21 }
  0xa4   : > { %p5734_p8 = pnand %p5732_p4, %p5688_p12  ;;  %p5740_p3 = scmp.lt.s32.totalorder %s5738_s23, %s5731_s0 }
  0xa6   : > { %p5735_p1 = pneg %p5734_p8  ;;  %p5741_p5 = por %p5740_p3, %p5739_p13 }
  0xa8   : > { %p5742_p11 = pnand %p5741_p5, %p5735_p1 }
  0xaa   : > { %5745 = shalt.err (!%p5742_p11)
}
  0xab   : > { %s5849_s6 = smov 128   ;;  %s5850_s14 = smov 8  }
  0xac   : > { %5412 = dma.hbm_to_vmem [thread:$0]  (!%p6072_p7), %s6123_s16, 4096, %s6125_s22, %s6129_s4, %s5849_s6, %s5849_s6, %s5850_s14  }
  0xad   : > { %p7203_p12 = scmp.ne.s32.totalorder %s7190_s15, 0 }
  0xaf   : > { %361 = sbr.rel (%p7203_p12) target bundleno = 1402 (0x57a), region = 52 }
  0xb6   : > { %s6158_s20 = sand.u32 1, %s5824_s28   ;;  %p7204_p6 = scmp.ne.s32.totalorder %s7187_s13, 0 }
  0xb7   : > { %s5377_s2 = smul.u32 216, %s6158_s20  ;;  %s364_s24 = scalar_lea.sflag [#allocation5], %s6158_s20 }
  0xb9   : > { %s6162_s30 = scalar_lea.vmem [#allocation4], %s5377_s2 }
  0xba   : > { %5799 = dma.done.wait (%p7204_p6), %s364_s24, 3456  }
  0xbb   : > { %5801 = vsyncadd (%p7204_p6), %s364_s24, 4294963840  ;;  %s372_s4 = sand.u32 1, %s5933_s11   ;;  %s4234_s15 = sshll.u32 %s6158_s20, 8 }
  0xbc   : > { %s373_s12 = scalar_lea.sflag [#allocation8], %s372_s4  ;;  %s6172_s22 = scalar_lea.vmem [#allocation7], %s4234_s15 }
  0xbd   : > { %5803 = dma.done.wait (%p7204_p6), %s373_s12, 4096  }
  0xbe   : > { %5805 = vsyncadd (%p7204_p6), %s373_s12, 4294963200  ;;  %p7205_p7 = scmp.eq.s32.totalorder %s5933_s11, 0 }
  0xc0   : > { %5807 = dma.done.wait (%p7205_p7), [#allocation8], 1024   ;;  %p7206_p9 = pmov %p7205_p7 }
  0xc1   : > { %p7207_p0 = pmov %p7205_p7 }
  0xc2   : > { %5809 = vsyncadd (%p7206_p9), [#allocation8], 4294966272 }
  0xc3   : > { %5811 = dma.done.wait (%p7207_p0), [#allocation11], 10240   ;;  %p7208_p2 = pmov %p7207_p0 }
  0xc4   : > { %v5851_v0 = vmov 0.0   ;;  %vm5852_vm0 = vmmov 0   ;;  %v5485_v1 = vld [vmem:[#allocation9] sm:$0xff]   ;;  %v5486_v2 = vld [vmem:[#allocation9 + $0x8] sm:$0xff]   ;;  %v5487_v3 = vld [vmem:[#allocation9 + $0x10] sm:$0xff]   ;;  %v5853_v34 = vmov 0  }
  0xc5   : > { %5813 = vsyncadd (%p7208_p2), [#allocation11], 4294957056  ;;  %4867 = vmatprep.subr.bf16.mxu0 %v5851_v0  ;;  %4883 = vmatprep.mubr.msk.bf16.mxu0 %vm5852_vm0, %v5851_v0  ;;  %v5488_v4 = vld [vmem:[#allocation9 + $0x18] sm:$0xff]   ;;  %v5489_v5 = vld [vmem:[#allocation9 + $0x20] sm:$0xff]   ;;  %1666 = vst [vmem:[#allocation2 + $0x8] sm:$0xff] %v5853_v34  ;;  %vm1547_vm1 = vcmask 1040384  }
  0xc6   : > { %4868 = vmatpush3.bf16.msra.mxu0 %v5485_v1  ;;  %v5490_v6 = vld [vmem:[#allocation9 + $0x28] sm:$0xff]   ;;  %v5491_v7 = vld [vmem:[#allocation9 + $0x30] sm:$0xff]   ;;  %v5492_v8 = vld [vmem:[#allocation9 + $0x38] sm:$0xff]   ;;  %1944 = vmatprep.mubr.bf16.mxu1 %v5853_v34  ;;  %vm1548_vm2 = vsmask.f32 256  ;;  %vm1456_vm4 = vcmask 1046528  }
  0xc7   : > { %4869 = vmatprep.subr.bf16.mxu0 %v5851_v0  ;;  %v5493_v9 = vld [vmem:[%s6162_s30] sm:$0xff]   ;;  %v5494_v10 = vld [vmem:[%s6162_s30 + $0x8] sm:$0xff]   ;;  %v5495_v11 = vld [vmem:[%s6162_s30 + $0x10] sm:$0xff]   ;;  %vm1604_vm5 = vcmask 1047559   ;;  %vm1605_vm6 = vsmask.f32 7966 }
  0xc8   : > { %v5496_v12 = vld [vmem:[%s6162_s30 + $0x18] sm:$0xff]   ;;  %v5497_v13 = vld [vmem:[%s6162_s30 + $0x20] sm:$0xff]   ;;  %v5498_v14 = vld [vmem:[%s6162_s30 + $0x28] sm:$0xff]   ;;  %vm1203_vm8 = vsmask.f32 7424  ;;  %s7017_s21 = scalar_lea.vmem [#allocation13], %s4234_s15 }
  0xc9   : > { %v5499_v15 = vld [vmem:[%s6162_s30 + $0x30] sm:$0xff]   ;;  %v5500_v16 = vld [vmem:[%s6162_s30 + $0x38] sm:$0xff]   ;;  %v5501_v17 = vld [vmem:[%s6162_s30 + $0x40] sm:$0xff]   ;;  %s7245_s23 = sld [smem:[#allocation20_spill]]  ;;  %s4082_s14 = sshll.u32 %s7017_s21, 4  ;;  %s7111_s14 = int_to_ptr.vmem [resolvable:$true] %s4082_s14 }
  0xca   : > { %4870 = vmatpush3.bf16.msra.mxu0 %v5486_v2  ;;  %v5502_v18 = vld [vmem:[%s6162_s30 + $0x48] sm:$0xff]   ;;  %v5503_v19 = vld [vmem:[%s6162_s30 + $0x50] sm:$0xff]   ;;  %v5504_v20 = vld [vmem:[%s6162_s30 + $0x58] sm:$0xff]   ;;  %s4066_s12 = scalar_lea.sflag [#allocation6], %s6158_s20  ;;  %s5854_s11 = smov [#allocation13]  }
  0xcb   : > { %4871 = vmatprep.subr.bf16.mxu0 %v5851_v0  ;;  %v5517_v21 = vld [vmem:[#allocation10 + $0x40] sm:$0xff]   ;;  %v5519_v23 = vld [vmem:[#allocation10 + $0x48] sm:$0xff]   ;;  %v5521_v26 = vld [vmem:[#allocation10 + $0x50] sm:$0xff]   ;;  %s5750_s13 = sshll.u32 %s5854_s11, 4  ;;  %s5751_s13 = int_to_ptr.vmem [resolvable:$false] %s5750_s13 }
  0xcc   : > { %v5518_v22 = vld [vmem:[#allocation10] sm:$0xff]   ;;  %4435 = vmatprep.subr.bf16.mxu1 %v5517_v21  ;;  %v5520_v24 = vld [vmem:[#allocation10 + $0x8] sm:$0xff]   ;;  %v5522_v27 = vld [vmem:[#allocation10 + $0x10] sm:$0xff]   ;;  %s5752_s16 = scalar_lea.vmem %s5751_s13, 8192  ;;  %p5753_p13 = scmp.lt.s32.totalorder %s7111_s14, %s5751_s13 }
  0xcd   : > { %4436 = vmatpush3.bf16.msra.mxu1 %v5518_v22  ;;  %v5505_v25 = vld [vmem:[%s6162_s30 + $0x60] sm:$0xff]   ;;  %v5524_v28 = vld [vmem:[#allocation10 + $0x58] sm:$0xff]   ;;  %v5523_v30 = vld [vmem:[#allocation10 + $0x80] sm:$0xff]  }
  0xce   : > { %4872 = vmatpush3.bf16.msra.mxu0 %v5487_v3  ;;  %4437 = vmatprep.subr.bf16.mxu1 %v5519_v23  ;;  %v5525_v29 = vld [vmem:[#allocation10 + $0x18] sm:$0xff]   ;;  %v5527_v32 = vld [vmem:[#allocation10 + $0x60] sm:$0xff]   ;;  %v5526_v35 = vld [vmem:[#allocation10 + $0x88] sm:$0xff]  }
  0xcf   : > { %4873 = vmatprep.subr.bf16.mxu0 %v5851_v0  ;;  %v5506_v31 = vld [vmem:[%s6162_s30 + $0x68] sm:$0xff]   ;;  %v5528_v33 = vld [vmem:[#allocation10 + $0x20] sm:$0xff]   ;;  %v5531_v36 = vld [vmem:[#allocation10 + $0x68] sm:$0xff]   ;;  %s4399_s6 = sshll.u32 %s7245_s23, 12 }
  0xd0   : > { %v5532_v37 = vld [vmem:[#allocation10 + $0x28] sm:$0xff]   ;;  %v5530_v38 = vld [vmem:[#allocation10 + $0x90] sm:$0xff]   ;;  %v5507_v39 = vld [vmem:[%s6162_s30 + $0x70] sm:$0xff]  }
  0xd1   : > { %4438 = vmatpush3.bf16.msra.mxu1 %v5520_v24  ;;  %v5534_v40 = vld [vmem:[#allocation10 + $0x70] sm:$0xff]   ;;  %v5533_v42 = vld [vmem:[#allocation10 + $0x98] sm:$0xff]   ;;  %v5537_v45 = vld [vmem:[#allocation10 + $0xa0] sm:$0xff]  }
  0xd2   : > { %4874 = vmatpush3.bf16.msra.mxu0 %v5488_v4  ;;  %4439 = vmatprep.subr.bf16.mxu1 %v5521_v26  ;;  %v5535_v41 = vld [vmem:[#allocation10 + $0x30] sm:$0xff]   ;;  %v5538_v43 = vld [vmem:[#allocation10 + $0x78] sm:$0xff]   ;;  %v5508_v46 = vld [vmem:[%s6162_s30 + $0x78] sm:$0xff]  }
  0xd3   : > { %4875 = vmatprep.subr.bf16.mxu0 %v5851_v0  ;;  %v5539_v44 = vld [vmem:[#allocation10 + $0x38] sm:$0xff]   ;;  %v5540_v47 = vld [vmem:[#allocation10 + $0xa8] sm:$0xff]   ;;  %v5542_v48 = vld [vmem:[#allocation10 + $0xb0] sm:$0xff]  }
  0xd4   : > { %v5509_v49 = vld [vmem:[%s6162_s30 + $0x80] sm:$0xff]   ;;  %v5543_v50 = vld [vmem:[#allocation10 + $0xb8] sm:$0xff]   ;;  %v5512_v53 = vld [vmem:[%s6162_s30 + $0x98] sm:$0xff]  }
  0xd5   : > { %4440 = vmatpush3.bf16.msra.mxu1 %v5522_v27  ;;  %v5510_v51 = vld [vmem:[%s6162_s30 + $0x88] sm:$0xff]   ;;  %v5511_v52 = vld [vmem:[%s6162_s30 + $0x90] sm:$0xff]   ;;  %v5513_v54 = vld [vmem:[%s6162_s30 + $0xa0] sm:$0xff]  }
  0xd6   : > { %4876 = vmatpush3.bf16.msra.mxu0 %v5489_v5  ;;  %4441 = vmatprep.subr.bf16.mxu1 %v5524_v28  ;;  %v5514_v55 = vld [vmem:[%s6162_s30 + $0xa8] sm:$0xff]   ;;  %v5515_v56 = vld [vmem:[%s6162_s30 + $0xb0] sm:$0xff]   ;;  %v5516_v58 = vld [vmem:[%s6162_s30 + $0xb8] sm:$0xff]  }
  0xd7   : > { %4877 = vmatprep.subr.bf16.mxu0 %v5851_v0  ;;  %v5544_v57 = vld [vmem:[#allocation10 + $0x1c0] sm:$0xff]   ;;  %v5529_v59 = vld [vmem:[%s6162_s30 + $0xc0] sm:$0xff]   ;;  %v5536_v60 = vld [vmem:[%s6162_s30 + $0xc8] sm:$0xff]  }
  0xd8   : > { %v5541_v61 = vld [vmem:[%s6162_s30 + $0xd0] sm:$0xff]   ;;  %vm6288_vm3 = vmand %vm1547_vm1, %vm1548_vm2  ;;  %s7246_s30 = sld [smem:[#allocation42_spill]] }
  0xd9   : > { %4442 = vmatpush3.bf16.msra.mxu1 %v5525_v29  ;;  %v6281_v62 = vld [vmem:[%s7166_s3] ss:$0 sm:$0xff]  ;;  %vm6298_vm7 = vmand %vm1604_vm5, %vm1605_vm6 }
  0xda   : > { %4878 = vmatpush3.bf16.msra.mxu0 %v5490_v6  ;;  %4443 = vmatprep.subr.bf16.mxu1 %v5527_v32  ;;  %v5571_v32 = vld [vmem:[#allocation10 + $0xe8] sm:$0xff]  }
  0xdb   : > { %4879 = vmatprep.subr.bf16.mxu0 %v5851_v0 }
  0xdd   : > { %4444 = vmatpush3.bf16.msra.mxu1 %v5528_v33 }
  0xde   : > { %4880 = vmatpush3.bf16.msra.mxu0 %v5491_v7  ;;  %4445 = vmatprep.subr.bf16.mxu1 %v5531_v36  ;;  %s7247_s4 = smov %s7246_s30  ;;  %s7109_s15 = scalar_lea.hbm %s7246_s30, %s4399_s6 }
  0xdf   : > { %4881 = vmatprep.subr.bf16.mxu0 %v5851_v0 }
  0xe1   : > { %4446 = vmatpush3.bf16.msra.mxu1 %v5532_v37 }
  0xe2   : > { %4882 = vmatpush3.bf16.msra.mxu0 %v5492_v8  ;;  %4447 = vmatprep.subr.bf16.mxu1 %v5534_v40 }
  0xe3   : > { %4991 = vmatprep.subr.bf16.mxu0 %v5523_v30 }
  0xe5   : > { %4884 = vmatmul.mubr.bf16.vlgmr.msra.gmra.mrb[0].mxu0 %v5493_v9  ;;  %4448 = vmatpush3.bf16.msra.mxu1 %v5535_v41 }
  0xe6   : > { %4887 = vmatprep.mubr.msk.bf16.mxu0 %vm5852_vm0, %v5851_v0  ;;  %4992 = vmatpush3.bf16.msra.mxu0 %v5523_v30 }
  0xe7   : > { %4993 = vmatprep.subr.bf16.mxu0 %v5526_v35  ;;  %4449 = vmatprep.subr.bf16.mxu1 %v5538_v43 }
  0xe9   : > { %4450 = vmatpush3.bf16.msra.mxu1 %v5539_v44 }
  0xea   : > { %4994 = vmatpush3.bf16.msra.mxu0 %v5526_v35  ;;  %5183 = vmatprep.subr.bf16.mxu1 %v5523_v30 }
  0xeb   : > { %4995 = vmatprep.subr.bf16.mxu0 %v5530_v38 }
  0xec   : > { %1945 = vmatmul.mubr.bf16.vlgmr.msra.gmra.mrb[0].mxu1 %v5853_v34 }
  0xed   : > { %4888 = vmatmul.mubr.bf16.gmra.mrb[4].mxu0 %v5494_v10  ;;  %5191 = vmatpush3.bf16.msra.mxu1 %v5523_v30 }
  0xee   : > { %4891 = vmatprep.mubr.msk.bf16.mxu0 %vm5852_vm0, %v5851_v0  ;;  %4996 = vmatpush3.bf16.msra.mxu0 %v5530_v38 }
  0xef   : > { %4997 = vmatprep.subr.bf16.mxu0 %v5533_v42  ;;  %5184 = vmatprep.subr.bf16.mxu1 %v5526_v35 }
  0xf1   : > { %5192 = vmatpush3.bf16.msra.mxu1 %v5526_v35 }
  0xf2   : > { %4998 = vmatpush3.bf16.msra.mxu0 %v5533_v42  ;;  %5185 = vmatprep.subr.bf16.mxu1 %v5530_v38 }
  0xf3   : > { %4999 = vmatprep.subr.bf16.mxu0 %v5537_v45 }
  0xf5   : > { %4892 = vmatmul.mubr.bf16.gmra.mrb[8].mxu0 %v5495_v11  ;;  %5193 = vmatpush3.bf16.msra.mxu1 %v5530_v38 }
  0xf6   : > { %4895 = vmatprep.mubr.msk.bf16.mxu0 %vm5852_vm0, %v5851_v0  ;;  %5000 = vmatpush3.bf16.msra.mxu0 %v5537_v45 }
  0xf7   : > { %5001 = vmatprep.subr.bf16.mxu0 %v5540_v47  ;;  %5186 = vmatprep.subr.bf16.mxu1 %v5533_v42 }
  0xf9   : > { %5194 = vmatpush3.bf16.msra.mxu1 %v5533_v42 }
  0xfa   : > { %5002 = vmatpush3.bf16.msra.mxu0 %v5540_v47  ;;  %5187 = vmatprep.subr.bf16.mxu1 %v5537_v45 }
  0xfb   : > { %5003 = vmatprep.subr.bf16.mxu0 %v5542_v48 }
  0xfd   : > { %4896 = vmatmul.mubr.bf16.gmra.mrb[12].mxu0 %v5496_v12  ;;  %5195 = vmatpush3.bf16.msra.mxu1 %v5537_v45 }
  0xfe   : > { %4899 = vmatprep.mubr.msk.bf16.mxu0 %vm5852_vm0, %v5851_v0  ;;  %5004 = vmatpush3.bf16.msra.mxu0 %v5542_v48 }
  0xff   : > { %5005 = vmatprep.subr.bf16.mxu0 %v5543_v50  ;;  %5188 = vmatprep.subr.bf16.mxu1 %v5540_v47 }
 0x101   : > { %5196 = vmatpush3.bf16.msra.mxu1 %v5540_v47 }
 0x102   : > { %5006 = vmatpush3.bf16.msra.mxu0 %v5543_v50  ;;  %5189 = vmatprep.subr.bf16.mxu1 %v5542_v48 }
 0x103   : > { %4707 = vmatprep.subr.bf16.mxu0 %v5544_v57 }
 0x105   : > { %4900 = vmatmul.mubr.bf16.gmra.mrb[16].mxu0 %v5497_v13  ;;  %5197 = vmatpush3.bf16.msra.mxu1 %v5542_v48 }
 0x106   : > { %4903 = vmatprep.mubr.msk.bf16.mxu0 %vm5852_vm0, %v5851_v0  ;;  %5190 = vmatprep.subr.bf16.mxu1 %v5543_v50 }
 0x109   : > { %5198 = vmatpush3.bf16.msra.mxu1 %v5543_v50 }
 0x10d   : > { %4904 = vmatmul.mubr.bf16.gmra.mrb[20].mxu0 %v5498_v14 }
 0x10e   : > { %4907 = vmatprep.mubr.msk.bf16.mxu0 %vm5852_vm0, %v5851_v0 }
 0x115   : > { %4908 = vmatmul.mubr.bf16.gmra.mrb[24].mxu0 %v5499_v15 }
 0x116   : > { %4911 = vmatprep.mubr.msk.bf16.mxu0 %vm5852_vm0, %v5851_v0 }
 0x11d   : > { %4912 = vmatmul.mubr.bf16.gmra.mrb[28].mxu0 %v5500_v16 }
 0x11e   : > { %4915 = vmatprep.mubr.msk.bf16.mxu0 %vm5852_vm0, %v5851_v0 }
 0x125   : > { %4916 = vmatmul.mubr.bf16.gmra.mrb[32].mxu0 %v5501_v17 }
 0x126   : > { %4919 = vmatprep.mubr.msk.bf16.mxu0 %vm5852_vm0, %v5851_v0 }
 0x12d   : > { %4920 = vmatmul.mubr.bf16.gmra.mrb[36].mxu0 %v5502_v18 }
 0x12e   : > { %4923 = vmatprep.mubr.msk.bf16.mxu0 %vm5852_vm0, %v5851_v0 }
 0x135   : > { %4924 = vmatmul.mubr.bf16.gmra.mrb[40].mxu0 %v5503_v19 }
 0x136   : > { %4927 = vmatprep.mubr.msk.bf16.mxu0 %vm5852_vm0, %v5851_v0 }
 0x13d   : > { %4928 = vmatmul.mubr.bf16.gmra.mrb[44].mxu0 %v5504_v20 }
 0x13e   : > { %4931 = vmatprep.mubr.msk.bf16.mxu0 %vm5852_vm0, %v5851_v0 }
 0x145   : > { %4932 = vmatmul.mubr.bf16.gmra.mrb[48].mxu0 %v5505_v25 }
 0x146   : > { %4935 = vmatprep.mubr.msk.bf16.mxu0 %vm5852_vm0, %v5851_v0 }
 0x14d   : > { %4936 = vmatmul.mubr.bf16.gmra.mrb[52].mxu0 %v5506_v31 }
 0x14e   : > { %4939 = vmatprep.mubr.msk.bf16.mxu0 %vm5852_vm0, %v5851_v0 }
 0x155   : > { %4940 = vmatmul.mubr.bf16.gmra.mrb[56].mxu0 %v5507_v39 }
 0x156   : > { %4943 = vmatprep.mubr.msk.bf16.mxu0 %vm5852_vm0, %v5851_v0 }
 0x15d   : > { %4944 = vmatmul.mubr.bf16.gmra.mrb[60].mxu0 %v5508_v46 }
 0x15e   : > { %4947 = vmatprep.mubr.msk.bf16.mxu0 %vm5852_vm0, %v5851_v0 }
 0x165   : > { %4948 = vmatmul.mubr.bf16.gmra.mrb[64].mxu0 %v5509_v49 }
 0x166   : > { %4951 = vmatprep.mubr.msk.bf16.mxu0 %vm5852_vm0, %v5851_v0 }
 0x16d   : > { %4952 = vmatmul.mubr.bf16.gmra.mrb[68].mxu0 %v5510_v51 }
 0x16e   : > { %4955 = vmatprep.mubr.msk.bf16.mxu0 %vm5852_vm0, %v5851_v0 }
 0x175   : > { %4956 = vmatmul.mubr.bf16.gmra.mrb[72].mxu0 %v5511_v52 }
 0x176   : > { %4959 = vmatprep.mubr.msk.bf16.mxu0 %vm5852_vm0, %v5851_v0 }
 0x17d   : > { %4960 = vmatmul.mubr.bf16.gmra.mrb[76].mxu0 %v5512_v53 }
 0x17e   : > { %4963 = vmatprep.mubr.msk.bf16.mxu0 %vm5852_vm0, %v5851_v0 }
 0x185   : > { %4964 = vmatmul.mubr.bf16.gmra.mrb[80].mxu0 %v5513_v54 }
 0x186   : > { %4967 = vmatprep.mubr.msk.bf16.mxu0 %vm5852_vm0, %v5851_v0 }
 0x18d   : > { %4968 = vmatmul.mubr.bf16.gmra.mrb[84].mxu0 %v5514_v55 }
 0x18e   : > { %4971 = vmatprep.mubr.msk.bf16.mxu0 %vm5852_vm0, %v5851_v0 }
 0x195   : > { %4972 = vmatmul.mubr.bf16.gmra.mrb[88].mxu0 %v5515_v56 }
 0x196   : > { %4975 = vmatprep.mubr.msk.bf16.mxu0 %vm5852_vm0, %v5851_v0 }
 0x19d   : > { %4976 = vmatmul.mubr.bf16.gmra.mrb[92].mxu0 %v5516_v58 }
 0x19e   : > { %4979 = vmatprep.mubr.msk.bf16.mxu0 %vm5852_vm0, %v5851_v0 }
 0x1a5   : > { %4980 = vmatmul.mubr.bf16.gmra.mrb[96].mxu0 %v5529_v59 }
 0x1a6   : > { %4983 = vmatprep.mubr.msk.bf16.mxu0 %vm5852_vm0, %v5851_v0 }
 0x1ad   : > { %4984 = vmatmul.mubr.bf16.gmra.mrb[100].mxu0 %v5536_v60 }
 0x1ae   : > { %4987 = vmatprep.mubr.msk.bf16.mxu0 %vm5852_vm0, %v5851_v0 }
 0x1b5   : > { %4988 = vmatmul.mubr.bf16.gmra.mrb[104].mxu0 %v5541_v61 }
 0x1b6   : > { %5007 = vmatprep.mubr.bf16.mxu0 %v5853_v34 }
 0x1b8   : > { %v754_v63 = vpop.f32.mrb[0].mxu0 }
 0x1b9   : > { %v755_v1 = vadd.f32 %v6281_v62, %v754_v63  ;;  %v4885_v2 = vpop.f32.mrb[1].mxu0 }
 0x1ba   : > { %v757_v3 = vpop.f32.mrb[2].mxu0 }
 0x1bb   : > { %v758_v4 = vadd.f32 %v6281_v62, %v757_v3  ;;  %v4886_v5 = vpop.f32.mrb[3].mxu0  ;;  %v969_v6 = vmax.f32 %v755_v1, 0.0 }
 0x1bd   : > { %v970_v7 = vmax.f32 %v758_v4, 0.0 }
 0x1bf   : > { %v1023_v0 = vpack.c.bf16 %v970_v7, %v969_v6 }
 0x1c0   : > { %v762_v8 = vpop.f32.mrb[4].mxu0 }
 0x1c1   : > { %1167 = vst [vmem:[#allocation2] sm:$0xff] %v1023_v0  ;;  %v763_v9 = vadd.f32 %v6281_v62, %v762_v8  ;;  %v4889_v10 = vpop.f32.mrb[5].mxu0  ;;  %v1457_v18 = vrot.slane %v1023_v0, 1 }
 0x1c2   : > { %v765_v11 = vpop.f32.mrb[6].mxu0 }
 0x1c3   : > { %v971_v12 = vmax.f32 %v763_v9, 0.0  ;;  %v766_v13 = vadd.f32 %v6281_v62, %v765_v11  ;;  %v4890_v14 = vpop.f32.mrb[7].mxu0 }
 0x1c5   : > { %v4381_v15 = vpack.c.bf16 %v971_v12, %v971_v12  ;;  %v972_v16 = vmax.f32 %v766_v13, 0.0 }
 0x1c7   : > { %v1458_v19 = vrot.slane %v4381_v15, 1  ;;  %v1024_v20 = vpack.c.bf16 %v972_v16, %v971_v12 }
 0x1c8   : > { %v1550_v21 = vld [vmem:[#allocation2] sm:$0x1]  ;;  %v770_v22 = vpop.f32.mrb[8].mxu0 }
 0x1c9   : > { %v1551_v23 = vsel %vm6288_vm3, 0, %v1550_v21  ;;  %v1459_v24 = vsel %vm1456_vm4, %v1457_v18, %v1458_v19  ;;  %v771_v25 = vadd.f32 %v6281_v62, %v770_v22  ;;  %v4893_v26 = vpop.f32.mrb[9].mxu0  ;;  %v1080_v38 = vunpack.c.h.b16 %v1024_v20 }
 0x1ca   : > { %1552 = vst [vmem:[#allocation2] sm:$0x1] %v1551_v23  ;;  %1529 = vst [vmem:[#allocation2 + $0x10] sm:$0xff] %v1459_v24  ;;  %v773_v27 = vpop.f32.mrb[10].mxu0 }
 0x1cb   : > { %1665 = vst [vmem:[#allocation2] sm:$0xff] %v5853_v34  ;;  %v774_v28 = vadd.f32 %v6281_v62, %v773_v27  ;;  %v4894_v29 = vpop.f32.mrb[11].mxu0  ;;  %v973_v30 = vmax.f32 %v771_v25, 0.0 }
 0x1cd   : > { %v974_v31 = vmax.f32 %v774_v28, 0.0 }
 0x1cf   : > { %v1025_v33 = vpack.c.bf16 %v974_v31, %v973_v30  ;;  %v4382_v35 = vpack.c.bf16 %v974_v31, %v974_v31 }
 0x1d0   : > { %v778_v36 = vpop.f32.mrb[12].mxu0 }
 0x1d1   : > { %v1607_v37 = vld [vmem:[#allocation2 + $0x10] sm:$0x80]  ;;  %v1081_v39 = vunpack.c.l.b16 %v1025_v33  ;;  %v779_v40 = vadd.f32 %v6281_v62, %v778_v36  ;;  %v4897_v41 = vpop.f32.mrb[13].mxu0  ;;  %v1224_v47 = vshll.u32 %v4382_v35, 16  ;;  %v1461_v48 = vrot.slane %v4382_v35, 1  ;;  %v5545_v33 = vld [vmem:[#allocation10 + $0x180] sm:$0xff]  }
 0x1d2   : > { %v1608_v42 = vsel %vm6298_vm7, 0, %v1607_v37  ;;  %v781_v43 = vpop.f32.mrb[14].mxu0  ;;  %v5546_v36 = vld [vmem:[#allocation10 + $0x1c8] sm:$0xff]  }
 0x1d3   : > { %1609 = vst [vmem:[#allocation2 + $0x10] sm:$0x80] %v1608_v42  ;;  %v1132_v44 = vpack.c.b16 %v1081_v39, %v1080_v38  ;;  %v782_v45 = vadd.f32 %v6281_v62, %v781_v43  ;;  %v4898_v46 = vpop.f32.mrb[15].mxu0  ;;  %v975_v51 = vmax.f32 %v779_v40, 0.0  ;;  %v1226_v59 = vrot.slane %v1224_v47, 1 }
 0x1d4   : > { %1667 = vst [vmem:[#allocation2 + $0x10] sm:$0xff] %v5853_v34  ;;  %v5547_v46 = vld [vmem:[#allocation10 + $0x188] sm:$0xff]  }
 0x1d5   : > { %1168 = vst [vmem:[#allocation2 + $0x18] sm:$0xff] %v1132_v44  ;;  %v1219_v49 = vshll.u32 %v1132_v44, 16  ;;  %v1460_v50 = vrot.slane %v1132_v44, 1  ;;  %v976_v52 = vmax.f32 %v782_v45, 0.0  ;;  %v1217_v53 = vshrl.u32 %v1132_v44, 16 }
 0x1d7   : > { %v1221_v54 = vrot.slane %v1219_v49, 1  ;;  %v1462_v55 = vsel %vm1456_vm4, %v1460_v50, %v1461_v48  ;;  %v1026_v56 = vpack.c.bf16 %v976_v52, %v975_v51  ;;  %v5548_v50 = vld [vmem:[#allocation10 + $0x1d0] sm:$0xff]  }
 0x1d8   : > { %1530 = vst [vmem:[#allocation2 + $0x28] sm:$0xff] %v1462_v55  ;;  %v786_v57 = vpop.f32.mrb[16].mxu0 }
 0x1d9   : > { %v1222_v58 = vor.u32 %v1221_v54, %v1217_v53  ;;  %1169 = vst [vmem:[#allocation2 + $0x30] sm:$0xff] %v1026_v56  ;;  %v4901_v60 = vpop.f32.mrb[17].mxu0  ;;  %v1231_v34 = vshll.u32 %v1026_v56, 16  ;;  %v787_v61 = vadd.f32 %v6281_v62, %v786_v57  ;;  %v1229_v10 = vshrl.u32 %v1026_v56, 16 }
 0x1da   : > { %v789_v63 = vpop.f32.mrb[18].mxu0  ;;  %v1463_v11 = vrot.slane %v1026_v56, 1 }
 0x1db   : > { %v1227_v1 = vsel %vm1203_vm8, %v1222_v58, %v1226_v59  ;;  %v790_v2 = vadd.f32 %v6281_v62, %v789_v63  ;;  %v4902_v3 = vpop.f32.mrb[19].mxu0  ;;  %v977_v5 = vmax.f32 %v787_v61, 0.0  ;;  %v1233_v0 = vrot.slane %v1231_v34, 1  ;;  %v5549_v59 = vld [vmem:[#allocation10 + $0x190] sm:$0xff]   ;;  %v5550_v63 = vld [vmem:[#allocation10 + $0x1d8] sm:$0xff]  }
 0x1dc   : > { %1439 = vst [vmem:[#allocation2 + $0x20] sm:$0xff] %v1227_v1  ;;  %v1553_v4 = vld [vmem:[#allocation2 + $0x18] sm:$0x1]  ;;  %1952 = vmatprep.mubr.bf16.mxu1 %v1227_v1 }
 0x1dd   : > { %v1554_v6 = vsel %vm6288_vm3, 0, %v1553_v4  ;;  %v978_v7 = vmax.f32 %v790_v2, 0.0  ;;  %v4383_v8 = vpack.c.bf16 %v977_v5, %v977_v5  ;;  %v1234_v22 = vor.u32 %v1233_v0, %v1229_v10 }
 0x1de   : > { %1555 = vst [vmem:[#allocation2 + $0x18] sm:$0x1] %v1554_v6 }
 0x1df   : > { %v1610_v9 = vld [vmem:[#allocation2 + $0x28] sm:$0x80]  ;;  %v1027_v12 = vpack.c.bf16 %v978_v7, %v977_v5  ;;  %v1236_v15 = vshll.u32 %v4383_v8, 16  ;;  %v1464_v16 = vrot.slane %v4383_v8, 1  ;;  %v5551_v8 = vld [vmem:[#allocation10 + $0x198] sm:$0xff]  }
 0x1e0   : > { %v1611_v13 = vsel %vm6298_vm7, 0, %v1610_v9  ;;  %v1556_v14 = vld [vmem:[#allocation2 + $0x30] sm:$0x1]  ;;  %v794_v18 = vpop.f32.mrb[20].mxu0 }
 0x1e1   : > { %1612 = vst [vmem:[#allocation2 + $0x28] sm:$0x80] %v1611_v13  ;;  %v1557_v19 = vsel %vm6288_vm3, 0, %v1556_v14  ;;  %v795_v20 = vadd.f32 %v6281_v62, %v794_v18  ;;  %v4905_v21 = vpop.f32.mrb[21].mxu0  ;;  %v1238_v23 = vrot.slane %v1236_v15, 1  ;;  %v1465_v24 = vsel %vm1456_vm4, %v1463_v11, %v1464_v16  ;;  %v5552_v14 = vld [vmem:[#allocation10 + $0x1e0] sm:$0xff]  }
 0x1e2   : > { %1558 = vst [vmem:[#allocation2 + $0x30] sm:$0x1] %v1557_v19  ;;  %v797_v25 = vpop.f32.mrb[22].mxu0  ;;  %1531 = vst [vmem:[#allocation2 + $0x40] sm:$0xff] %v1465_v24  ;;  %v1086_v39 = vunpack.c.h.b16 %v1027_v12 }
 0x1e3   : > { %v798_v26 = vadd.f32 %v6281_v62, %v797_v25  ;;  %v4906_v27 = vpop.f32.mrb[23].mxu0  ;;  %v6321_v28 = vsel %vm1203_vm8, %v1234_v22, %v1238_v23  ;;  %v979_v29 = vmax.f32 %v795_v20, 0.0  ;;  %v5553_v22 = vld [vmem:[#allocation10 + $0x1a0] sm:$0xff]  }
 0x1e4   : > { %1440 = vst [vmem:[#allocation2 + $0x38] sm:$0xff] %v6321_v28 }
 0x1e5   : > { %v980_v30 = vmax.f32 %v798_v26, 0.0  ;;  %v1675_v31 = vld [vmem:[#allocation2 + $0x18] sm:$0xff] }
 0x1e6   : > { %1953 = vmatmul.mubr.bf16.gmra.mrb[4].mxu1 %v1675_v31 }
 0x1e7   : > { %v1028_v35 = vpack.c.bf16 %v980_v30, %v979_v29  ;;  %1960 = vmatprep.mubr.bf16.mxu1 %v6321_v28  ;;  %v4384_v41 = vpack.c.bf16 %v980_v30, %v980_v30  ;;  %v5554_v29 = vld [vmem:[#allocation10 + $0x1e8] sm:$0xff]  }
 0x1e8   : > { %v802_v37 = vpop.f32.mrb[24].mxu0  ;;  %v1677_v38 = vld [vmem:[#allocation2 + $0x28] sm:$0xff] }
 0x1e9   : > { %v1087_v40 = vunpack.c.l.b16 %v1028_v35  ;;  %v4909_v42 = vpop.f32.mrb[25].mxu0  ;;  %5008 = vmatmul.mubr.bf16.vlgmr.msra.gmra.mrb[108].mxu0 %v1677_v38  ;;  %v1613_v43 = vld [vmem:[#allocation2 + $0x40] sm:$0x80]  ;;  %v803_v44 = vadd.f32 %v6281_v62, %v802_v37  ;;  %v1248_v53 = vshll.u32 %v4384_v41, 16  ;;  %v1467_v55 = vrot.slane %v4384_v41, 1  ;;  %v6329_v56 = vld [vmem:[#allocation2 + $0x30] sm:$0xff] }
 0x1ea   : > { %v805_v45 = vpop.f32.mrb[26].mxu0  ;;  %4708 = vmatpush3.bf16.msra.mxu0 %v5545_v33  ;;  %v1614_v47 = vsel %vm6298_vm7, 0, %v1613_v43  ;;  %v5555_v42 = vld [vmem:[#allocation10 + $0x1a8] sm:$0xff]  }
 0x1eb   : > { %v1134_v48 = vpack.c.b16 %v1087_v40, %v1086_v39  ;;  %v4910_v49 = vpop.f32.mrb[27].mxu0  ;;  %4709 = vmatprep.subr.bf16.mxu0 %v5546_v36  ;;  %1615 = vst [vmem:[#allocation2 + $0x40] sm:$0x80] %v1614_v47  ;;  %v806_v51 = vadd.f32 %v6281_v62, %v805_v45  ;;  %v981_v57 = vmax.f32 %v803_v44, 0.0  ;;  %v1250_v4 = vrot.slane %v1248_v53, 1 }
 0x1ed   : > { %1170 = vst [vmem:[#allocation2 + $0x48] sm:$0xff] %v1134_v48  ;;  %v1243_v52 = vshll.u32 %v1134_v48, 16  ;;  %v1466_v54 = vrot.slane %v1134_v48, 1  ;;  %v982_v58 = vmax.f32 %v806_v51, 0.0  ;;  %v1241_v60 = vshrl.u32 %v1134_v48, 16 }
 0x1ee   : > { %1961 = vmatmul.mubr.bf16.gmra.mrb[8].mxu1 %v6329_v56  ;;  %4710 = vmatpush3.bf16.msra.mxu0 %v5547_v46  ;;  %v5556_v46 = vld [vmem:[#allocation10 + $0x1f0] sm:$0xff]  }
 0x1ef   : > { %v1245_v34 = vrot.slane %v1243_v52, 1  ;;  %v1468_v61 = vsel %vm1456_vm4, %v1466_v54, %v1467_v55  ;;  %4711 = vmatprep.subr.bf16.mxu0 %v5548_v50  ;;  %v1029_v1 = vpack.c.bf16 %v982_v58, %v981_v57  ;;  %v5557_v50 = vld [vmem:[#allocation10 + $0x1b0] sm:$0xff]   ;;  %v5558_v52 = vld [vmem:[#allocation10 + $0x1f8] sm:$0xff]  }
 0x1f0   : > { %1532 = vst [vmem:[#allocation2 + $0x58] sm:$0xff] %v1468_v61  ;;  %v810_v2 = vpop.f32.mrb[28].mxu0 }
 0x1f1   : > { %v1246_v3 = vor.u32 %v1245_v34, %v1241_v60  ;;  %v811_v5 = vadd.f32 %v6281_v62, %v810_v2  ;;  %v4913_v6 = vpop.f32.mrb[29].mxu0  ;;  %1171 = vst [vmem:[#allocation2 + $0x60] sm:$0xff] %v1029_v1  ;;  %v1255_v7 = vshll.u32 %v1029_v1, 16  ;;  %v1253_v21 = vshrl.u32 %v1029_v1, 16 }
 0x1f2   : > { %v813_v0 = vpop.f32.mrb[30].mxu0  ;;  %4712 = vmatpush3.bf16.msra.mxu0 %v5549_v59  ;;  %v1680_v13 = vld [vmem:[#allocation2 + $0x40] sm:$0xff]  ;;  %v1469_v24 = vrot.slane %v1029_v1, 1  ;;  %v5559_v1 = vld [vmem:[#allocation10 + $0x1b8] sm:$0xff]  }
 0x1f3   : > { %v6335_v9 = vsel %vm1203_vm8, %v1246_v3, %v1250_v4  ;;  %v983_v10 = vmax.f32 %v811_v5, 0.0  ;;  %v814_v11 = vadd.f32 %v6281_v62, %v813_v0  ;;  %v4914_v12 = vpop.f32.mrb[31].mxu0  ;;  %4713 = vmatprep.subr.bf16.mxu0 %v5550_v63  ;;  %5011 = vmatprep.mubr.bf16.mxu0 %v1680_v13  ;;  %v1257_v18 = vrot.slane %v1255_v7, 1 }
 0x1f4   : > { %1441 = vst [vmem:[#allocation2 + $0x50] sm:$0xff] %v6335_v9  ;;  %v1559_v15 = vld [vmem:[#allocation2 + $0x48] sm:$0x1]  ;;  %1968 = vmatprep.mubr.bf16.mxu1 %v6335_v9 }
 0x1f5   : > { %v1560_v16 = vsel %vm6288_vm3, 0, %v1559_v15  ;;  %v4385_v19 = vpack.c.bf16 %v983_v10, %v983_v10  ;;  %v984_v20 = vmax.f32 %v814_v11, 0.0  ;;  %v1258_v33 = vor.u32 %v1257_v18, %v1253_v21 }
 0x1f6   : > { %1561 = vst [vmem:[#allocation2 + $0x48] sm:$0x1] %v1560_v16  ;;  %4714 = vmatpush3.bf16.msra.mxu0 %v5551_v8 }
 0x1f7   : > { %v1616_v23 = vld [vmem:[#allocation2 + $0x58] sm:$0x80]  ;;  %v1260_v25 = vshll.u32 %v4385_v19, 16  ;;  %v1470_v26 = vrot.slane %v4385_v19, 1  ;;  %v1030_v27 = vpack.c.bf16 %v984_v20, %v983_v10  ;;  %4715 = vmatprep.subr.bf16.mxu0 %v5552_v14 }
 0x1f8   : > { %v1617_v30 = vsel %vm6298_vm7, 0, %v1616_v23  ;;  %v818_v31 = vpop.f32.mrb[32].mxu0  ;;  %v1562_v35 = vld [vmem:[#allocation2 + $0x60] sm:$0x1] }
 0x1f9   : > { %1618 = vst [vmem:[#allocation2 + $0x58] sm:$0x80] %v1617_v30  ;;  %v1262_v36 = vrot.slane %v1260_v25, 1  ;;  %v1471_v37 = vsel %vm1456_vm4, %v1469_v24, %v1470_v26  ;;  %v819_v38 = vadd.f32 %v6281_v62, %v818_v31  ;;  %v4917_v39 = vpop.f32.mrb[33].mxu0  ;;  %v1563_v40 = vsel %vm6288_vm3, 0, %v1562_v35 }
 0x1fa   : > { %1533 = vst [vmem:[#allocation2 + $0x70] sm:$0xff] %v1471_v37  ;;  %v821_v41 = vpop.f32.mrb[34].mxu0  ;;  %4716 = vmatpush3.bf16.msra.mxu0 %v5553_v22  ;;  %1564 = vst [vmem:[#allocation2 + $0x60] sm:$0x1] %v1563_v40  ;;  %v1092_v58 = vunpack.c.h.b16 %v1030_v27 }
 0x1fb   : > { %v6349_v43 = vsel %vm1203_vm8, %v1258_v33, %v1262_v36  ;;  %v822_v44 = vadd.f32 %v6281_v62, %v821_v41  ;;  %v4918_v45 = vpop.f32.mrb[35].mxu0  ;;  %4717 = vmatprep.subr.bf16.mxu0 %v5554_v29  ;;  %v985_v47 = vmax.f32 %v819_v38, 0.0 }
 0x1fc   : > { %1442 = vst [vmem:[#allocation2 + $0x68] sm:$0xff] %v6349_v43 }
 0x1fd   : > { %v986_v48 = vmax.f32 %v822_v44, 0.0  ;;  %v6353_v49 = vld [vmem:[#allocation2 + $0x48] sm:$0xff] }
 0x1fe   : > { %1969 = vmatmul.mubr.bf16.gmra.mrb[12].mxu1 %v6353_v49  ;;  %4718 = vmatpush3.bf16.msra.mxu0 %v5555_v42 }
 0x1ff   : > { %v1031_v51 = vpack.c.bf16 %v986_v48, %v985_v47  ;;  %1976 = vmatprep.mubr.bf16.mxu1 %v6349_v43  ;;  %4719 = vmatprep.subr.bf16.mxu0 %v5556_v46  ;;  %v4386_v53 = vpack.c.bf16 %v986_v48, %v986_v48 }
 0x200   : > { %v826_v54 = vpop.f32.mrb[36].mxu0  ;;  %v1683_v55 = vld [vmem:[#allocation2 + $0x58] sm:$0xff] }
 0x201   : > { %v1619_v57 = vld [vmem:[#allocation2 + $0x70] sm:$0x80]  ;;  %v1093_v59 = vunpack.c.l.b16 %v1031_v51  ;;  %v827_v60 = vadd.f32 %v6281_v62, %v826_v54  ;;  %v4921_v34 = vpop.f32.mrb[37].mxu0  ;;  %5012 = vmatmul.mubr.bf16.gmra.mrb[112].mxu0 %v1683_v55  ;;  %v1272_v5 = vshll.u32 %v4386_v53, 16  ;;  %v1473_v6 = vrot.slane %v4386_v53, 1  ;;  %v6361_v11 = vld [vmem:[#allocation2 + $0x60] sm:$0xff] }
 0x202   : > { %v1620_v61 = vsel %vm6298_vm7, 0, %v1619_v57  ;;  %v829_v63 = vpop.f32.mrb[38].mxu0  ;;  %4720 = vmatpush3.bf16.msra.mxu0 %v5557_v50  ;;  %v5560_v55 = vld [vmem:[#allocation10 + $0x100] sm:$0xff]  }
 0x203   : > { %1621 = vst [vmem:[#allocation2 + $0x70] sm:$0x80] %v1620_v61  ;;  %v1136_v2 = vpack.c.b16 %v1093_v59, %v1092_v58  ;;  %v830_v3 = vadd.f32 %v6281_v62, %v829_v63  ;;  %v4922_v4 = vpop.f32.mrb[39].mxu0  ;;  %4721 = vmatprep.subr.bf16.mxu0 %v5558_v52  ;;  %v987_v8 = vmax.f32 %v827_v60, 0.0  ;;  %v1274_v19 = vrot.slane %v1272_v5, 1  ;;  %4571 = vmatprep.subr.bf16.mxu1 %v5560_v55 }
 0x205   : > { %1172 = vst [vmem:[#allocation2 + $0x78] sm:$0xff] %v1136_v2  ;;  %v1267_v7 = vshll.u32 %v1136_v2, 16  ;;  %v1472_v0 = vrot.slane %v1136_v2, 1  ;;  %v988_v10 = vmax.f32 %v830_v3, 0.0  ;;  %v1265_v12 = vshrl.u32 %v1136_v2, 16 }
 0x206   : > { %1977 = vmatmul.mubr.bf16.gmra.mrb[16].mxu1 %v6361_v11  ;;  %4722 = vmatpush3.bf16.msra.mxu0 %v5559_v1 }
 0x207   : > { %v1269_v13 = vrot.slane %v1267_v7, 1  ;;  %v1474_v14 = vsel %vm1456_vm4, %v1472_v0, %v1473_v6  ;;  %v1032_v15 = vpack.c.bf16 %v988_v10, %v987_v8 }
 0x208   : > { %1534 = vst [vmem:[#allocation2 + $0x88] sm:$0xff] %v1474_v14  ;;  %v834_v16 = vpop.f32.mrb[40].mxu0 }
 0x209   : > { %v1270_v18 = vor.u32 %v1269_v13, %v1265_v12  ;;  %1173 = vst [vmem:[#allocation2 + $0x90] sm:$0xff] %v1032_v15  ;;  %v4925_v20 = vpop.f32.mrb[41].mxu0  ;;  %v1279_v21 = vshll.u32 %v1032_v15, 16  ;;  %v835_v22 = vadd.f32 %v6281_v62, %v834_v16  ;;  %v1277_v38 = vshrl.u32 %v1032_v15, 16 }
 0x20a   : > { %v837_v23 = vpop.f32.mrb[42].mxu0  ;;  %v1686_v24 = vld [vmem:[#allocation2 + $0x70] sm:$0xff]  ;;  %v1475_v39 = vrot.slane %v1032_v15, 1 }
 0x20b   : > { %v6367_v25 = vsel %vm1203_vm8, %v1270_v18, %v1274_v19  ;;  %v838_v26 = vadd.f32 %v6281_v62, %v837_v23  ;;  %v4926_v27 = vpop.f32.mrb[43].mxu0  ;;  %5015 = vmatprep.mubr.bf16.mxu0 %v1686_v24  ;;  %v989_v30 = vmax.f32 %v835_v22, 0.0  ;;  %v1281_v35 = vrot.slane %v1279_v21, 1 }
 0x20c   : > { %1443 = vst [vmem:[#allocation2 + $0x80] sm:$0xff] %v6367_v25  ;;  %v1565_v29 = vld [vmem:[#allocation2 + $0x78] sm:$0x1]  ;;  %1984 = vmatprep.mubr.bf16.mxu1 %v6367_v25 }
 0x20d   : > { %v1566_v31 = vsel %vm6288_vm3, 0, %v1565_v29  ;;  %v990_v33 = vmax.f32 %v838_v26, 0.0  ;;  %v4387_v36 = vpack.c.bf16 %v989_v30, %v989_v30  ;;  %v1282_v51 = vor.u32 %v1281_v35, %v1277_v38 }
 0x20e   : > { %1567 = vst [vmem:[#allocation2 + $0x78] sm:$0x1] %v1566_v31 }
 0x20f   : > { %v1622_v37 = vld [vmem:[#allocation2 + $0x88] sm:$0x80]  ;;  %v1033_v40 = vpack.c.bf16 %v990_v33, %v989_v30  ;;  %v1284_v44 = vshll.u32 %v4387_v36, 16  ;;  %v1476_v45 = vrot.slane %v4387_v36, 1 }
 0x210   : > { %v1623_v41 = vsel %vm6298_vm7, 0, %v1622_v37  ;;  %v1568_v42 = vld [vmem:[#allocation2 + $0x90] sm:$0x1]  ;;  %v842_v46 = vpop.f32.mrb[44].mxu0 }
 0x211   : > { %1624 = vst [vmem:[#allocation2 + $0x88] sm:$0x80] %v1623_v41  ;;  %v1569_v47 = vsel %vm6288_vm3, 0, %v1568_v42  ;;  %v843_v48 = vadd.f32 %v6281_v62, %v842_v46  ;;  %v4929_v50 = vpop.f32.mrb[45].mxu0  ;;  %v1286_v52 = vrot.slane %v1284_v44, 1  ;;  %v1477_v53 = vsel %vm1456_vm4, %v1475_v39, %v1476_v45 }
 0x212   : > { %1570 = vst [vmem:[#allocation2 + $0x90] sm:$0x1] %v1569_v47  ;;  %v845_v54 = vpop.f32.mrb[46].mxu0  ;;  %1535 = vst [vmem:[#allocation2 + $0xa0] sm:$0xff] %v1477_v53  ;;  %v1098_v3 = vunpack.c.h.b16 %v1033_v40 }
 0x213   : > { %v846_v57 = vadd.f32 %v6281_v62, %v845_v54  ;;  %v4930_v58 = vpop.f32.mrb[47].mxu0  ;;  %v6382_v59 = vsel %vm1203_vm8, %v1282_v51, %v1286_v52  ;;  %v991_v60 = vmax.f32 %v843_v48, 0.0 }
 0x214   : > { %1444 = vst [vmem:[#allocation2 + $0x98] sm:$0xff] %v6382_v59 }
 0x215   : > { %v992_v34 = vmax.f32 %v846_v57, 0.0  ;;  %v6385_v61 = vld [vmem:[#allocation2 + $0x78] sm:$0xff] }
 0x216   : > { %1985 = vmatmul.mubr.bf16.gmra.mrb[20].mxu1 %v6385_v61 }
 0x217   : > { %v1034_v63 = vpack.c.bf16 %v992_v34, %v991_v60  ;;  %1992 = vmatprep.mubr.bf16.mxu1 %v6382_v59  ;;  %v4388_v5 = vpack.c.bf16 %v992_v34, %v992_v34 }
 0x218   : > { %v850_v1 = vpop.f32.mrb[48].mxu0  ;;  %v1689_v2 = vld [vmem:[#allocation2 + $0x88] sm:$0xff] }
 0x219   : > { %v1099_v4 = vunpack.c.l.b16 %v1034_v63  ;;  %v4933_v6 = vpop.f32.mrb[49].mxu0  ;;  %5016 = vmatmul.mubr.bf16.gmra.mrb[116].mxu0 %v1689_v2  ;;  %v1625_v7 = vld [vmem:[#allocation2 + $0xa0] sm:$0x80]  ;;  %v851_v0 = vadd.f32 %v6281_v62, %v850_v1  ;;  %v1296_v16 = vshll.u32 %v4388_v5, 16  ;;  %v1479_v19 = vrot.slane %v4388_v5, 1  ;;  %v6393_v20 = vld [vmem:[#allocation2 + $0x90] sm:$0xff] }
 0x21a   : > { %v853_v8 = vpop.f32.mrb[50].mxu0  ;;  %v1626_v10 = vsel %vm6298_vm7, 0, %v1625_v7 }
 0x21b   : > { %v1138_v12 = vpack.c.b16 %v1099_v4, %v1098_v3  ;;  %v4934_v13 = vpop.f32.mrb[51].mxu0  ;;  %1627 = vst [vmem:[#allocation2 + $0xa0] sm:$0x80] %v1626_v10  ;;  %v854_v14 = vadd.f32 %v6281_v62, %v853_v8  ;;  %v993_v21 = vmax.f32 %v851_v0, 0.0  ;;  %v1298_v31 = vrot.slane %v1296_v16, 1 }
 0x21d   : > { %1174 = vst [vmem:[#allocation2 + $0xa8] sm:$0xff] %v1138_v12  ;;  %v1291_v15 = vshll.u32 %v1138_v12, 16  ;;  %v1478_v18 = vrot.slane %v1138_v12, 1  ;;  %v994_v22 = vmax.f32 %v854_v14, 0.0  ;;  %v1289_v23 = vshrl.u32 %v1138_v12, 16 }
 0x21e   : > { %1993 = vmatmul.mubr.bf16.gmra.mrb[24].mxu1 %v6393_v20 }
 0x21f   : > { %v1293_v24 = vrot.slane %v1291_v15, 1  ;;  %v1480_v26 = vsel %vm1456_vm4, %v1478_v18, %v1479_v19  ;;  %v1035_v27 = vpack.c.bf16 %v994_v22, %v993_v21 }
 0x220   : > { %1536 = vst [vmem:[#allocation2 + $0xb8] sm:$0xff] %v1480_v26  ;;  %v858_v29 = vpop.f32.mrb[52].mxu0 }
 0x221   : > { %v1294_v30 = vor.u32 %v1293_v24, %v1289_v23  ;;  %v859_v33 = vadd.f32 %v6281_v62, %v858_v29  ;;  %v4937_v35 = vpop.f32.mrb[53].mxu0  ;;  %1175 = vst [vmem:[#allocation2 + $0xc0] sm:$0xff] %v1035_v27  ;;  %v1303_v36 = vshll.u32 %v1035_v27, 16  ;;  %v1301_v50 = vshrl.u32 %v1035_v27, 16 }
 0x222   : > { %v861_v37 = vpop.f32.mrb[54].mxu0  ;;  %v1692_v42 = vld [vmem:[#allocation2 + $0xa0] sm:$0xff]  ;;  %v1481_v52 = vrot.slane %v1035_v27, 1 }
 0x223   : > { %v6399_v38 = vsel %vm1203_vm8, %v1294_v30, %v1298_v31  ;;  %v995_v39 = vmax.f32 %v859_v33, 0.0  ;;  %v862_v40 = vadd.f32 %v6281_v62, %v861_v37  ;;  %v4938_v41 = vpop.f32.mrb[55].mxu0  ;;  %5019 = vmatprep.mubr.bf16.mxu0 %v1692_v42  ;;  %v1305_v46 = vrot.slane %v1303_v36, 1  ;;  %v4451_v31 = vpop.f32.mrb[0].mxu1 }
 0x224   : > { %1445 = vst [vmem:[#allocation2 + $0xb0] sm:$0xff] %v6399_v38  ;;  %v1571_v44 = vld [vmem:[#allocation2 + $0xa8] sm:$0x1]  ;;  %2000 = vmatprep.mubr.bf16.mxu1 %v6399_v38  ;;  %v4452_v36 = vpop.f32.mrb[1].mxu1 }
 0x225   : > { %v1572_v45 = vsel %vm6288_vm3, 0, %v1571_v44  ;;  %v4389_v47 = vpack.c.bf16 %v995_v39, %v995_v39  ;;  %v996_v48 = vmax.f32 %v862_v40, 0.0  ;;  %v1306_v60 = vor.u32 %v1305_v46, %v1301_v50 }
 0x226   : > { %1573 = vst [vmem:[#allocation2 + $0xa8] sm:$0x1] %v1572_v45  ;;  %v6429_v44 = vadd.f32 %v4452_v36, %v4451_v31 }
 0x227   : > { %v1628_v51 = vld [vmem:[#allocation2 + $0xb8] sm:$0x80]  ;;  %v1308_v53 = vshll.u32 %v4389_v47, 16  ;;  %v1482_v54 = vrot.slane %v4389_v47, 1  ;;  %v1036_v55 = vpack.c.bf16 %v996_v48, %v995_v39  ;;  %v4454_v48 = vpop.f32.mrb[2].mxu1 }
 0x228   : > { %v1629_v57 = vsel %vm6298_vm7, 0, %v1628_v51  ;;  %v866_v58 = vpop.f32.mrb[56].mxu0  ;;  %v1574_v34 = vld [vmem:[#allocation2 + $0xc0] sm:$0x1]  ;;  %v4455_v51 = vpop.f32.mrb[3].mxu1 }
 0x229   : > { %1630 = vst [vmem:[#allocation2 + $0xb8] sm:$0x80] %v1629_v57  ;;  %v1310_v63 = vrot.slane %v1308_v53, 1  ;;  %v1483_v1 = vsel %vm1456_vm4, %v1481_v52, %v1482_v54  ;;  %v867_v2 = vadd.f32 %v6281_v62, %v866_v58  ;;  %v4941_v3 = vpop.f32.mrb[57].mxu0  ;;  %v1575_v4 = vsel %vm6288_vm3, 0, %v1574_v34 }
 0x22a   : > { %1537 = vst [vmem:[#allocation2 + $0xd0] sm:$0xff] %v1483_v1  ;;  %v869_v5 = vpop.f32.mrb[58].mxu0  ;;  %1576 = vst [vmem:[#allocation2 + $0xc0] sm:$0x1] %v1575_v4  ;;  %v1104_v19 = vunpack.c.h.b16 %v1036_v55 }
 0x22b   : > { %v6413_v6 = vsel %vm1203_vm8, %v1306_v60, %v1310_v63  ;;  %v870_v7 = vadd.f32 %v6281_v62, %v869_v5  ;;  %v4942_v0 = vpop.f32.mrb[59].mxu0  ;;  %v997_v8 = vmax.f32 %v867_v2, 0.0  ;;  %v6435_v60 = vadd.f32 %v4455_v51, %v4454_v48 }
 0x22c   : > { %1446 = vst [vmem:[#allocation2 + $0xc8] sm:$0xff] %v6413_v6 }
 0x22d   : > { %v998_v10 = vmax.f32 %v870_v7, 0.0  ;;  %v6417_v12 = vld [vmem:[#allocation2 + $0xa8] sm:$0xff] }
 0x22e   : > { %2001 = vmatmul.mubr.bf16.gmra.mrb[28].mxu1 %v6417_v12 }
 0x22f   : > { %v1037_v13 = vpack.c.bf16 %v998_v10, %v997_v8  ;;  %2008 = vmatprep.mubr.bf16.mxu1 %v6413_v6  ;;  %v4390_v14 = vpack.c.bf16 %v998_v10, %v998_v10 }
 0x230   : > { %v874_v15 = vpop.f32.mrb[60].mxu0  ;;  %v1695_v16 = vld [vmem:[#allocation2 + $0xb8] sm:$0xff] }
 0x231   : > { %v1631_v18 = vld [vmem:[#allocation2 + $0xd0] sm:$0x80]  ;;  %v1105_v21 = vunpack.c.l.b16 %v1037_v13  ;;  %v875_v22 = vadd.f32 %v6281_v62, %v874_v15  ;;  %v4945_v23 = vpop.f32.mrb[61].mxu0  ;;  %5020 = vmatmul.mubr.bf16.gmra.mrb[120].mxu0 %v1695_v16  ;;  %v1320_v33 = vshll.u32 %v4390_v14, 16  ;;  %v1485_v35 = vrot.slane %v4390_v14, 1  ;;  %v6426_v42 = vld [vmem:[#allocation2 + $0xc0] sm:$0xff] }
 0x232   : > { %v1632_v24 = vsel %vm6298_vm7, 0, %v1631_v18  ;;  %v877_v26 = vpop.f32.mrb[62].mxu0  ;;  %3232 = vmatprep.mubr.bf16.mxu0 %v6321_v28 }
 0x233   : > { %1633 = vst [vmem:[#allocation2 + $0xd0] sm:$0x80] %v1632_v24  ;;  %v1140_v27 = vpack.c.b16 %v1105_v21, %v1104_v19  ;;  %v878_v29 = vadd.f32 %v6281_v62, %v877_v26  ;;  %v4946_v30 = vpop.f32.mrb[63].mxu0  ;;  %v999_v40 = vmax.f32 %v875_v22, 0.0  ;;  %v1322_v53 = vrot.slane %v1320_v33, 1 }
 0x235   : > { %1176 = vst [vmem:[#allocation2 + $0xd8] sm:$0xff] %v1140_v27  ;;  %v1315_v37 = vshll.u32 %v1140_v27, 16  ;;  %v1484_v39 = vrot.slane %v1140_v27, 1  ;;  %v1000_v41 = vmax.f32 %v878_v29, 0.0  ;;  %v1313_v28 = vshrl.u32 %v1140_v27, 16 }
 0x236   : > { %2009 = vmatmul.mubr.bf16.gmra.mrb[32].mxu1 %v6426_v42 }
 0x237   : > { %v1317_v45 = vrot.slane %v1315_v37, 1  ;;  %v1486_v46 = vsel %vm1456_vm4, %v1484_v39, %v1485_v35  ;;  %v1038_v47 = vpack.c.bf16 %v1000_v41, %v999_v40 }
 0x238   : > { %1538 = vst [vmem:[#allocation2 + $0xe8] sm:$0xff] %v1486_v46  ;;  %v882_v50 = vpop.f32.mrb[64].mxu0 }
 0x239   : > { %v1318_v52 = vor.u32 %v1317_v45, %v1313_v28  ;;  %1177 = vst [vmem:[#allocation2 + $0xf0] sm:$0xff] %v1038_v47  ;;  %v4949_v54 = vpop.f32.mrb[65].mxu0  ;;  %3233 = vmatmul.mubr.bf16.vlgmr.msra.gmra.mrb[124].mxu0 %v6329_v56  ;;  %v1327_v55 = vshll.u32 %v1038_v47, 16  ;;  %v883_v57 = vadd.f32 %v6281_v62, %v882_v50  ;;  %v1325_v0 = vshrl.u32 %v1038_v47, 16 }
 0x23a   : > { %v885_v58 = vpop.f32.mrb[66].mxu0  ;;  %3240 = vmatprep.mubr.bf16.mxu0 %v6335_v9  ;;  %v1487_v8 = vrot.slane %v1038_v47, 1 }
 0x23b   : > { %v6438_v34 = vsel %vm1203_vm8, %v1318_v52, %v1322_v53  ;;  %v886_v63 = vadd.f32 %v6281_v62, %v885_v58  ;;  %v4950_v1 = vpop.f32.mrb[67].mxu0  ;;  %v1001_v3 = vmax.f32 %v883_v57, 0.0  ;;  %v1329_v9 = vrot.slane %v1327_v55, 1 }
 0x23c   : > { %1447 = vst [vmem:[#allocation2 + $0xe0] sm:$0xff] %v6438_v34  ;;  %v1577_v2 = vld [vmem:[#allocation2 + $0xd8] sm:$0x1]  ;;  %2016 = vmatprep.mubr.bf16.mxu1 %v6438_v34 }
 0x23d   : > { %v1578_v56 = vsel %vm6288_vm3, 0, %v1577_v2  ;;  %v1002_v4 = vmax.f32 %v886_v63, 0.0  ;;  %v4391_v5 = vpack.c.bf16 %v1001_v3, %v1001_v3  ;;  %v1330_v23 = vor.u32 %v1329_v9, %v1325_v0 }
 0x23e   : > { %1579 = vst [vmem:[#allocation2 + $0xd8] sm:$0x1] %v1578_v56 }
 0x23f   : > { %v1634_v7 = vld [vmem:[#allocation2 + $0xe8] sm:$0x80]  ;;  %v1039_v10 = vpack.c.bf16 %v1002_v4, %v1001_v3  ;;  %v1332_v15 = vshll.u32 %v4391_v5, 16  ;;  %v1488_v16 = vrot.slane %v4391_v5, 1  ;;  %v6475_v4 = vld [vmem:[%s7166_s3] ss:$0 sm:$0xff] }
 0x240   : > { %v1635_v13 = vsel %vm6298_vm7, 0, %v1634_v7  ;;  %v1580_v14 = vld [vmem:[#allocation2 + $0xf0] sm:$0x1]  ;;  %v890_v18 = vpop.f32.mrb[68].mxu0 }
 0x241   : > { %1636 = vst [vmem:[#allocation2 + $0xe8] sm:$0x80] %v1635_v13  ;;  %v1581_v19 = vsel %vm6288_vm3, 0, %v1580_v14  ;;  %v891_v21 = vadd.f32 %v6281_v62, %v890_v18  ;;  %v4953_v22 = vpop.f32.mrb[69].mxu0  ;;  %3241 = vmatmul.mubr.bf16.gmra.mrb[128].mxu0 %v6353_v49  ;;  %v1334_v24 = vrot.slane %v1332_v15, 1  ;;  %v1489_v26 = vsel %vm1456_vm4, %v1487_v8, %v1488_v16 }
 0x242   : > { %1582 = vst [vmem:[#allocation2 + $0xf0] sm:$0x1] %v1581_v19  ;;  %v893_v27 = vpop.f32.mrb[70].mxu0  ;;  %3248 = vmatprep.mubr.bf16.mxu0 %v6349_v43  ;;  %1539 = vst [vmem:[#allocation2 + $0x100] sm:$0xff] %v1489_v26  ;;  %v1110_v43 = vunpack.c.h.b16 %v1039_v10 }
 0x243   : > { %v894_v29 = vadd.f32 %v6281_v62, %v893_v27  ;;  %v4954_v30 = vpop.f32.mrb[71].mxu0  ;;  %v6455_v31 = vsel %vm1203_vm8, %v1330_v23, %v1334_v24  ;;  %v1003_v33 = vmax.f32 %v891_v21, 0.0 }
 0x244   : > { %1448 = vst [vmem:[#allocation2 + $0xf8] sm:$0xff] %v6455_v31 }
 0x245   : > { %v1004_v35 = vmax.f32 %v894_v29, 0.0  ;;  %v6458_v49 = vld [vmem:[#allocation2 + $0xd8] sm:$0xff] }
 0x246   : > { %2017 = vmatmul.mubr.bf16.gmra.mrb[36].mxu1 %v6458_v49 }
 0x247   : > { %v1040_v36 = vpack.c.bf16 %v1004_v35, %v1003_v33  ;;  %2024 = vmatprep.mubr.bf16.mxu1 %v6455_v31  ;;  %v4392_v40 = vpack.c.bf16 %v1004_v35, %v1004_v35 }
 0x248   : > { %v898_v37 = vpop.f32.mrb[72].mxu0 }
 0x249   : > { %v1111_v39 = vunpack.c.l.b16 %v1040_v36  ;;  %v4957_v41 = vpop.f32.mrb[73].mxu0  ;;  %3249 = vmatmul.mubr.bf16.gmra.mrb[132].mxu0 %v6361_v11  ;;  %v1637_v28 = vld [vmem:[#allocation2 + $0x100] sm:$0x80]  ;;  %v899_v45 = vadd.f32 %v6281_v62, %v898_v37  ;;  %v1344_v53 = vshll.u32 %v4392_v40, 16  ;;  %v1491_v55 = vrot.slane %v4392_v40, 1  ;;  %v6468_v11 = vld [vmem:[#allocation2 + $0xf0] sm:$0xff] }
 0x24a   : > { %v901_v46 = vpop.f32.mrb[74].mxu0  ;;  %3256 = vmatprep.mubr.bf16.mxu0 %v6367_v25  ;;  %v1638_v47 = vsel %vm6298_vm7, 0, %v1637_v28 }
 0x24b   : > { %v1142_v48 = vpack.c.b16 %v1111_v39, %v1110_v43  ;;  %v4958_v50 = vpop.f32.mrb[75].mxu0  ;;  %1639 = vst [vmem:[#allocation2 + $0x100] sm:$0x80] %v1638_v47  ;;  %v902_v51 = vadd.f32 %v6281_v62, %v901_v46  ;;  %v1005_v57 = vmax.f32 %v899_v45, 0.0  ;;  %v1346_v62 = vrot.slane %v1344_v53, 1 }
 0x24d   : > { %1178 = vst [vmem:[#allocation2 + $0x108] sm:$0xff] %v1142_v48  ;;  %v1339_v52 = vshll.u32 %v1142_v48, 16  ;;  %v1490_v54 = vrot.slane %v1142_v48, 1  ;;  %v1006_v58 = vmax.f32 %v902_v51, 0.0  ;;  %v1337_v25 = vshrl.u32 %v1142_v48, 16 }
 0x24e   : > { %2025 = vmatmul.mubr.bf16.gmra.mrb[40].mxu1 %v6468_v11 }
 0x24f   : > { %v1341_v63 = vrot.slane %v1339_v52, 1  ;;  %v1492_v1 = vsel %vm1456_vm4, %v1490_v54, %v1491_v55  ;;  %v1041_v2 = vpack.c.bf16 %v1006_v58, %v1005_v57 }
 0x250   : > { %1540 = vst [vmem:[#allocation2 + $0x118] sm:$0xff] %v1492_v1  ;;  %v906_v3 = vpop.f32.mrb[76].mxu0 }
 0x251   : > { %v1342_v56 = vor.u32 %v1341_v63, %v1337_v25  ;;  %v907_v9 = vadd.f32 %v6475_v4, %v906_v3  ;;  %v4961_v5 = vpop.f32.mrb[77].mxu0  ;;  %3257 = vmatmul.mubr.bf16.gmra.mrb[136].mxu0 %v6385_v61  ;;  %1179 = vst [vmem:[#allocation2 + $0x120] sm:$0xff] %v1041_v2  ;;  %v1351_v7 = vshll.u32 %v1041_v2, 16  ;;  %v1493_v22 = vrot.slane %v1041_v2, 1 }
 0x252   : > { %v909_v0 = vpop.f32.mrb[78].mxu0  ;;  %3264 = vmatprep.mubr.bf16.mxu0 %v6382_v59  ;;  %v1349_v59 = vshrl.u32 %v1041_v2, 16 }
 0x253   : > { %v6481_v8 = vsel %vm1203_vm8, %v1342_v56, %v1346_v62  ;;  %v1007_v10 = vmax.f32 %v907_v9, 0.0  ;;  %v910_v13 = vadd.f32 %v6475_v4, %v909_v0  ;;  %v4962_v14 = vpop.f32.mrb[79].mxu0  ;;  %v1353_v16 = vrot.slane %v1351_v7, 1 }
 0x254   : > { %1449 = vst [vmem:[#allocation2 + $0x110] sm:$0xff] %v6481_v8  ;;  %v1583_v15 = vld [vmem:[#allocation2 + $0x108] sm:$0x1]  ;;  %2032 = vmatprep.mubr.bf16.mxu1 %v6481_v8 }
 0x255   : > { %v1584_v61 = vsel %vm6288_vm3, 0, %v1583_v15  ;;  %v4393_v18 = vpack.c.bf16 %v1007_v10, %v1007_v10  ;;  %v1008_v19 = vmax.f32 %v910_v13, 0.0  ;;  %v1354_v30 = vor.u32 %v1353_v16, %v1349_v59 }
 0x256   : > { %1585 = vst [vmem:[#allocation2 + $0x108] sm:$0x1] %v1584_v61 }
 0x257   : > { %v1640_v21 = vld [vmem:[#allocation2 + $0x118] sm:$0x80]  ;;  %v1356_v23 = vshll.u32 %v4393_v18, 16  ;;  %v1494_v24 = vrot.slane %v4393_v18, 1  ;;  %v1042_v26 = vpack.c.bf16 %v1008_v19, %v1007_v10 }
 0x258   : > { %v1641_v27 = vsel %vm6298_vm7, 0, %v1640_v21  ;;  %v914_v29 = vpop.f32.mrb[80].mxu0  ;;  %v1586_v33 = vld [vmem:[#allocation2 + $0x120] sm:$0x1] }
 0x259   : > { %1642 = vst [vmem:[#allocation2 + $0x118] sm:$0x80] %v1641_v27  ;;  %v1358_v35 = vrot.slane %v1356_v23, 1  ;;  %v1495_v36 = vsel %vm1456_vm4, %v1493_v22, %v1494_v24  ;;  %v915_v37 = vadd.f32 %v6475_v4, %v914_v29  ;;  %v4965_v43 = vpop.f32.mrb[81].mxu0  ;;  %3265 = vmatmul.mubr.bf16.gmra.mrb[140].mxu0 %v6393_v20  ;;  %v1587_v39 = vsel %vm6288_vm3, 0, %v1586_v33 }
 0x25a   : > { %1541 = vst [vmem:[#allocation2 + $0x130] sm:$0xff] %v1495_v36  ;;  %v917_v40 = vpop.f32.mrb[82].mxu0  ;;  %3272 = vmatprep.mubr.bf16.mxu0 %v6399_v38  ;;  %1588 = vst [vmem:[#allocation2 + $0x120] sm:$0x1] %v1587_v39  ;;  %v1116_v38 = vunpack.c.h.b16 %v1042_v26 }
 0x25b   : > { %v6497_v41 = vsel %vm1203_vm8, %v1354_v30, %v1358_v35  ;;  %v918_v28 = vadd.f32 %v6475_v4, %v917_v40  ;;  %v4966_v45 = vpop.f32.mrb[83].mxu0  ;;  %v1009_v46 = vmax.f32 %v915_v37, 0.0 }
 0x25d   : > { %v1010_v47 = vmax.f32 %v918_v28, 0.0  ;;  %v6500_v48 = vld [vmem:[#allocation2 + $0x108] sm:$0xff] }
 0x25e   : > { %2033 = vmatmul.mubr.bf16.gmra.mrb[44].mxu1 %v6500_v48 }
 0x25f   : > { %v1043_v20 = vpack.c.bf16 %v1010_v47, %v1009_v46  ;;  %2040 = vmatprep.mubr.bf16.mxu1 %v6497_v41  ;;  %v4394_v50 = vpack.c.bf16 %v1010_v47, %v1010_v47 }
 0x260   : > { %v922_v51 = vpop.f32.mrb[84].mxu0 }
 0x261   : > { %v1643_v52 = vld [vmem:[#allocation2 + $0x130] sm:$0x80]  ;;  %v1117_v53 = vunpack.c.l.b16 %v1043_v20  ;;  %v923_v54 = vadd.f32 %v6475_v4, %v922_v51  ;;  %v4969_v55 = vpop.f32.mrb[85].mxu0  ;;  %3273 = vmatmul.mubr.bf16.gmra.mrb[144].mxu0 %v6417_v12  ;;  %v1368_v2 = vshll.u32 %v4394_v50, 16  ;;  %v1497_v3 = vrot.slane %v4394_v50, 1  ;;  %v6510_v7 = vld [vmem:[#allocation2 + $0x120] sm:$0xff] }
 0x262   : > { %v1644_v57 = vsel %vm6298_vm7, 0, %v1643_v52  ;;  %v925_v58 = vpop.f32.mrb[86].mxu0  ;;  %3280 = vmatprep.mubr.bf16.mxu0 %v6413_v6 }
 0x263   : > { %1645 = vst [vmem:[#allocation2 + $0x130] sm:$0x80] %v1644_v57  ;;  %v1144_v25 = vpack.c.b16 %v1117_v53, %v1116_v38  ;;  %v926_v63 = vadd.f32 %v6475_v4, %v925_v58  ;;  %v4970_v1 = vpop.f32.mrb[87].mxu0  ;;  %v1011_v9 = vmax.f32 %v923_v54, 0.0  ;;  %v1370_v15 = vrot.slane %v1368_v2, 1 }
 0x265   : > { %1180 = vst [vmem:[#allocation2 + $0x138] sm:$0xff] %v1144_v25  ;;  %v1363_v56 = vshll.u32 %v1144_v25, 16  ;;  %v1496_v62 = vrot.slane %v1144_v25, 1  ;;  %v1012_v5 = vmax.f32 %v926_v63, 0.0  ;;  %v1361_v12 = vshrl.u32 %v1144_v25, 16 }
 0x266   : > { %2041 = vmatmul.mubr.bf16.gmra.mrb[48].mxu1 %v6510_v7 }
 0x267   : > { %v1365_v0 = vrot.slane %v1363_v56, 1  ;;  %v1498_v6 = vsel %vm1456_vm4, %v1496_v62, %v1497_v3  ;;  %v1044_v10 = vpack.c.bf16 %v1012_v5, %v1011_v9 }
 0x268   : > { %1542 = vst [vmem:[#allocation2 + $0x148] sm:$0xff] %v1498_v6  ;;  %v930_v13 = vpop.f32.mrb[88].mxu0 }
 0x269   : > { %v1366_v14 = vor.u32 %v1365_v0, %v1361_v12  ;;  %1181 = vst [vmem:[#allocation2 + $0x150] sm:$0xff] %v1044_v10  ;;  %v4973_v61 = vpop.f32.mrb[89].mxu0  ;;  %3281 = vmatmul.mubr.bf16.gmra.mrb[148].mxu0 %v6426_v42  ;;  %v1375_v16 = vshll.u32 %v1044_v10, 16  ;;  %v931_v18 = vadd.f32 %v6475_v4, %v930_v13  ;;  %v1373_v33 = vshrl.u32 %v1044_v10, 16 }
 0x26a   : > { %v933_v19 = vpop.f32.mrb[90].mxu0  ;;  %3288 = vmatprep.mubr.bf16.mxu0 %v6438_v34  ;;  %v1499_v34 = vrot.slane %v1044_v10, 1 }
 0x26b   : > { %v6518_v59 = vsel %vm1203_vm8, %v1366_v14, %v1370_v15  ;;  %v934_v21 = vadd.f32 %v6475_v4, %v933_v19  ;;  %v4974_v22 = vpop.f32.mrb[91].mxu0  ;;  %v1013_v24 = vmax.f32 %v931_v18, 0.0  ;;  %v1377_v27 = vrot.slane %v1375_v16, 1 }
 0x26c   : > { %v1589_v23 = vld [vmem:[#allocation2 + $0x138] sm:$0x1]  ;;  %2048 = vmatprep.mubr.bf16.mxu1 %v6518_v59 }
 0x26d   : > { %v1590_v26 = vsel %vm6288_vm3, 0, %v1589_v23  ;;  %v1014_v42 = vmax.f32 %v934_v21, 0.0  ;;  %v4395_v29 = vpack.c.bf16 %v1013_v24, %v1013_v24  ;;  %v1378_v47 = vor.u32 %v1377_v27, %v1373_v33 }
 0x26e   : > { %1591 = vst [vmem:[#allocation2 + $0x138] sm:$0x1] %v1590_v26 }
 0x26f   : > { %v1646_v30 = vld [vmem:[#allocation2 + $0x148] sm:$0x80]  ;;  %v1045_v35 = vpack.c.bf16 %v1014_v42, %v1013_v24  ;;  %v1380_v43 = vshll.u32 %v4395_v29, 16  ;;  %v1500_v39 = vrot.slane %v4395_v29, 1 }
 0x270   : > { %v1647_v36 = vsel %vm6298_vm7, 0, %v1646_v30  ;;  %v1592_v37 = vld [vmem:[#allocation2 + $0x150] sm:$0x1]  ;;  %v938_v40 = vpop.f32.mrb[92].mxu0 }
 0x271   : > { %1648 = vst [vmem:[#allocation2 + $0x148] sm:$0x80] %v1647_v36  ;;  %v1593_v28 = vsel %vm6288_vm3, 0, %v1592_v37  ;;  %v939_v45 = vadd.f32 %v6475_v4, %v938_v40  ;;  %v4977_v46 = vpop.f32.mrb[93].mxu0  ;;  %3289 = vmatmul.mubr.bf16.gmra.mrb[152].mxu0 %v6458_v49  ;;  %v1382_v20 = vrot.slane %v1380_v43, 1  ;;  %v1501_v50 = vsel %vm1456_vm4, %v1499_v34, %v1500_v39 }
 0x272   : > { %1594 = vst [vmem:[#allocation2 + $0x150] sm:$0x1] %v1593_v28  ;;  %v941_v51 = vpop.f32.mrb[94].mxu0  ;;  %3296 = vmatprep.mubr.bf16.mxu0 %v6455_v31  ;;  %1543 = vst [vmem:[#allocation2 + $0x160] sm:$0xff] %v1501_v50  ;;  %v1122_v63 = vunpack.c.h.b16 %v1045_v35 }
 0x273   : > { %v942_v52 = vadd.f32 %v6475_v4, %v941_v51  ;;  %v4978_v38 = vpop.f32.mrb[95].mxu0  ;;  %v6534_v53 = vsel %vm1203_vm8, %v1378_v47, %v1382_v20  ;;  %v1015_v54 = vmax.f32 %v939_v45, 0.0 }
 0x275   : > { %v1016_v55 = vmax.f32 %v942_v52, 0.0  ;;  %v6536_v57 = vld [vmem:[#allocation2 + $0x138] sm:$0xff] }
 0x276   : > { %2049 = vmatmul.mubr.bf16.gmra.mrb[52].mxu1 %v6536_v57 }
 0x277   : > { %v1046_v58 = vpack.c.bf16 %v1016_v55, %v1015_v54  ;;  %2056 = vmatprep.mubr.bf16.mxu1 %v6534_v53  ;;  %v4396_v31 = vpack.c.bf16 %v1016_v55, %v1016_v55 }
 0x278   : > { %v946_v25 = vpop.f32.mrb[96].mxu0 }
 0x279   : > { %v1123_v1 = vunpack.c.l.b16 %v1046_v58  ;;  %3297 = vmatmul.mubr.bf16.gmra.mrb[156].mxu0 %v6468_v11  ;;  %v947_v2 = vadd.f32 %v6475_v4, %v946_v25  ;;  %v4981_v3 = vpop.f32.mrb[97].mxu0  ;;  %v1649_v56 = vld [vmem:[#allocation2 + $0x160] sm:$0x80]  ;;  %v1392_v13 = vshll.u32 %v4396_v31, 16  ;;  %v1503_v15 = vrot.slane %v4396_v31, 1  ;;  %v6546_v61 = vld [vmem:[#allocation2 + $0x150] sm:$0xff] }
 0x27a   : > { %3304 = vmatprep.mubr.bf16.mxu0 %v6481_v8  ;;  %v949_v62 = vpop.f32.mrb[98].mxu0  ;;  %v1650_v9 = vsel %vm6298_vm7, 0, %v1649_v56 }
 0x27b   : > { %v1146_v5 = vpack.c.b16 %v1123_v1, %v1122_v63  ;;  %v4982_v12 = vpop.f32.mrb[99].mxu0  ;;  %1651 = vst [vmem:[#allocation2 + $0x160] sm:$0x80] %v1650_v9  ;;  %v1017_v0 = vmax.f32 %v947_v2, 0.0  ;;  %v950_v6 = vadd.f32 %v6475_v4, %v949_v62  ;;  %v1394_v24 = vrot.slane %v1392_v13, 1 }
 0x27c   : > { %v6575_v12 = vld [vmem:[#allocation2 + $0xd0] sm:$0xff] }
 0x27d   : > { %1182 = vst [vmem:[#allocation2 + $0x168] sm:$0xff] %v1146_v5  ;;  %v1387_v10 = vshll.u32 %v1146_v5, 16  ;;  %v1502_v14 = vrot.slane %v1146_v5, 1  ;;  %v1018_v8 = vmax.f32 %v950_v6, 0.0  ;;  %v1385_v16 = vshrl.u32 %v1146_v5, 16 }
 0x27e   : > { %2057 = vmatmul.mubr.bf16.gmra.mrb[56].mxu1 %v6546_v61 }
 0x27f   : > { %v1389_v18 = vrot.slane %v1387_v10, 1  ;;  %v1504_v19 = vsel %vm1456_vm4, %v1502_v14, %v1503_v15  ;;  %v1047_v21 = vpack.c.bf16 %v1018_v8, %v1017_v0  ;;  %v5561_v15 = vld [vmem:[#allocation10 + $0xc0] sm:$0xff]  }
 0x280   : > { %1544 = vst [vmem:[#allocation2 + $0x178] sm:$0xff] %v1504_v19  ;;  %v954_v22 = vpop.f32.mrb[100].mxu0  ;;  %v6582_v19 = vld [vmem:[#allocation2 + $0xe8] sm:$0xff] }
 0x281   : > { %v1390_v23 = vor.u32 %v1389_v18, %v1385_v16  ;;  %3305 = vmatmul.mubr.bf16.gmra.mrb[160].mxu0 %v6500_v48  ;;  %v955_v26 = vadd.f32 %v6475_v4, %v954_v22  ;;  %v4985_v42 = vpop.f32.mrb[101].mxu0  ;;  %1183 = vst [vmem:[#allocation2 + $0x180] sm:$0xff] %v1047_v21  ;;  %v1399_v27 = vshll.u32 %v1047_v21, 16  ;;  %v1397_v33 = vshrl.u32 %v1047_v21, 16  ;;  %v5562_v18 = vld [vmem:[#allocation10 + $0x108] sm:$0xff]   ;;  %v6585_v22 = vld [vmem:[#allocation2 + $0x100] sm:$0xff] }
 0x282   : > { %3312 = vmatprep.mubr.bf16.mxu0 %v6497_v41  ;;  %v957_v29 = vpop.f32.mrb[102].mxu0  ;;  %v1505_v40 = vrot.slane %v1047_v21, 1  ;;  %v5565_v42 = vld [vmem:[#allocation10 + $0xd0] sm:$0xff]  }
 0x283   : > { %v6554_v30 = vsel %vm1203_vm8, %v1390_v23, %v1394_v24  ;;  %v1019_v34 = vmax.f32 %v955_v26, 0.0  ;;  %v958_v35 = vadd.f32 %v6475_v4, %v957_v29  ;;  %v4986_v36 = vpop.f32.mrb[103].mxu0  ;;  %v1401_v43 = vrot.slane %v1399_v27, 1  ;;  %v5563_v23 = vld [vmem:[#allocation10 + $0xc8] sm:$0xff]   ;;  %v5564_v26 = vld [vmem:[#allocation10 + $0x110] sm:$0xff]   ;;  %v5566_v27 = vld [vmem:[#allocation10 + $0x118] sm:$0xff]  }
 0x284   : > { %v1595_v37 = vld [vmem:[#allocation2 + $0x168] sm:$0x1]  ;;  %2064 = vmatprep.mubr.bf16.mxu1 %v6554_v30  ;;  %v5567_v36 = vld [vmem:[#allocation10 + $0xd8] sm:$0xff]  }
 0x285   : > { %v1596_v39 = vsel %vm6288_vm3, 0, %v1595_v37  ;;  %v4397_v28 = vpack.c.bf16 %v1019_v34, %v1019_v34  ;;  %v1020_v45 = vmax.f32 %v958_v35, 0.0  ;;  %v1402_v47 = vor.u32 %v1401_v43, %v1397_v33  ;;  %v6591_v33 = vld [vmem:[#allocation2 + $0x118] sm:$0xff]  ;;  %v6596_v35 = vld [vmem:[#allocation2 + $0x130] sm:$0xff]  ;;  %v6599_v43 = vld [vmem:[#allocation2 + $0x8] sm:$0xff] }
 0x286   : > { %1597 = vst [vmem:[#allocation2 + $0x168] sm:$0x1] %v1596_v39  ;;  %v5568_v39 = vld [vmem:[#allocation10 + $0x120] sm:$0xff]  }
 0x287   : > { %v1652_v46 = vld [vmem:[#allocation2 + $0x178] sm:$0x80]  ;;  %v1404_v20 = vshll.u32 %v4397_v28, 16  ;;  %v1506_v50 = vrot.slane %v4397_v28, 1  ;;  %v1048_v51 = vpack.c.bf16 %v1020_v45, %v1019_v34  ;;  %v5570_v28 = vld [vmem:[#allocation10 + $0x128] sm:$0xff]  }
 0x288   : > { %v1653_v52 = vsel %vm6298_vm7, 0, %v1652_v46  ;;  %v962_v38 = vpop.f32.mrb[104].mxu0  ;;  %v1598_v54 = vld [vmem:[#allocation2 + $0x180] sm:$0x1]  ;;  %v6607_v45 = vld [vmem:[#allocation2 + $0x148] sm:$0xff] }
 0x289   : > { %1654 = vst [vmem:[#allocation2 + $0x178] sm:$0x80] %v1653_v52  ;;  %3313 = vmatmul.mubr.bf16.gmra.mrb[164].mxu0 %v6510_v7  ;;  %v1406_v55 = vrot.slane %v1404_v20, 1  ;;  %v1507_v58 = vsel %vm1456_vm4, %v1505_v40, %v1506_v50  ;;  %v963_v25 = vadd.f32 %v6475_v4, %v962_v38  ;;  %v4989_v63 = vpop.f32.mrb[105].mxu0  ;;  %v1599_v1 = vsel %vm6288_vm3, 0, %v1598_v54  ;;  %v5569_v40 = vld [vmem:[#allocation10 + $0xe0] sm:$0xff]  }
 0x28a   : > { %3320 = vmatprep.mubr.bf16.mxu0 %v6518_v59  ;;  %1545 = vst [vmem:[#allocation2 + $0x190] sm:$0xff] %v1507_v58  ;;  %v965_v31 = vpop.f32.mrb[106].mxu0  ;;  %1600 = vst [vmem:[#allocation2 + $0x180] sm:$0x1] %v1599_v1  ;;  %v1128_v0 = vunpack.c.h.b16 %v1048_v51  ;;  %v6610_v46 = vld [vmem:[#allocation2 + $0x160] sm:$0xff]  ;;  %v5572_v20 = vld [vmem:[#allocation10 + $0x130] sm:$0xff]  }
 0x28b   : > { %v6569_v2 = vsel %vm1203_vm8, %v1402_v47, %v1406_v55  ;;  %v1021_v3 = vmax.f32 %v963_v25, 0.0  ;;  %v966_v56 = vadd.f32 %v6475_v4, %v965_v31  ;;  %v4990_v62 = vpop.f32.mrb[107].mxu0  ;;  %v5573_v50 = vld [vmem:[#allocation10 + $0xf0] sm:$0xff]   ;;  %v5574_v51 = vld [vmem:[#allocation10 + $0x138] sm:$0xff]   ;;  %v2300_v38 = vld [vmem:[#allocation2 + $0x20] sm:$0xff] }
 0x28c   : > { %v5575_v54 = vld [vmem:[#allocation10 + $0xf8] sm:$0xff]   ;;  %v5576_v55 = vld [vmem:[#allocation10 + $0x140] sm:$0xff]   ;;  %v5577_v58 = vld [vmem:[#allocation10 + $0x148] sm:$0xff]  }
 0x28d   : > { %v6572_v9 = vld [vmem:[#allocation2 + $0x168] sm:$0xff]  ;;  %v1022_v5 = vmax.f32 %v966_v56, 0.0  ;;  %v2299_v25 = vld [vmem:[#allocation2 + $0x18] sm:$0xff]  ;;  %v5578_v1 = vld [vmem:[#allocation10 + $0x150] sm:$0xff]  }
 0x28e   : > { %2065 = vmatmul.mubr.bf16.gmra.mrb[60].mxu1 %v6572_v9  ;;  %v2303_v63 = vld [vmem:[#allocation2 + $0x38] sm:$0xff] }
 0x28f   : > { %5023 = vmatprep.mubr.bf16.mxu1 %v6575_v12  ;;  %v1049_v6 = vpack.c.bf16 %v1022_v5, %v1021_v3  ;;  %v4398_v10 = vpack.c.bf16 %v1022_v5, %v1022_v5 }
 0x290   : > { %v6617_v52 = vld [vmem:[#allocation2 + $0x178] sm:$0xff] }
 0x291   : > { %3321 = vmatmul.mubr.bf16.gmra.mrb[168].mxu0 %v6536_v57  ;;  %v1655_v13 = vld [vmem:[#allocation2 + $0x190] sm:$0x80]  ;;  %v1129_v14 = vunpack.c.l.b16 %v1049_v6  ;;  %v1509_v16 = vrot.slane %v4398_v10, 1  ;;  %v6612_v47 = vld [vmem:[#allocation2 + $0x180] sm:$0xff]  ;;  %v5579_v6 = vld [vmem:[#allocation10 + $0x158] sm:$0xff]  }
 0x292   : > { %3328 = vmatprep.mubr.bf16.mxu0 %v6534_v53  ;;  %v1656_v4 = vsel %vm6298_vm7, 0, %v1655_v13 }
 0x293   : > { %1657 = vst [vmem:[#allocation2 + $0x190] sm:$0x80] %v1656_v4  ;;  %v1148_v8 = vpack.c.b16 %v1129_v14, %v1128_v0  ;;  %v2302_v4 = vld [vmem:[#allocation2 + $0x30] sm:$0xff] }
 0x295   : > { %1184 = vst [vmem:[#allocation2 + $0x198] sm:$0xff] %v1148_v8  ;;  %v1508_v21 = vrot.slane %v1148_v8, 1 }
 0x296   : > { %5024 = vmatmul.mubr.bf16.vlgmr.msra.gmra.mrb[64].mxu1 %v6582_v19 }
 0x297   : > { %4572 = vmatpush3.bf16.msra.mxu1 %v5561_v15  ;;  %5027 = vmatprep.mubr.bf16.mxu1 %v6585_v22  ;;  %v1510_v24 = vsel %vm1456_vm4, %v1508_v21, %v1509_v16  ;;  %v2306_v16 = vld [vmem:[#allocation2 + $0x50] sm:$0xff] }
 0x298   : > { %4573 = vmatprep.subr.bf16.mxu1 %v5562_v18  ;;  %1546 = vst [vmem:[#allocation2 + $0x1a8] sm:$0xff] %v1510_v24  ;;  %v5580_v24 = vld [vmem:[#allocation10 + $0x160] sm:$0xff]  }
 0x299   : > { %3329 = vmatmul.mubr.bf16.gmra.mrb[172].mxu0 %v6546_v61 }
 0x29a   : > { %3336 = vmatprep.mubr.bf16.mxu0 %v6554_v30 }
 0x29b   : > { %4574 = vmatpush3.bf16.msra.mxu1 %v5563_v23 }
 0x29c   : > { %4575 = vmatprep.subr.bf16.mxu1 %v5564_v26  ;;  %v1601_v29 = vld [vmem:[#allocation2 + $0x198] sm:$0x1] }
 0x29d   : > { %v1602_v34 = vsel %vm6288_vm3, 0, %v1601_v29 }
 0x29e   : > { %5028 = vmatmul.mubr.bf16.gmra.mrb[68].mxu1 %v6591_v33  ;;  %1603 = vst [vmem:[#allocation2 + $0x198] sm:$0x1] %v1602_v34  ;;  %v5581_v34 = vld [vmem:[#allocation10 + $0x168] sm:$0xff]  }
 0x29f   : > { %4576 = vmatpush3.bf16.msra.mxu1 %v5565_v42  ;;  %5031 = vmatprep.mubr.bf16.mxu1 %v6596_v35  ;;  %v1658_v37 = vld [vmem:[#allocation2 + $0x1a8] sm:$0x80]  ;;  %1669 = vst [vmem:[#allocation2 + $0x198] sm:$0xff] %v6599_v43 }
 0x2a0   : > { %4577 = vmatprep.subr.bf16.mxu1 %v5566_v27  ;;  %v1659_v17 = vsel %vm6298_vm7, 0, %v1658_v37  ;;  %v2305_v37 = vld [vmem:[#allocation2 + $0x48] sm:$0xff] }
 0x2a1   : > { %3337 = vmatmul.mubr.bf16.gmra.mrb[176].mxu0 %v6572_v9  ;;  %1660 = vst [vmem:[#allocation2 + $0x1a8] sm:$0x80] %v1659_v17  ;;  %v5582_v17 = vld [vmem:[#allocation10 + $0x170] sm:$0xff]  }
 0x2a2   : > { %1671 = vst [vmem:[#allocation2 + $0x1a8] sm:$0xff] %v6599_v43  ;;  %3344 = vmatprep.mubr.bf16.mxu0 %v6569_v2 }
 0x2a3   : > { %4578 = vmatpush3.bf16.msra.mxu1 %v5567_v36 }
 0x2a4   : > { %4579 = vmatprep.subr.bf16.mxu1 %v5568_v39  ;;  %v2309_v39 = vld [vmem:[#allocation2 + $0x68] sm:$0xff] }
 0x2a6   : > { %5032 = vmatmul.mubr.bf16.gmra.mrb[72].mxu1 %v6607_v45 }
 0x2a7   : > { %4580 = vmatpush3.bf16.msra.mxu1 %v5569_v40  ;;  %5035 = vmatprep.mubr.bf16.mxu1 %v6610_v46  ;;  %v2308_v40 = vld [vmem:[#allocation2 + $0x60] sm:$0xff] }
 0x2a8   : > { %4581 = vmatprep.subr.bf16.mxu1 %v5570_v28  ;;  %v2312_v28 = vld [vmem:[#allocation2 + $0x80] sm:$0xff] }
 0x2a9   : > { %3345 = vmatmul.mubr.bf16.gmra.mrb[180].mxu0 %v6612_v47 }
 0x2aa   : > { %3352 = vmatprep.mubr.bf16.mxu0 %v6599_v43 }
 0x2ab   : > { %4582 = vmatpush3.bf16.msra.mxu1 %v5571_v32  ;;  %v6631_v32 = vld [vmem:[#allocation10 + $0x200] sm:$0xff]  }
 0x2ac   : > { %4583 = vmatprep.subr.bf16.mxu1 %v5572_v20 }
 0x2ae   : > { %5036 = vmatmul.mubr.bf16.gmra.mrb[76].mxu1 %v6617_v52 }
 0x2af   : > { %4584 = vmatpush3.bf16.msra.mxu1 %v5573_v50  ;;  %2572 = vmatprep.mubr.bf16.mxu1 %v2300_v38 }
 0x2b0   : > { %4585 = vmatprep.subr.bf16.mxu1 %v5574_v51 }
 0x2b1   : > { %3353 = vmatmul.mubr.bf16.gmra.mrb[184].mxu0 %v6599_v43 }
 0x2b3   : > { %4586 = vmatpush3.bf16.msra.mxu1 %v5575_v54 }
 0x2b4   : > { %5039 = vmatprep.subr.bf16.mxu1 %v5576_v55 }
 0x2b6   : > { %2573 = vmatmul.mubr.bf16.vlgmr.msra.gmra.mrb[80].mxu1 %v2299_v25 }
 0x2b7   : > { %5040 = vmatpush3.bf16.msra.mxu1 %v5576_v55  ;;  %2580 = vmatprep.mubr.bf16.mxu1 %v2303_v63 }
 0x2b8   : > { %5041 = vmatprep.subr.bf16.mxu1 %v5577_v58 }
 0x2b9   : > { %v4457_v31 = vpop.f32.mrb[4].mxu1 }
 0x2ba   : > { %v4458_v3 = vpop.f32.mrb[5].mxu1 }
 0x2bb   : > { %v4459_v56 = vadd.f32 %v4458_v3, %v4457_v31  ;;  %v4460_v62 = vpop.f32.mrb[6].mxu1  ;;  %5042 = vmatpush3.bf16.msra.mxu1 %v5577_v58 }
 0x2bc   : > { %v4461_v5 = vpop.f32.mrb[7].mxu1  ;;  %v5009_v0 = vpop.f32.mrb[108].mxu0  ;;  %5043 = vmatprep.subr.bf16.mxu1 %v5578_v1 }
 0x2bd   : > { %v4462_v10 = vadd.f32 %v4461_v5, %v4460_v62  ;;  %v6621_v13 = vadd.f32 %v5009_v0, %v4459_v56  ;;  %v2107_v14 = vpop.f32.mrb[109].mxu0  ;;  %v2315_v56 = vld [vmem:[#allocation2 + $0x98] sm:$0xff] }
 0x2be   : > { %v6624_v15 = vadd.f32 %v6429_v44, %v2107_v14  ;;  %v5010_v8 = vpop.f32.mrb[110].mxu0  ;;  %2581 = vmatmul.mubr.bf16.gmra.mrb[84].mxu1 %v2302_v4 }
 0x2bf   : > { %v6626_v18 = vadd.f32 %v5010_v8, %v4462_v10  ;;  %v2110_v21 = vpop.f32.mrb[111].mxu0  ;;  %2588 = vmatprep.mubr.bf16.mxu1 %v2306_v16  ;;  %5044 = vmatpush3.bf16.msra.mxu1 %v5578_v1  ;;  %v2311_v1 = vld [vmem:[#allocation2 + $0x78] sm:$0xff] }
 0x2c0   : > { %v6629_v23 = vadd.f32 %v6435_v60, %v2110_v21  ;;  %5045 = vmatprep.subr.bf16.mxu1 %v5579_v6  ;;  %v5583_v60 = vld [vmem:[#allocation10 + $0x178] sm:$0xff]   ;;  %v2314_v21 = vld [vmem:[#allocation2 + $0x90] sm:$0xff] }
 0x2c1   : > { %v4463_v26 = vpop.f32.mrb[8].mxu1 }
 0x2c2   : > { %v4464_v42 = vpop.f32.mrb[9].mxu1 }
 0x2c3   : > { %v4465_v27 = vadd.f32 %v4464_v42, %v4463_v26  ;;  %v4466_v29 = vpop.f32.mrb[10].mxu1  ;;  %5046 = vmatpush3.bf16.msra.mxu1 %v5579_v6  ;;  %v2317_v26 = vld [vmem:[#allocation2 + $0xa8] sm:$0xff] }
 0x2c4   : > { %v4467_v44 = vpop.f32.mrb[11].mxu1  ;;  %5047 = vmatprep.subr.bf16.mxu1 %v5580_v24  ;;  %v2321_v42 = vld [vmem:[#allocation2 + $0xc8] sm:$0xff] }
 0x2c5   : > { %v4468_v36 = vadd.f32 %v4467_v44, %v4466_v29 }
 0x2c6   : > { %2589 = vmatmul.mubr.bf16.gmra.mrb[88].mxu1 %v2305_v37 }
 0x2c7   : > { %2596 = vmatprep.mubr.bf16.mxu1 %v2309_v39  ;;  %5048 = vmatpush3.bf16.msra.mxu1 %v5580_v24  ;;  %v2318_v24 = vld [vmem:[#allocation2 + $0xb0] sm:$0xff] }
 0x2c8   : > { %5049 = vmatprep.subr.bf16.mxu1 %v5581_v34 }
 0x2cb   : > { %5050 = vmatpush3.bf16.msra.mxu1 %v5581_v34 }
 0x2cc   : > { %5051 = vmatprep.subr.bf16.mxu1 %v5582_v17 }
 0x2ce   : > { %2597 = vmatmul.mubr.bf16.gmra.mrb[92].mxu1 %v2308_v40  ;;  %v2320_v40 = vld [vmem:[#allocation2 + $0xc0] sm:$0xff] }
 0x2cf   : > { %2604 = vmatprep.mubr.bf16.mxu1 %v2312_v28  ;;  %5052 = vmatpush3.bf16.msra.mxu1 %v5582_v17 }
 0x2d0   : > { %5053 = vmatprep.subr.bf16.mxu1 %v5583_v60 }
 0x2d1   : > { %v4469_v20 = vpop.f32.mrb[12].mxu1 }
 0x2d2   : > { %v4470_v50 = vpop.f32.mrb[13].mxu1 }
 0x2d3   : > { %v4471_v51 = vadd.f32 %v4470_v50, %v4469_v20  ;;  %v4472_v38 = vpop.f32.mrb[14].mxu1  ;;  %5054 = vmatpush3.bf16.msra.mxu1 %v5583_v60  ;;  %v2324_v50 = vld [vmem:[#allocation2 + $0xe0] sm:$0xff] }
 0x2d4   : > { %v4473_v54 = vpop.f32.mrb[15].mxu1  ;;  %v5013_v55 = vpop.f32.mrb[112].mxu0  ;;  %5087 = vmatprep.subr.bf16.mxu1 %v6631_v32 }
 0x2d5   : > { %v4474_v58 = vadd.f32 %v4473_v54, %v4472_v38  ;;  %v6634_v25 = vadd.f32 %v5013_v55, %v4471_v51  ;;  %v2123_v63 = vpop.f32.mrb[113].mxu0 }
 0x2d6   : > { %v6636_v31 = vadd.f32 %v4465_v27, %v2123_v63  ;;  %v5014_v3 = vpop.f32.mrb[114].mxu0  ;;  %2605 = vmatmul.mubr.bf16.gmra.mrb[96].mxu1 %v2311_v1 }
 0x2d7   : > { %v6638_v62 = vadd.f32 %v5014_v3, %v4474_v58  ;;  %v2126_v5 = vpop.f32.mrb[115].mxu0  ;;  %2612 = vmatprep.mubr.bf16.mxu1 %v2315_v56 }
 0x2d8   : > { %v6640_v0 = vadd.f32 %v4468_v36, %v2126_v5  ;;  %v2327_v5 = vld [vmem:[#allocation2 + $0xf8] sm:$0xff] }
 0x2d9   : > { %v4475_v6 = vpop.f32.mrb[16].mxu1 }
 0x2da   : > { %v4476_v10 = vpop.f32.mrb[17].mxu1 }
 0x2db   : > { %v4477_v14 = vadd.f32 %v4476_v10, %v4475_v6  ;;  %v4478_v4 = vpop.f32.mrb[18].mxu1  ;;  %v2330_v6 = vld [vmem:[#allocation2 + $0x110] sm:$0xff] }
 0x2dc   : > { %v4479_v8 = vpop.f32.mrb[19].mxu1 }
 0x2dd   : > { %v4480_v16 = vadd.f32 %v4479_v8, %v4478_v4 }
 0x2de   : > { %2613 = vmatmul.mubr.bf16.gmra.mrb[100].mxu1 %v2314_v21 }
 0x2df   : > { %2620 = vmatprep.mubr.bf16.mxu1 %v2318_v24 }
 0x2e6   : > { %2621 = vmatmul.mubr.bf16.gmra.mrb[104].mxu1 %v2317_v26 }
 0x2e7   : > { %2628 = vmatprep.mubr.bf16.mxu1 %v2321_v42 }
 0x2e9   : > { %v4481_v27 = vpop.f32.mrb[20].mxu1 }
 0x2ea   : > { %v4482_v29 = vpop.f32.mrb[21].mxu1 }
 0x2eb   : > { %v4483_v44 = vadd.f32 %v4482_v29, %v4481_v27  ;;  %v4484_v34 = vpop.f32.mrb[22].mxu1 }
 0x2ec   : > { %v4485_v36 = vpop.f32.mrb[23].mxu1  ;;  %v5017_v37 = vpop.f32.mrb[116].mxu0 }
 0x2ed   : > { %v4486_v39 = vadd.f32 %v4485_v36, %v4484_v34  ;;  %v6642_v17 = vadd.f32 %v5017_v37, %v4483_v44  ;;  %v2139_v60 = vpop.f32.mrb[117].mxu0 }
 0x2ee   : > { %v6644_v28 = vadd.f32 %v4477_v14, %v2139_v60  ;;  %v5018_v20 = vpop.f32.mrb[118].mxu0  ;;  %2629 = vmatmul.mubr.bf16.gmra.mrb[108].mxu1 %v2320_v40 }
 0x2ef   : > { %v6646_v51 = vadd.f32 %v5018_v20, %v4486_v39  ;;  %v2142_v38 = vpop.f32.mrb[119].mxu0  ;;  %2636 = vmatprep.mubr.bf16.mxu1 %v2324_v50 }
 0x2f0   : > { %v6648_v54 = vadd.f32 %v4480_v16, %v2142_v38 }
 0x2f1   : > { %v4487_v55 = vpop.f32.mrb[24].mxu1 }
 0x2f2   : > { %v4488_v58 = vpop.f32.mrb[25].mxu1 }
 0x2f3   : > { %v4489_v63 = vadd.f32 %v4488_v58, %v4487_v55  ;;  %v4490_v1 = vpop.f32.mrb[26].mxu1 }
 0x2f4   : > { %v4491_v3 = vpop.f32.mrb[27].mxu1 }
 0x2f5   : > { %v4492_v56 = vadd.f32 %v4491_v3, %v4490_v1 }
 0x2f6   : > { %2637 = vmatmul.mubr.bf16.gmra.mrb[112].mxu1 %v6458_v49 }
 0x2f7   : > { %2644 = vmatprep.mubr.bf16.mxu1 %v2327_v5 }
 0x2fe   : > { %2645 = vmatmul.mubr.bf16.gmra.mrb[116].mxu1 %v6468_v11 }
 0x2ff   : > { %2652 = vmatprep.mubr.bf16.mxu1 %v2330_v6 }
 0x301   : > { %v4493_v10 = vpop.f32.mrb[28].mxu1 }
 0x302   : > { %v4494_v14 = vpop.f32.mrb[29].mxu1 }
 0x303   : > { %v4495_v4 = vadd.f32 %v4494_v14, %v4493_v10  ;;  %v4496_v8 = vpop.f32.mrb[30].mxu1 }
 0x304   : > { %v4497_v16 = vpop.f32.mrb[31].mxu1  ;;  %v5021_v21 = vpop.f32.mrb[120].mxu0 }
 0x305   : > { %v4498_v24 = vadd.f32 %v4497_v16, %v4496_v8  ;;  %v6652_v26 = vadd.f32 %v5021_v21, %v4495_v4  ;;  %v2155_v42 = vpop.f32.mrb[121].mxu0 }
 0x306   : > { %v6654_v27 = vadd.f32 %v4489_v63, %v2155_v42  ;;  %v5022_v29 = vpop.f32.mrb[122].mxu0  ;;  %2653 = vmatmul.mubr.bf16.gmra.mrb[120].mxu1 %v6500_v48 }
 0x307   : > { %v6657_v49 = vadd.f32 %v5022_v29, %v4498_v24  ;;  %v2158_v11 = vpop.f32.mrb[123].mxu0  ;;  %2660 = vmatprep.mubr.bf16.mxu1 %v6497_v41 }
 0x308   : > { %v6660_v44 = vadd.f32 %v4492_v56, %v2158_v11 }
 0x309   : > { %v4499_v34 = vpop.f32.mrb[32].mxu1 }
 0x30a   : > { %v4500_v36 = vpop.f32.mrb[33].mxu1 }
 0x30b   : > { %v6662_v37 = vadd.f32 %v4500_v36, %v4499_v34  ;;  %v4502_v39 = vpop.f32.mrb[34].mxu1 }
 0x30c   : > { %v4503_v60 = vpop.f32.mrb[35].mxu1  ;;  %v4723_v40 = vpop.f32.mrb[124].mxu0 }
 0x30d   : > { %v6664_v20 = vadd.f32 %v4503_v60, %v4502_v39  ;;  %v4724_v50 = vpop.f32.mrb[125].mxu0 }
 0x30e   : > { %v6666_v38 = vadd.f32 %v4724_v50, %v4723_v40  ;;  %2661 = vmatmul.mubr.bf16.gmra.mrb[124].mxu1 %v6510_v7  ;;  %v4726_v48 = vpop.f32.mrb[126].mxu0 }
 0x30f   : > { %2668 = vmatprep.mubr.bf16.mxu1 %v6518_v59  ;;  %v4727_v41 = vpop.f32.mrb[127].mxu0 }
 0x310   : > { %v6670_v55 = vadd.f32 %v4727_v41, %v4726_v48 }
 0x314   : > { %v4729_v58 = vpop.f32.mrb[128].mxu0 }
 0x315   : > { %v4730_v63 = vpop.f32.mrb[129].mxu0 }
 0x316   : > { %v6672_v1 = vadd.f32 %v4730_v63, %v4729_v58  ;;  %2669 = vmatmul.mubr.bf16.gmra.mrb[128].mxu1 %v6536_v57  ;;  %v4732_v3 = vpop.f32.mrb[130].mxu0 }
 0x317   : > { %2676 = vmatprep.mubr.bf16.mxu1 %v6534_v53  ;;  %v4733_v56 = vpop.f32.mrb[131].mxu0 }
 0x318   : > { %v6676_v5 = vadd.f32 %v4733_v56, %v4732_v3  ;;  %v2301_v56 = vld [vmem:[#allocation2 + $0x28] sm:$0xff] }
 0x319   : > { %v4505_v6 = vpop.f32.mrb[36].mxu1 }
 0x31a   : > { %v4506_v7 = vpop.f32.mrb[37].mxu1 }
 0x31b   : > { %v6678_v10 = vadd.f32 %v4506_v7, %v4505_v6  ;;  %v4508_v59 = vpop.f32.mrb[38].mxu1 }
 0x31c   : > { %v4509_v14 = vpop.f32.mrb[39].mxu1  ;;  %v4735_v4 = vpop.f32.mrb[132].mxu0 }
 0x31d   : > { %7213 = vst [vmem:[#allocation22_spill] sm:$0xff] %v6678_v10  ;;  %v6680_v8 = vadd.f32 %v4509_v14, %v4508_v59  ;;  %v4736_v16 = vpop.f32.mrb[133].mxu0 }
 0x31e   : > { %v6682_v21 = vadd.f32 %v4736_v16, %v4735_v4  ;;  %2677 = vmatmul.mubr.bf16.gmra.mrb[132].mxu1 %v6546_v61  ;;  %v4738_v57 = vpop.f32.mrb[134].mxu0 }
 0x31f   : > { %7214 = vst [vmem:[#allocation23_spill] sm:$0xff] %v6680_v8  ;;  %2684 = vmatprep.mubr.bf16.mxu1 %v6554_v30  ;;  %v4739_v53 = vpop.f32.mrb[135].mxu0 }
 0x320   : > { %v6686_v24 = vadd.f32 %v4739_v53, %v4738_v57  ;;  %v5585_v57 = vld [vmem:[#allocation10 + $0x208] sm:$0xff]  }
 0x321   : > { %v4511_v42 = vpop.f32.mrb[40].mxu1 }
 0x322   : > { %v4512_v29 = vpop.f32.mrb[41].mxu1 }
 0x323   : > { %v6688_v11 = vadd.f32 %v4512_v29, %v4511_v42  ;;  %v4514_v34 = vpop.f32.mrb[42].mxu1  ;;  %v6707_v29 = vld [vmem:[#allocation2 + $0x40] sm:$0xff] }
 0x324   : > { %v4515_v36 = vpop.f32.mrb[43].mxu1  ;;  %v4741_v39 = vpop.f32.mrb[136].mxu0 }
 0x325   : > { %7215 = vst [vmem:[#allocation24_spill] sm:$0xff] %v6688_v11  ;;  %v6690_v60 = vadd.f32 %v4515_v36, %v4514_v34  ;;  %v4742_v40 = vpop.f32.mrb[137].mxu0  ;;  %v6712_v36 = vld [vmem:[#allocation2 + $0x58] sm:$0xff] }
 0x326   : > { %v6692_v50 = vadd.f32 %v4742_v40, %v4741_v39  ;;  %2685 = vmatmul.mubr.bf16.gmra.mrb[136].mxu1 %v6572_v9  ;;  %v4744_v61 = vpop.f32.mrb[138].mxu0 }
 0x327   : > { %7216 = vst [vmem:[#allocation25_spill] sm:$0xff] %v6690_v60  ;;  %2692 = vmatprep.mubr.bf16.mxu1 %v6569_v2  ;;  %v4745_v30 = vpop.f32.mrb[139].mxu0  ;;  %v5591_v60 = vld [vmem:[#allocation10 + $0x238] sm:$0xff]  }
 0x328   : > { %v6696_v48 = vadd.f32 %v4745_v30, %v4744_v61  ;;  %v5586_v61 = vld [vmem:[#allocation10 + $0x210] sm:$0xff]  }
 0x32c   : > { %v4747_v41 = vpop.f32.mrb[140].mxu0 }
 0x32d   : > { %v4748_v58 = vpop.f32.mrb[141].mxu0 }
 0x32e   : > { %v6698_v63 = vadd.f32 %v4748_v58, %v4747_v41  ;;  %2693 = vmatmul.mubr.bf16.gmra.mrb[140].mxu1 %v6612_v47  ;;  %v4750_v3 = vpop.f32.mrb[142].mxu0 }
 0x32f   : > { %5055 = vmatprep.mubr.bf16.mxu1 %v2301_v56  ;;  %v4751_v6 = vpop.f32.mrb[143].mxu0 }
 0x330   : > { %v6701_v7 = vadd.f32 %v4751_v6, %v4750_v3 }
 0x331   : > { %v4517_v59 = vpop.f32.mrb[44].mxu1 }
 0x332   : > { %v4518_v9 = vpop.f32.mrb[45].mxu1 }
 0x333   : > { %v6703_v14 = vadd.f32 %v4518_v9, %v4517_v59  ;;  %v4520_v2 = vpop.f32.mrb[46].mxu1  ;;  %v5587_v59 = vld [vmem:[#allocation10 + $0x218] sm:$0xff]  }
 0x334   : > { %v4521_v4 = vpop.f32.mrb[47].mxu1  ;;  %v4753_v16 = vpop.f32.mrb[144].mxu0 }
 0x335   : > { %7217 = vst [vmem:[#allocation26_spill] sm:$0xff] %v6703_v14  ;;  %v6705_v53 = vadd.f32 %v4521_v4, %v4520_v2  ;;  %v4754_v42 = vpop.f32.mrb[145].mxu0  ;;  %v6722_v2 = vld [vmem:[#allocation2 + $0x70] sm:$0xff] }
 0x336   : > { %v6709_v47 = vadd.f32 %v4754_v42, %v4753_v16  ;;  %5056 = vmatmul.mubr.bf16.vlgmr.msra.gmra.mrb[144].mxu1 %v6707_v29  ;;  %v4756_v34 = vpop.f32.mrb[146].mxu0  ;;  %v6727_v42 = vld [vmem:[#allocation2 + $0x88] sm:$0xff] }
 0x337   : > { %7218 = vst [vmem:[#allocation27_spill] sm:$0xff] %v6705_v53  ;;  %5088 = vmatpush3.bf16.msra.mxu1 %v6631_v32  ;;  %5059 = vmatprep.mubr.bf16.mxu1 %v6712_v36  ;;  %v4757_v39 = vpop.f32.mrb[147].mxu0 }
 0x338   : > { %v6716_v40 = vadd.f32 %v4757_v39, %v4756_v34  ;;  %5089 = vmatprep.subr.bf16.mxu1 %v5585_v57  ;;  %v5588_v39 = vld [vmem:[#allocation10 + $0x220] sm:$0xff]  }
 0x339   : > { %v4523_v30 = vpop.f32.mrb[48].mxu1 }
 0x33a   : > { %v4524_v41 = vpop.f32.mrb[49].mxu1 }
 0x33b   : > { %v6718_v58 = vadd.f32 %v4524_v41, %v4523_v30  ;;  %v4526_v3 = vpop.f32.mrb[50].mxu1  ;;  %5090 = vmatpush3.bf16.msra.mxu1 %v5585_v57  ;;  %v5589_v41 = vld [vmem:[#allocation10 + $0x228] sm:$0xff]  }
 0x33c   : > { %v4527_v56 = vpop.f32.mrb[51].mxu1  ;;  %v4759_v6 = vpop.f32.mrb[148].mxu0  ;;  %5091 = vmatprep.subr.bf16.mxu1 %v5586_v61 }
 0x33d   : > { %7219 = vst [vmem:[#allocation28_spill] sm:$0xff] %v6718_v58  ;;  %v6720_v9 = vadd.f32 %v4527_v56, %v4526_v3  ;;  %v4760_v32 = vpop.f32.mrb[149].mxu0  ;;  %v6732_v56 = vld [vmem:[#allocation2 + $0xa0] sm:$0xff] }
 0x33e   : > { %v6724_v4 = vadd.f32 %v4760_v32, %v4759_v6  ;;  %5060 = vmatmul.mubr.bf16.gmra.mrb[148].mxu1 %v6722_v2  ;;  %v4762_v16 = vpop.f32.mrb[150].mxu0 }
 0x33f   : > { %7220 = vst [vmem:[#allocation29_spill] sm:$0xff] %v6720_v9  ;;  %5063 = vmatprep.mubr.bf16.mxu1 %v6727_v42  ;;  %v4763_v34 = vpop.f32.mrb[151].mxu0  ;;  %5092 = vmatpush3.bf16.msra.mxu1 %v5586_v61  ;;  %v6737_v9 = vld [vmem:[#allocation2 + $0xb8] sm:$0xff] }
 0x340   : > { %v6730_v57 = vadd.f32 %v4763_v34, %v4762_v16  ;;  %5093 = vmatprep.subr.bf16.mxu1 %v5587_v59 }
 0x343   : > { %5094 = vmatpush3.bf16.msra.mxu1 %v5587_v59  ;;  %v5590_v59 = vld [vmem:[#allocation10 + $0x230] sm:$0xff]  }
 0x344   : > { %v4765_v30 = vpop.f32.mrb[152].mxu0  ;;  %5095 = vmatprep.subr.bf16.mxu1 %v5588_v39 }
 0x345   : > { %v4766_v3 = vpop.f32.mrb[153].mxu0 }
 0x346   : > { %v6734_v6 = vadd.f32 %v4766_v3, %v4765_v30  ;;  %5064 = vmatmul.mubr.bf16.gmra.mrb[152].mxu1 %v6732_v56  ;;  %v4768_v32 = vpop.f32.mrb[154].mxu0 }
 0x347   : > { %5067 = vmatprep.mubr.bf16.mxu1 %v6737_v9  ;;  %v4769_v61 = vpop.f32.mrb[155].mxu0  ;;  %5096 = vmatpush3.bf16.msra.mxu1 %v5588_v39 }
 0x348   : > { %v6740_v16 = vadd.f32 %v4769_v61, %v4768_v32  ;;  %5097 = vmatprep.subr.bf16.mxu1 %v5589_v41 }
 0x349   : > { %v4529_v34 = vpop.f32.mrb[52].mxu1 }
 0x34a   : > { %v4530_v58 = vpop.f32.mrb[53].mxu1 }
 0x34b   : > { %v6742_v53 = vadd.f32 %v4530_v58, %v4529_v34  ;;  %v4532_v14 = vpop.f32.mrb[54].mxu1  ;;  %5098 = vmatpush3.bf16.msra.mxu1 %v5589_v41 }
 0x34c   : > { %v4533_v30 = vpop.f32.mrb[55].mxu1  ;;  %v4771_v3 = vpop.f32.mrb[156].mxu0  ;;  %5099 = vmatprep.subr.bf16.mxu1 %v5590_v59 }
 0x34d   : > { %7221 = vst [vmem:[#allocation30_spill] sm:$0xff] %v6742_v53  ;;  %v6744_v11 = vadd.f32 %v4533_v30, %v4532_v14  ;;  %v4772_v8 = vpop.f32.mrb[157].mxu0 }
 0x34e   : > { %v6746_v10 = vadd.f32 %v4772_v8, %v4771_v3  ;;  %5068 = vmatmul.mubr.bf16.gmra.mrb[156].mxu1 %v6575_v12  ;;  %v4774_v39 = vpop.f32.mrb[158].mxu0 }
 0x34f   : > { %7222 = vst [vmem:[#allocation31_spill] sm:$0xff] %v6744_v11  ;;  %5071 = vmatprep.mubr.bf16.mxu1 %v6582_v19  ;;  %v4775_v32 = vpop.f32.mrb[159].mxu0  ;;  %5100 = vmatpush3.bf16.msra.mxu1 %v5590_v59 }
 0x350   : > { %v6750_v58 = vadd.f32 %v4775_v32, %v4774_v39  ;;  %5101 = vmatprep.subr.bf16.mxu1 %v5591_v60 }
 0x351   : > { %v4535_v41 = vpop.f32.mrb[56].mxu1 }
 0x352   : > { %v4536_v61 = vpop.f32.mrb[57].mxu1 }
 0x353   : > { %v6752_v34 = vadd.f32 %v4536_v61, %v4535_v41  ;;  %v4538_v53 = vpop.f32.mrb[58].mxu1  ;;  %5102 = vmatpush3.bf16.msra.mxu1 %v5591_v60 }
 0x354   : > { %v4539_v14 = vpop.f32.mrb[59].mxu1  ;;  %v4777_v30 = vpop.f32.mrb[160].mxu0 }
 0x355   : > { %7223 = vst [vmem:[#allocation32_spill] sm:$0xff] %v6752_v34  ;;  %v6754_v8 = vadd.f32 %v4539_v14, %v4538_v53  ;;  %v4778_v3 = vpop.f32.mrb[161].mxu0  ;;  %v5592_v14 = vld [vmem:[#allocation12] sm:$0xff]  }
 0x356   : > { %v6756_v12 = vadd.f32 %v4778_v3, %v4777_v30  ;;  %5072 = vmatmul.mubr.bf16.gmra.mrb[64].mxu1 %v6585_v22  ;;  %v4780_v19 = vpop.f32.mrb[162].mxu0  ;;  %5135 = vmatprep.subr.bf16.mxu0 %v5592_v14 }
 0x357   : > { %7224 = vst [vmem:[#allocation33_spill] sm:$0xff] %v6754_v8  ;;  %5075 = vmatprep.mubr.bf16.mxu1 %v6591_v33  ;;  %v4781_v59 = vpop.f32.mrb[163].mxu0  ;;  %5199 = vmatprep.subr.bf16.mxu1 %v5592_v14 }
 0x358   : > { %v6760_v39 = vadd.f32 %v4781_v59, %v4780_v19  ;;  %5136 = vmatpush3.bf16.msra.mxu0 %v5592_v14 }
 0x35c   : > { %v4783_v32 = vpop.f32.mrb[164].mxu0 }
 0x35d   : > { %v4784_v41 = vpop.f32.mrb[165].mxu0 }
 0x35e   : > { %v6762_v61 = vadd.f32 %v4784_v41, %v4783_v32  ;;  %5076 = vmatmul.mubr.bf16.gmra.mrb[68].mxu1 %v6596_v35  ;;  %v4786_v60 = vpop.f32.mrb[166].mxu0 }
 0x35f   : > { %5079 = vmatprep.mubr.bf16.mxu1 %v6607_v45  ;;  %v4787_v53 = vpop.f32.mrb[167].mxu0 }
 0x360   : > { %v6766_v30 = vadd.f32 %v4787_v53, %v4786_v60 }
 0x361   : > { %v4541_v22 = vpop.f32.mrb[60].mxu1 }
 0x362   : > { %v4542_v33 = vpop.f32.mrb[61].mxu1 }
 0x363   : > { %v6768_v3 = vadd.f32 %v4542_v33, %v4541_v22  ;;  %v4544_v19 = vpop.f32.mrb[62].mxu1  ;;  %v6778_v22 = vld [vmem:[#allocation2 + $0x190] sm:$0xff] }
 0x364   : > { %v4545_v59 = vpop.f32.mrb[63].mxu1  ;;  %v4789_v32 = vpop.f32.mrb[168].mxu0 }
 0x365   : > { %7225 = vst [vmem:[#allocation34_spill] sm:$0xff] %v6768_v3  ;;  %v6770_v41 = vadd.f32 %v4545_v59, %v4544_v19  ;;  %v4790_v35 = vpop.f32.mrb[169].mxu0 }
 0x366   : > { %v6772_v8 = vadd.f32 %v4790_v35, %v4789_v32  ;;  %5080 = vmatmul.mubr.bf16.gmra.mrb[72].mxu1 %v6610_v46  ;;  %v4792_v45 = vpop.f32.mrb[170].mxu0  ;;  %v5593_v32 = vld [vmem:[#allocation12 + $0x8] sm:$0xff]  }
 0x367   : > { %7226 = vst [vmem:[#allocation35_spill] sm:$0xff] %v6770_v41  ;;  %5083 = vmatprep.mubr.bf16.mxu1 %v6617_v52  ;;  %v4793_v60 = vpop.f32.mrb[171].mxu0  ;;  %5137 = vmatprep.subr.bf16.mxu0 %v5593_v32 }
 0x368   : > { %v6776_v53 = vadd.f32 %v4793_v60, %v4792_v45  ;;  %5138 = vmatpush3.bf16.msra.mxu0 %v5593_v32 }
 0x36c   : > { %v4795_v34 = vpop.f32.mrb[172].mxu0 }
 0x36d   : > { %v4796_v11 = vpop.f32.mrb[173].mxu0 }
 0x36e   : > { %v6780_v33 = vadd.f32 %v4796_v11, %v4795_v34  ;;  %5084 = vmatmul.mubr.bf16.gmra.mrb[76].mxu1 %v6778_v22  ;;  %v4798_v19 = vpop.f32.mrb[174].mxu0 }
 0x36f   : > { %v4799_v59 = vpop.f32.mrb[175].mxu0  ;;  %5103 = vmatprep.mubr.bf16.mxu1 %v6707_v29 }
 0x370   : > { %v6784_v46 = vadd.f32 %v4799_v59, %v4798_v19 }
 0x374   : > { %v4801_v52 = vpop.f32.mrb[176].mxu0 }
 0x375   : > { %v4802_v35 = vpop.f32.mrb[177].mxu0 }
 0x376   : > { %v6786_v45 = vadd.f32 %v4802_v35, %v4801_v52  ;;  %v4804_v60 = vpop.f32.mrb[178].mxu0  ;;  %5104 = vmatmul.mubr.bf16.vlgmr.msra.gmra.mrb[144].mxu1 %v6712_v36  ;;  %v5594_v35 = vld [vmem:[#allocation12 + $0x10] sm:$0xff]  }
 0x377   : > { %v4805_v11 = vpop.f32.mrb[179].mxu0  ;;  %5107 = vmatprep.mubr.bf16.mxu1 %v6722_v2  ;;  %5207 = vmatpush3.bf16.msra.mxu1 %v5592_v14 }
 0x378   : > { %v6790_v34 = vadd.f32 %v4805_v11, %v4804_v60  ;;  %5200 = vmatprep.subr.bf16.mxu1 %v5593_v32  ;;  %5139 = vmatprep.subr.bf16.mxu0 %v5594_v35 }
 0x379   : > { %5140 = vmatpush3.bf16.msra.mxu0 %v5594_v35 }
 0x37b   : > { %5208 = vmatpush3.bf16.msra.mxu1 %v5593_v32  ;;  %v2979_v32 = vld [vmem:[#allocation2 + $0xd0] sm:$0xff] }
 0x37c   : > { %v4807_v29 = vpop.f32.mrb[180].mxu0  ;;  %5201 = vmatprep.subr.bf16.mxu1 %v5594_v35 }
 0x37d   : > { %v4808_v19 = vpop.f32.mrb[181].mxu0 }
 0x37e   : > { %5108 = vmatmul.mubr.bf16.gmra.mrb[148].mxu1 %v6727_v42  ;;  %v6793_v59 = vadd.f32 %v4808_v19, %v4807_v29  ;;  %v4810_v41 = vpop.f32.mrb[182].mxu0  ;;  %v5595_v29 = vld [vmem:[#allocation12 + $0x18] sm:$0xff]  }
 0x37f   : > { %5111 = vmatprep.mubr.bf16.mxu1 %v6732_v56  ;;  %v4811_v52 = vpop.f32.mrb[183].mxu0  ;;  %5209 = vmatpush3.bf16.msra.mxu1 %v5594_v35  ;;  %v5596_v56 = vld [vmem:[#allocation12 + $0x20] sm:$0xff]  }
 0x380   : > { %v6796_v36 = vadd.f32 %v4811_v52, %v4810_v41  ;;  %5141 = vmatprep.subr.bf16.mxu0 %v5595_v29  ;;  %5202 = vmatprep.subr.bf16.mxu1 %v5595_v29 }
 0x381   : > { %5142 = vmatpush3.bf16.msra.mxu0 %v5595_v29 }
 0x382   : > { %7227 = vst [vmem:[#allocation36_spill] sm:$0xff] %v6796_v36  ;;  %5143 = vmatprep.subr.bf16.mxu0 %v5596_v56  ;;  %v2985_v36 = vld [vmem:[#allocation2 + $0x100] sm:$0xff] }
 0x383   : > { %5210 = vmatpush3.bf16.msra.mxu1 %v5595_v29 }
 0x384   : > { %v4813_v2 = vpop.f32.mrb[184].mxu0  ;;  %5203 = vmatprep.subr.bf16.mxu1 %v5596_v56 }
 0x385   : > { %v4814_v14 = vpop.f32.mrb[185].mxu0  ;;  %5144 = vmatpush3.bf16.msra.mxu0 %v5596_v56 }
 0x386   : > { %5112 = vmatmul.mubr.bf16.gmra.mrb[152].mxu1 %v6737_v9  ;;  %v6799_v60 = vadd.f32 %v4814_v14, %v4813_v2  ;;  %v4816_v42 = vpop.f32.mrb[186].mxu0  ;;  %v5597_v9 = vld [vmem:[#allocation12 + $0x28] sm:$0xff]  }
 0x387   : > { %5115 = vmatprep.mubr.bf16.mxu1 %v2979_v32  ;;  %v4817_v11 = vpop.f32.mrb[187].mxu0  ;;  %5145 = vmatprep.subr.bf16.mxu0 %v5597_v9 }
 0x388   : > { %7228 = vst [vmem:[#allocation37_spill] sm:$0xff] %v6799_v60  ;;  %v6801_v19 = vadd.f32 %v4817_v11, %v4816_v42  ;;  %v2982_v60 = vld [vmem:[#allocation2 + $0xe8] sm:$0xff]  ;;  %v5598_v11 = vld [vmem:[#allocation12 + $0x30] sm:$0xff]   ;;  %5211 = vmatpush3.bf16.msra.mxu1 %v5596_v56 }
 0x389   : > { %v4587_v41 = vpop.f32.mrb[80].mxu1  ;;  %5204 = vmatprep.subr.bf16.mxu1 %v5597_v9  ;;  %5146 = vmatpush3.bf16.msra.mxu0 %v5597_v9 }
 0x38a   : > { %v4588_v52 = vpop.f32.mrb[81].mxu1  ;;  %5147 = vmatprep.subr.bf16.mxu0 %v5598_v11 }
 0x38b   : > { %v4589_v35 = vadd.f32 %v4588_v52, %v4587_v41  ;;  %v4590_v3 = vpop.f32.mrb[82].mxu1 }
 0x38c   : > { %v4591_v2 = vpop.f32.mrb[83].mxu1  ;;  %5212 = vmatpush3.bf16.msra.mxu1 %v5597_v9 }
 0x38d   : > { %v5220_v14 = vadd.f32 %v4589_v35, %v6624_v15  ;;  %v4592_v32 = vadd.f32 %v4591_v2, %v4590_v3  ;;  %v2988_v2 = vld [vmem:[#allocation2 + $0x118] sm:$0xff]  ;;  %5205 = vmatprep.subr.bf16.mxu1 %v5598_v11  ;;  %5148 = vmatpush3.bf16.msra.mxu0 %v5598_v11 }
 0x38e   : > { %5116 = vmatmul.mubr.bf16.gmra.mrb[156].mxu1 %v2982_v60 }
 0x38f   : > { %v5228_v42 = vadd.f32 %v4592_v32, %v6629_v23  ;;  %5119 = vmatprep.mubr.bf16.mxu1 %v2985_v36  ;;  %v6806_v29 = vadd.f32 %v5220_v14, %v6666_v38  ;;  %v2991_v38 = vld [vmem:[#allocation2 + $0x130] sm:$0xff] }
 0x390   : > { %5213 = vmatpush3.bf16.msra.mxu1 %v5598_v11 }
 0x391   : > { %v4593_v41 = vpop.f32.mrb[84].mxu1  ;;  %v6809_v52 = vadd.f32 %v5228_v42, %v6670_v55 }
 0x392   : > { %v4594_v15 = vpop.f32.mrb[85].mxu1 }
 0x393   : > { %v4595_v3 = vadd.f32 %v4594_v15, %v4593_v41  ;;  %v4596_v60 = vpop.f32.mrb[86].mxu1 }
 0x394   : > { %v4597_v35 = vpop.f32.mrb[87].mxu1 }
 0x395   : > { %v5216_v23 = vadd.f32 %v4595_v3, %v6621_v13  ;;  %v4598_v36 = vadd.f32 %v4597_v35, %v4596_v60  ;;  %v2994_v60 = vld [vmem:[#allocation2 + $0x148] sm:$0xff]  ;;  %v2997_v35 = vld [vmem:[#allocation2 + $0x160] sm:$0xff] }
 0x396   : > { %5120 = vmatmul.mubr.bf16.gmra.mrb[64].mxu1 %v2988_v2 }
 0x397   : > { %v5224_v56 = vadd.f32 %v4598_v36, %v6626_v18  ;;  %5123 = vmatprep.mubr.bf16.mxu1 %v2991_v38  ;;  %v6814_v55 = vadd.f32 %v5216_v23, %v6672_v1 }
 0x399   : > { %v4599_v14 = vpop.f32.mrb[88].mxu1  ;;  %v6817_v32 = vadd.f32 %v5224_v56, %v6676_v5 }
 0x39a   : > { %v4600_v9 = vpop.f32.mrb[89].mxu1 }
 0x39b   : > { %v4601_v42 = vadd.f32 %v4600_v9, %v4599_v14  ;;  %v4602_v13 = vpop.f32.mrb[90].mxu1  ;;  %v3000_v14 = vld [vmem:[#allocation2 + $0x178] sm:$0xff] }
 0x39c   : > { %v4603_v41 = vpop.f32.mrb[91].mxu1 }
 0x39d   : > { %v5236_v15 = vadd.f32 %v4601_v42, %v6636_v31  ;;  %v4604_v3 = vadd.f32 %v4603_v41, %v4602_v13 }
 0x39e   : > { %5124 = vmatmul.mubr.bf16.gmra.mrb[68].mxu1 %v2994_v60 }
 0x39f   : > { %v5244_v18 = vadd.f32 %v4604_v3, %v6640_v0  ;;  %5127 = vmatprep.mubr.bf16.mxu1 %v2997_v35  ;;  %v6822_v1 = vadd.f32 %v5236_v15, %v6682_v21 }
 0x3a1   : > { %v4605_v11 = vpop.f32.mrb[92].mxu1  ;;  %v6825_v5 = vadd.f32 %v5244_v18, %v6686_v24 }
 0x3a2   : > { %v4606_v23 = vpop.f32.mrb[93].mxu1 }
 0x3a3   : > { %v4607_v36 = vadd.f32 %v4606_v23, %v4605_v11  ;;  %v4608_v2 = vpop.f32.mrb[94].mxu1 }
 0x3a4   : > { %v4609_v38 = vpop.f32.mrb[95].mxu1 }
 0x3a5   : > { %v5232_v31 = vadd.f32 %v4607_v36, %v6634_v25  ;;  %v4610_v56 = vadd.f32 %v4609_v38, %v4608_v2 }
 0x3a6   : > { %5128 = vmatmul.mubr.bf16.gmra.mrb[72].mxu1 %v3000_v14 }
 0x3a7   : > { %v5240_v9 = vadd.f32 %v4610_v56, %v6638_v62  ;;  %5131 = vmatprep.mubr.bf16.mxu1 %v6778_v22  ;;  %v6831_v0 = vadd.f32 %v5232_v31, %v6692_v50 }
 0x3a9   : > { %v4611_v21 = vpop.f32.mrb[96].mxu1  ;;  %v6834_v24 = vadd.f32 %v5240_v9, %v6696_v48 }
 0x3aa   : > { %v4612_v42 = vpop.f32.mrb[97].mxu1 }
 0x3ab   : > { %v4613_v13 = vadd.f32 %v4612_v42, %v4611_v21  ;;  %v4614_v41 = vpop.f32.mrb[98].mxu1 }
 0x3ac   : > { %v4615_v15 = vpop.f32.mrb[99].mxu1 }
 0x3ad   : > { %v5252_v25 = vadd.f32 %v4613_v13, %v6644_v28  ;;  %v4616_v3 = vadd.f32 %v4615_v15, %v4614_v41 }
 0x3ae   : > { %5132 = vmatmul.mubr.bf16.gmra.mrb[76].mxu1 %v6599_v43 }
 0x3af   : > { %v5260_v62 = vadd.f32 %v4616_v3, %v6648_v54  ;;  %v6840_v22 = vadd.f32 %v5252_v25, %v6698_v63 }
 0x3b1   : > { %v4617_v50 = vpop.f32.mrb[100].mxu1  ;;  %v6843_v60 = vadd.f32 %v5260_v62, %v6701_v7 }
 0x3b2   : > { %v4618_v48 = vpop.f32.mrb[101].mxu1 }
 0x3b3   : > { %v4619_v35 = vadd.f32 %v4618_v48, %v4617_v50  ;;  %v4620_v18 = vpop.f32.mrb[102].mxu1 }
 0x3b4   : > { %v4621_v11 = vpop.f32.mrb[103].mxu1 }
 0x3b5   : > { %v5248_v23 = vadd.f32 %v4619_v35, %v6642_v17  ;;  %v4622_v36 = vadd.f32 %v4621_v11, %v4620_v18  ;;  %v5599_v11 = vld [vmem:[#allocation12 + $0x38] sm:$0xff]  }
 0x3b6   : > { %5149 = vmatprep.subr.bf16.mxu0 %v5599_v11  ;;  %5206 = vmatprep.subr.bf16.mxu1 %v5599_v11 }
 0x3b7   : > { %v5256_v28 = vadd.f32 %v4622_v36, %v6646_v51  ;;  %v6848_v43 = vadd.f32 %v5248_v23, %v6709_v47  ;;  %5150 = vmatpush3.bf16.msra.mxu0 %v5599_v11  ;;  %5214 = vmatpush3.bf16.msra.mxu1 %v5599_v11 }
 0x3b9   : > { %v4623_v54 = vpop.f32.mrb[104].mxu1  ;;  %v6851_v63 = vadd.f32 %v5256_v28, %v6716_v40 }
 0x3ba   : > { %v4624_v2 = vpop.f32.mrb[105].mxu1 }
 0x3bb   : > { %v4625_v38 = vadd.f32 %v4624_v2, %v4623_v54  ;;  %v4626_v7 = vpop.f32.mrb[106].mxu1 }
 0x3bc   : > { %v4627_v31 = vpop.f32.mrb[107].mxu1 }
 0x3bd   : > { %v5268_v56 = vadd.f32 %v4625_v38, %v6654_v27  ;;  %v4628_v14 = vadd.f32 %v4627_v31, %v4626_v7 }
 0x3bf   : > { %v5276_v9 = vadd.f32 %v4628_v14, %v6660_v44  ;;  %v6856_v17 = vadd.f32 %v5268_v56, %v6724_v4 }
 0x3c1   : > { %v4629_v51 = vpop.f32.mrb[108].mxu1  ;;  %v6859_v47 = vadd.f32 %v5276_v9, %v6730_v57 }
 0x3c2   : > { %v4630_v21 = vpop.f32.mrb[109].mxu1 }
 0x3c3   : > { %v4631_v42 = vadd.f32 %v4630_v21, %v4629_v51  ;;  %v4632_v40 = vpop.f32.mrb[110].mxu1  ;;  %v7231_v51 = vld [vmem:[#allocation24_spill] sm:$0xff] }
 0x3c4   : > { %v4633_v13 = vpop.f32.mrb[111].mxu1 }
 0x3c5   : > { %v5264_v41 = vadd.f32 %v4631_v42, %v6652_v26  ;;  %v4634_v15 = vadd.f32 %v4633_v13, %v4632_v40  ;;  %v7232_v40 = vld [vmem:[#allocation25_spill] sm:$0xff] }
 0x3c7   : > { %v5272_v25 = vadd.f32 %v4634_v15, %v6657_v49  ;;  %v6864_v27 = vadd.f32 %v5264_v41, %v6734_v6 }
 0x3c9   : > { %v4635_v44 = vpop.f32.mrb[112].mxu1  ;;  %v6867_v4 = vadd.f32 %v5272_v25, %v6740_v16 }
 0x3ca   : > { %v4636_v3 = vpop.f32.mrb[113].mxu1 }
 0x3cb   : > { %v4637_v62 = vadd.f32 %v4636_v3, %v4635_v44  ;;  %v4638_v57 = vpop.f32.mrb[114].mxu1 }
 0x3cc   : > { %v4639_v50 = vpop.f32.mrb[115].mxu1 }
 0x3cd   : > { %v5282_v48 = vadd.f32 %v4637_v62, %v6662_v37  ;;  %v4640_v35 = vadd.f32 %v4639_v50, %v4638_v57  ;;  %v7229_v37 = vld [vmem:[#allocation22_spill] sm:$0xff] }
 0x3ce   : > { %v7233_v62 = vld [vmem:[#allocation26_spill] sm:$0xff] }
 0x3cf   : > { %v5288_v18 = vadd.f32 %v4640_v35, %v6664_v20  ;;  %v6872_v26 = vadd.f32 %v5282_v48, %v6746_v10  ;;  %v7230_v20 = vld [vmem:[#allocation23_spill] sm:$0xff] }
 0x3d0   : > { %v7234_v48 = vld [vmem:[#allocation27_spill] sm:$0xff] }
 0x3d1   : > { %v4641_v49 = vpop.f32.mrb[116].mxu1  ;;  %v6875_v6 = vadd.f32 %v5288_v18, %v6750_v58 }
 0x3d2   : > { %v4642_v23 = vpop.f32.mrb[117].mxu1 }
 0x3d3   : > { %v4643_v16 = vadd.f32 %v4642_v23, %v4641_v49  ;;  %v4644_v36 = vpop.f32.mrb[118].mxu1 }
 0x3d4   : > { %v4645_v28 = vpop.f32.mrb[119].mxu1 }
 0x3d5   : > { %v5279_v54 = vadd.f32 %v4643_v16, %v7229_v37  ;;  %v4646_v2 = vadd.f32 %v4645_v28, %v4644_v36  ;;  %v7235_v36 = vld [vmem:[#allocation28_spill] sm:$0xff] }
 0x3d7   : > { %v5285_v38 = vadd.f32 %v4646_v2, %v7230_v20  ;;  %v6880_v10 = vadd.f32 %v5279_v54, %v6756_v12  ;;  %v7236_v54 = vld [vmem:[#allocation29_spill] sm:$0xff] }
 0x3d9   : > { %v4647_v7 = vpop.f32.mrb[120].mxu1  ;;  %v6883_v58 = vadd.f32 %v5285_v38, %v6760_v39 }
 0x3da   : > { %v4648_v31 = vpop.f32.mrb[121].mxu1 }
 0x3db   : > { %v4649_v56 = vadd.f32 %v4648_v31, %v4647_v7  ;;  %v4650_v14 = vpop.f32.mrb[122].mxu1 }
 0x3dc   : > { %v4651_v9 = vpop.f32.mrb[123].mxu1 }
 0x3dd   : > { %v5294_v21 = vadd.f32 %v4649_v56, %v7231_v51  ;;  %v4652_v42 = vadd.f32 %v4651_v9, %v4650_v14  ;;  %v7237_v14 = vld [vmem:[#allocation30_spill] sm:$0xff] }
 0x3df   : > { %v5300_v13 = vadd.f32 %v4652_v42, %v7232_v40  ;;  %v6888_v41 = vadd.f32 %v5294_v21, %v6762_v61  ;;  %v7238_v21 = vld [vmem:[#allocation31_spill] sm:$0xff] }
 0x3e1   : > { %v4653_v15 = vpop.f32.mrb[124].mxu1  ;;  %v6891_v12 = vadd.f32 %v5300_v13, %v6766_v30 }
 0x3e2   : > { %v4654_v25 = vpop.f32.mrb[125].mxu1 }
 0x3e3   : > { %v4655_v44 = vadd.f32 %v4654_v25, %v4653_v15  ;;  %v4656_v39 = vpop.f32.mrb[126].mxu1 }
 0x3e4   : > { %v4657_v3 = vpop.f32.mrb[127].mxu1 }
 0x3e5   : > { %v5291_v57 = vadd.f32 %v4655_v44, %v7233_v62  ;;  %v4658_v50 = vadd.f32 %v4657_v3, %v4656_v39  ;;  %v7239_v39 = vld [vmem:[#allocation32_spill] sm:$0xff] }
 0x3e7   : > { %v5297_v35 = vadd.f32 %v4658_v50, %v7234_v48  ;;  %v6896_v18 = vadd.f32 %v5291_v57, %v6772_v8  ;;  %v7240_v57 = vld [vmem:[#allocation33_spill] sm:$0xff] }
 0x3e9   : > { %v4659_v49 = vpop.f32.mrb[128].mxu1  ;;  %v6899_v61 = vadd.f32 %v5297_v35, %v6776_v53 }
 0x3ea   : > { %v4660_v11 = vpop.f32.mrb[129].mxu1 }
 0x3eb   : > { %v4661_v23 = vadd.f32 %v4660_v11, %v4659_v49  ;;  %v4662_v30 = vpop.f32.mrb[130].mxu1  ;;  %v7241_v49 = vld [vmem:[#allocation36_spill] sm:$0xff] }
 0x3ec   : > { %v4663_v16 = vpop.f32.mrb[131].mxu1 }
 0x3ed   : > { %v5306_v28 = vadd.f32 %v4661_v23, %v7235_v36  ;;  %v4664_v37 = vadd.f32 %v4663_v16, %v4662_v30  ;;  %v7242_v16 = vld [vmem:[#allocation34_spill] sm:$0xff] }
 0x3ef   : > { %v5312_v2 = vadd.f32 %v4664_v37, %v7236_v54  ;;  %v6904_v20 = vadd.f32 %v5306_v28, %v6780_v33  ;;  %v7243_v37 = vld [vmem:[#allocation35_spill] sm:$0xff] }
 0x3f1   : > { %v4665_v38 = vpop.f32.mrb[132].mxu1  ;;  %v6907_v8 = vadd.f32 %v5312_v2, %v6784_v46  ;;  %v7244_v2 = vld [vmem:[#allocation37_spill] sm:$0xff] }
 0x3f2   : > { %v4666_v7 = vpop.f32.mrb[133].mxu1 }
 0x3f3   : > { %v4667_v31 = vadd.f32 %v4666_v7, %v4665_v38  ;;  %v4668_v53 = vpop.f32.mrb[134].mxu1 }
 0x3f4   : > { %v4669_v56 = vpop.f32.mrb[135].mxu1 }
 0x3f5   : > { %v5303_v9 = vadd.f32 %v4667_v31, %v7237_v14  ;;  %v4670_v51 = vadd.f32 %v4669_v56, %v4668_v53  ;;  %v6936_v31 = vld [vmem:[%s7168_s5] ss:$0 sm:$0xff] }
 0x3f7   : > { %v5309_v42 = vadd.f32 %v4670_v51, %v7238_v21  ;;  %v6912_v40 = vadd.f32 %v5303_v9, %v6786_v45 }
 0x3f9   : > { %v4671_v13 = vpop.f32.mrb[136].mxu1  ;;  %v6915_v33 = vadd.f32 %v5309_v42, %v6790_v34 }
 0x3fa   : > { %v4672_v15 = vpop.f32.mrb[137].mxu1 }
 0x3fb   : > { %v4673_v25 = vadd.f32 %v4672_v15, %v4671_v13  ;;  %v4674_v46 = vpop.f32.mrb[138].mxu1 }
 0x3fc   : > { %v4675_v44 = vpop.f32.mrb[139].mxu1 }
 0x3fd   : > { %v5318_v3 = vadd.f32 %v4673_v25, %v7239_v39  ;;  %v4676_v62 = vadd.f32 %v4675_v44, %v4674_v46 }
 0x3ff   : > { %v5324_v50 = vadd.f32 %v4676_v62, %v7240_v57  ;;  %v6920_v48 = vadd.f32 %v5318_v3, %v6793_v59 }
 0x401   : > { %v4677_v35 = vpop.f32.mrb[140].mxu1  ;;  %v6923_v45 = vadd.f32 %v5324_v50, %v7241_v49 }
 0x402   : > { %v4678_v11 = vpop.f32.mrb[141].mxu1 }
 0x403   : > { %v4679_v23 = vadd.f32 %v4678_v11, %v4677_v35  ;;  %v4680_v34 = vpop.f32.mrb[142].mxu1 }
 0x404   : > { %v4681_v30 = vpop.f32.mrb[143].mxu1 }
 0x405   : > { %v5315_v36 = vadd.f32 %v4679_v23, %v7242_v16  ;;  %v4682_v28 = vadd.f32 %v4681_v30, %v4680_v34 }
 0x407   : > { %v5321_v54 = vadd.f32 %v4682_v28, %v7243_v37  ;;  %v6928_v38 = vadd.f32 %v5315_v36, %v7244_v2 }
 0x409   : > { %v6931_v7 = vadd.f32 %v5321_v54, %v6801_v19 }
 0x449   : > { %v5105_v59 = vpop.f32.mrb[144].mxu1 }
 0x44a   : > { %v5218_v53 = vadd.f32 %v6814_v55, %v5105_v59  ;;  %v3395_v56 = vpop.f32.mrb[145].mxu1 }
 0x44b   : > { %v5222_v14 = vadd.f32 %v6806_v29, %v3395_v56  ;;  %v5106_v9 = vpop.f32.mrb[146].mxu1 }
 0x44c   : > { %v3627_v51 = vadd.f32 %v5218_v53, %v6936_v31  ;;  %v5226_v21 = vadd.f32 %v6817_v32, %v5106_v9  ;;  %v3398_v42 = vpop.f32.mrb[147].mxu1 }
 0x44d   : > { %v3625_v19 = vadd.f32 %v5222_v14, %v6936_v31  ;;  %v5230_v13 = vadd.f32 %v6809_v52, %v3398_v42 }
 0x44e   : > { %v3628_v15 = vadd.f32 %v5226_v21, %v6936_v31  ;;  %v3659_v46 = vmax.f32 %v3627_v51, 0.0 }
 0x44f   : > { %v3626_v25 = vadd.f32 %v5230_v13, %v6936_v31  ;;  %v3657_v55 = vmax.f32 %v3625_v19, 0.0 }
 0x450   : > { %v3660_v44 = vmax.f32 %v3628_v15, 0.0 }
 0x451   : > { %v3658_v39 = vmax.f32 %v3626_v25, 0.0  ;;  %v5109_v3 = vpop.f32.mrb[148].mxu1 }
 0x452   : > { %v3690_v29 = vpack.c.bf16 %v3660_v44, %v3659_v46  ;;  %v5234_v62 = vadd.f32 %v6831_v0, %v5109_v3  ;;  %v3411_v57 = vpop.f32.mrb[149].mxu1 }
 0x453   : > { %v5238_v32 = vadd.f32 %v6822_v1, %v3411_v57  ;;  %v5110_v50 = vpop.f32.mrb[150].mxu1  ;;  %v3689_v35 = vpack.c.bf16 %v3658_v39, %v3657_v55 }
 0x454   : > { %v3631_v49 = vadd.f32 %v5234_v62, %v6936_v31  ;;  %v5242_v52 = vadd.f32 %v6834_v24, %v5110_v50  ;;  %v3414_v11 = vpop.f32.mrb[151].mxu1 }
 0x455   : > { %v3629_v23 = vadd.f32 %v5238_v32, %v6936_v31  ;;  %v5246_v34 = vadd.f32 %v6825_v5, %v3414_v11  ;;  %5151 = vmatprep.mubr.bf16.mxu0 %v3689_v35 }
 0x456   : > { %v3632_v30 = vadd.f32 %v5242_v52, %v6936_v31  ;;  %5152 = vmatmul.mubr.bf16.vlgmr.msra.gmra.mrb[188].mxu0 %v3690_v29  ;;  %v3663_v16 = vmax.f32 %v3631_v49, 0.0 }
 0x457   : > { %v3630_v0 = vadd.f32 %v5246_v34, %v6936_v31  ;;  %v3661_v1 = vmax.f32 %v3629_v23, 0.0 }
 0x458   : > { %v3664_v36 = vmax.f32 %v3632_v30, 0.0 }
 0x459   : > { %v3662_v28 = vmax.f32 %v3630_v0, 0.0  ;;  %v5113_v37 = vpop.f32.mrb[152].mxu1 }
 0x45a   : > { %v5250_v54 = vadd.f32 %v6848_v43, %v5113_v37  ;;  %v3427_v2 = vpop.f32.mrb[153].mxu1  ;;  %v3692_v24 = vpack.c.bf16 %v3664_v36, %v3663_v16 }
 0x45b   : > { %v5254_v59 = vadd.f32 %v6840_v22, %v3427_v2  ;;  %v5114_v53 = vpop.f32.mrb[154].mxu1  ;;  %v3691_v56 = vpack.c.bf16 %v3662_v28, %v3661_v1 }
 0x45c   : > { %v3635_v5 = vadd.f32 %v5250_v54, %v6936_v31  ;;  %v5258_v14 = vadd.f32 %v6851_v63, %v5114_v53  ;;  %v3430_v9 = vpop.f32.mrb[155].mxu1 }
 0x45d   : > { %v3633_v51 = vadd.f32 %v5254_v59, %v6936_v31  ;;  %v5262_v21 = vadd.f32 %v6843_v60, %v3430_v9  ;;  %5155 = vmatprep.mubr.bf16.mxu0 %v3691_v56 }
 0x45e   : > { %v3636_v42 = vadd.f32 %v5258_v14, %v6936_v31  ;;  %5156 = vmatmul.mubr.bf16.gmra.mrb[192].mxu0 %v3692_v24  ;;  %v3667_v19 = vmax.f32 %v3635_v5, 0.0 }
 0x45f   : > { %v3634_v43 = vadd.f32 %v5262_v21, %v6936_v31  ;;  %v3665_v22 = vmax.f32 %v3633_v51, 0.0 }
 0x460   : > { %v3668_v13 = vmax.f32 %v3636_v42, 0.0 }
 0x461   : > { %v3666_v15 = vmax.f32 %v3634_v43, 0.0  ;;  %v5117_v25 = vpop.f32.mrb[156].mxu1 }
 0x462   : > { %v5266_v46 = vadd.f32 %v6864_v27, %v5117_v25  ;;  %v3443_v44 = vpop.f32.mrb[157].mxu1  ;;  %v3694_v63 = vpack.c.bf16 %v3668_v13, %v3667_v19 }
 0x463   : > { %v5270_v55 = vadd.f32 %v6856_v17, %v3443_v44  ;;  %v5118_v39 = vpop.f32.mrb[158].mxu1  ;;  %v3693_v3 = vpack.c.bf16 %v3666_v15, %v3665_v22 }
 0x464   : > { %v3639_v60 = vadd.f32 %v5266_v46, %v6936_v31  ;;  %v5274_v29 = vadd.f32 %v6867_v4, %v5118_v39  ;;  %v3446_v62 = vpop.f32.mrb[159].mxu1 }
 0x465   : > { %v3637_v57 = vadd.f32 %v5270_v55, %v6936_v31  ;;  %v5278_v32 = vadd.f32 %v6859_v47, %v3446_v62  ;;  %5159 = vmatprep.mubr.bf16.mxu0 %v3693_v3 }
 0x466   : > { %v3640_v50 = vadd.f32 %v5274_v29, %v6936_v31  ;;  %5160 = vmatmul.mubr.bf16.gmra.mrb[196].mxu0 %v3694_v63  ;;  %v3671_v35 = vmax.f32 %v3639_v60, 0.0 }
 0x467   : > { %v3638_v27 = vadd.f32 %v5278_v32, %v6936_v31  ;;  %v3669_v17 = vmax.f32 %v3637_v57, 0.0 }
 0x468   : > { %v3672_v49 = vmax.f32 %v3640_v50, 0.0 }
 0x469   : > { %v3670_v52 = vmax.f32 %v3638_v27, 0.0  ;;  %v5121_v11 = vpop.f32.mrb[64].mxu1 }
 0x46a   : > { %v5281_v23 = vadd.f32 %v6880_v10, %v5121_v11  ;;  %v3459_v34 = vpop.f32.mrb[65].mxu1  ;;  %v3696_v4 = vpack.c.bf16 %v3672_v49, %v3671_v35 }
 0x46b   : > { %v5284_v30 = vadd.f32 %v6872_v26, %v3459_v34  ;;  %v5122_v0 = vpop.f32.mrb[66].mxu1  ;;  %v3695_v16 = vpack.c.bf16 %v3670_v52, %v3669_v17 }
 0x46c   : > { %v3643_v47 = vadd.f32 %v5281_v23, %v6936_v31  ;;  %v5287_v36 = vadd.f32 %v6883_v58, %v5122_v0  ;;  %v3462_v1 = vpop.f32.mrb[67].mxu1 }
 0x46d   : > { %v3641_v28 = vadd.f32 %v5284_v30, %v6936_v31  ;;  %v5290_v37 = vadd.f32 %v6875_v6, %v3462_v1  ;;  %5163 = vmatprep.mubr.bf16.mxu0 %v3695_v16 }
 0x46e   : > { %v3644_v54 = vadd.f32 %v5287_v36, %v6936_v31  ;;  %5164 = vmatmul.mubr.bf16.gmra.mrb[200].mxu0 %v3696_v4  ;;  %v3675_v2 = vmax.f32 %v3643_v47, 0.0 }
 0x46f   : > { %v3642_v10 = vadd.f32 %v5290_v37, %v6936_v31  ;;  %v3673_v26 = vmax.f32 %v3641_v28, 0.0 }
 0x470   : > { %v3676_v24 = vmax.f32 %v3644_v54, 0.0 }
 0x471   : > { %v3674_v59 = vmax.f32 %v3642_v10, 0.0  ;;  %v5125_v53 = vpop.f32.mrb[68].mxu1  ;;  %v3939_v10 = vld [vmem:[%s6172_s22 + $0x10] sm:$0xff] }
 0x472   : > { %v5293_v56 = vadd.f32 %v6896_v18, %v5125_v53  ;;  %v3475_v5 = vpop.f32.mrb[69].mxu1  ;;  %v3698_v58 = vpack.c.bf16 %v3676_v24, %v3675_v2  ;;  %v3937_v24 = vld [vmem:[%s6172_s22] sm:$0xff]  ;;  %v3940_v53 = vld [vmem:[%s6172_s22 + $0x18] sm:$0xff] }
 0x473   : > { %v5296_v14 = vadd.f32 %v6888_v41, %v3475_v5  ;;  %v5126_v9 = vpop.f32.mrb[70].mxu1  ;;  %v3697_v51 = vpack.c.bf16 %v3674_v59, %v3673_v26 }
 0x474   : > { %v3647_v6 = vadd.f32 %v5293_v56, %v6936_v31  ;;  %v5299_v21 = vadd.f32 %v6899_v61, %v5126_v9  ;;  %v3478_v42 = vpop.f32.mrb[71].mxu1 }
 0x475   : > { %v3645_v43 = vadd.f32 %v5296_v14, %v6936_v31  ;;  %v5302_v19 = vadd.f32 %v6891_v12, %v3478_v42  ;;  %5167 = vmatprep.mubr.bf16.mxu0 %v3697_v51  ;;  %v3938_v14 = vld [vmem:[%s6172_s22 + $0x8] sm:$0xff] }
 0x476   : > { %v3648_v13 = vadd.f32 %v5299_v21, %v6936_v31  ;;  %5168 = vmatmul.mubr.bf16.gmra.mrb[204].mxu0 %v3698_v58  ;;  %v3679_v22 = vmax.f32 %v3647_v6, 0.0 }
 0x477   : > { %v3646_v18 = vadd.f32 %v5302_v19, %v6936_v31  ;;  %v3677_v41 = vmax.f32 %v3645_v43, 0.0 }
 0x478   : > { %v3680_v15 = vmax.f32 %v3648_v13, 0.0 }
 0x479   : > { %v3678_v25 = vmax.f32 %v3646_v18, 0.0  ;;  %v5129_v46 = vpop.f32.mrb[72].mxu1 }
 0x47a   : > { %v5305_v44 = vadd.f32 %v6912_v40, %v5129_v46  ;;  %v3491_v63 = vpop.f32.mrb[73].mxu1  ;;  %v3700_v61 = vpack.c.bf16 %v3680_v15, %v3679_v22  ;;  %v3943_v22 = vld [vmem:[%s6172_s22 + $0x30] sm:$0xff] }
 0x47b   : > { %v5308_v55 = vadd.f32 %v6904_v20, %v3491_v63  ;;  %v5130_v39 = vpop.f32.mrb[74].mxu1  ;;  %v3699_v3 = vpack.c.bf16 %v3678_v25, %v3677_v41  ;;  %v3941_v25 = vld [vmem:[%s6172_s22 + $0x20] sm:$0xff]  ;;  %v3944_v63 = vld [vmem:[%s6172_s22 + $0x38] sm:$0xff] }
 0x47c   : > { %v3651_v12 = vadd.f32 %v5305_v44, %v6936_v31  ;;  %v5311_v60 = vadd.f32 %v6915_v33, %v5130_v39  ;;  %v3494_v29 = vpop.f32.mrb[75].mxu1 }
 0x47d   : > { %v3649_v62 = vadd.f32 %v5308_v55, %v6936_v31  ;;  %v5314_v57 = vadd.f32 %v6907_v8, %v3494_v29  ;;  %5171 = vmatprep.mubr.bf16.mxu0 %v3699_v3  ;;  %v3942_v3 = vld [vmem:[%s6172_s22 + $0x28] sm:$0xff] }
 0x47e   : > { %v3652_v32 = vadd.f32 %v5311_v60, %v6936_v31  ;;  %5172 = vmatmul.mubr.bf16.gmra.mrb[208].mxu0 %v3700_v61  ;;  %v3683_v50 = vmax.f32 %v3651_v12, 0.0 }
 0x47f   : > { %v3650_v40 = vadd.f32 %v5314_v57, %v6936_v31  ;;  %v3681_v20 = vmax.f32 %v3649_v62, 0.0 }
 0x480   : > { %v3684_v27 = vmax.f32 %v3652_v32, 0.0 }
 0x481   : > { %v3682_v35 = vmax.f32 %v3650_v40, 0.0  ;;  %v5133_v49 = vpop.f32.mrb[76].mxu1 }
 0x482   : > { %v5317_v17 = vadd.f32 %v6928_v38, %v5133_v49  ;;  %v3507_v52 = vpop.f32.mrb[77].mxu1  ;;  %v3702_v33 = vpack.c.bf16 %v3684_v27, %v3683_v50 }
 0x483   : > { %v5320_v11 = vadd.f32 %v6920_v48, %v3507_v52  ;;  %v5134_v23 = vpop.f32.mrb[78].mxu1  ;;  %v3701_v34 = vpack.c.bf16 %v3682_v35, %v3681_v20  ;;  %v3947_v20 = vld [vmem:[%s6172_s22 + $0x50] sm:$0xff] }
 0x484   : > { %v3655_v8 = vadd.f32 %v5317_v17, %v6936_v31  ;;  %v5323_v4 = vadd.f32 %v6931_v7, %v5134_v23  ;;  %v3510_v30 = vpop.f32.mrb[79].mxu1  ;;  %v3945_v17 = vld [vmem:[%s6172_s22 + $0x40] sm:$0xff] }
 0x485   : > { %v3653_v0 = vadd.f32 %v5320_v11, %v6936_v31  ;;  %v5326_v16 = vadd.f32 %v6923_v45, %v3510_v30  ;;  %5175 = vmatprep.mubr.bf16.mxu0 %v3701_v34  ;;  %v7005_v45 = vld [vmem:[%s7170_s7] ss:$0 sm:$0xff]  ;;  %v3948_v11 = vld [vmem:[%s6172_s22 + $0x58] sm:$0xff] }
 0x486   : > { %v3656_v47 = vadd.f32 %v5323_v4, %v6936_v31  ;;  %5176 = vmatmul.mubr.bf16.gmra.mrb[212].mxu0 %v3702_v33  ;;  %v3687_v48 = vmax.f32 %v3655_v8, 0.0  ;;  %v3946_v4 = vld [vmem:[%s6172_s22 + $0x48] sm:$0xff] }
 0x487   : > { %v3654_v38 = vadd.f32 %v5326_v16, %v6936_v31  ;;  %v3685_v1 = vmax.f32 %v3653_v0, 0.0 }
 0x488   : > { %v3688_v36 = vmax.f32 %v3656_v47, 0.0 }
 0x489   : > { %v3686_v28 = vmax.f32 %v3654_v38, 0.0 }
 0x48a   : > { %v3704_v37 = vpack.c.bf16 %v3688_v36, %v3687_v48 }
 0x48b   : > { %v3703_v7 = vpack.c.bf16 %v3686_v28, %v3685_v1 }
 0x48d   : > { %5179 = vmatprep.mubr.bf16.mxu1 %v3703_v7 }
 0x48e   : > { %5180 = vmatmul.mubr.bf16.vlgmr.msra.gmra.mrb[160].mxu1 %v3704_v37  ;;  %v3951_v37 = vld [vmem:[%s6172_s22 + $0x70] sm:$0xff] }
 0x529   : > { %v5153_v54 = vpop.f32.mrb[188].mxu0 }
 0x52a   : > { %v3819_v2 = vadd.f32 %v5153_v54, %v7005_v45  ;;  %v3810_v31 = vpop.f32.mrb[189].mxu0 }
 0x52b   : > { %v3811_v26 = vadd.f32 %v7005_v45, %v3810_v31  ;;  %v5154_v59 = vpop.f32.mrb[190].mxu0 }
 0x52c   : > { %v3971_v56 = vadd.f32 %v3939_v10, %v3819_v2  ;;  %v3822_v5 = vadd.f32 %v5154_v59, %v7005_v45  ;;  %v3813_v58 = vpop.f32.mrb[191].mxu0  ;;  %v3949_v10 = vld [vmem:[%s6172_s22 + $0x60] sm:$0xff] }
 0x52d   : > { %v3969_v9 = vadd.f32 %v3937_v24, %v3811_v26  ;;  %v3814_v51 = vadd.f32 %v7005_v45, %v3813_v58  ;;  %v3952_v24 = vld [vmem:[%s6172_s22 + $0x78] sm:$0xff] }
 0x52e   : > { %v4003_v6 = vmax.f32 %v3971_v56, 0.0  ;;  %v3972_v21 = vadd.f32 %v3940_v53, %v3822_v5  ;;  %v3950_v56 = vld [vmem:[%s6172_s22 + $0x68] sm:$0xff] }
 0x52f   : > { %v4001_v42 = vmax.f32 %v3969_v9, 0.0  ;;  %v3970_v43 = vadd.f32 %v3938_v14, %v3814_v51 }
 0x530   : > { %4035 = vst [vmem:[%s7017_s21 + $0x10] sm:$0xff] %v4003_v6  ;;  %v4004_v19 = vmax.f32 %v3972_v21, 0.0 }
 0x531   : > { %4033 = vst [vmem:[%s7017_s21] sm:$0xff] %v4001_v42  ;;  %v4002_v13 = vmax.f32 %v3970_v43, 0.0  ;;  %v5157_v18 = vpop.f32.mrb[192].mxu0 }
 0x532   : > { %4036 = vst [vmem:[%s7017_s21 + $0x18] sm:$0xff] %v4004_v19  ;;  %v3835_v15 = vadd.f32 %v5157_v18, %v7005_v45  ;;  %v3826_v41 = vpop.f32.mrb[193].mxu0  ;;  %v3955_v19 = vld [vmem:[%s6172_s22 + $0x90] sm:$0xff] }
 0x533   : > { %4034 = vst [vmem:[%s7017_s21 + $0x8] sm:$0xff] %v4002_v13  ;;  %v3827_v46 = vadd.f32 %v7005_v45, %v3826_v41  ;;  %v5158_v44 = vpop.f32.mrb[194].mxu0 }
 0x534   : > { %v3975_v61 = vadd.f32 %v3943_v22, %v3835_v15  ;;  %v3838_v55 = vadd.f32 %v5158_v44, %v7005_v45  ;;  %v3829_v39 = vpop.f32.mrb[195].mxu0  ;;  %v3953_v22 = vld [vmem:[%s6172_s22 + $0x80] sm:$0xff] }
 0x535   : > { %v3973_v12 = vadd.f32 %v3941_v25, %v3827_v46  ;;  %v3830_v60 = vadd.f32 %v7005_v45, %v3829_v39  ;;  %v3956_v25 = vld [vmem:[%s6172_s22 + $0x98] sm:$0xff] }
 0x536   : > { %v4007_v29 = vmax.f32 %v3975_v61, 0.0  ;;  %v3976_v62 = vadd.f32 %v3944_v63, %v3838_v55  ;;  %v3954_v61 = vld [vmem:[%s6172_s22 + $0x88] sm:$0xff] }
 0x537   : > { %v4005_v57 = vmax.f32 %v3973_v12, 0.0  ;;  %v3974_v32 = vadd.f32 %v3942_v3, %v3830_v60 }
 0x538   : > { %4039 = vst [vmem:[%s7017_s21 + $0x30] sm:$0xff] %v4007_v29  ;;  %v4008_v40 = vmax.f32 %v3976_v62, 0.0 }
 0x539   : > { %4037 = vst [vmem:[%s7017_s21 + $0x20] sm:$0xff] %v4005_v57  ;;  %v4006_v50 = vmax.f32 %v3974_v32, 0.0  ;;  %v5161_v27 = vpop.f32.mrb[196].mxu0 }
 0x53a   : > { %4040 = vst [vmem:[%s7017_s21 + $0x38] sm:$0xff] %v4008_v40  ;;  %v3851_v35 = vadd.f32 %v5161_v27, %v7005_v45  ;;  %v3842_v49 = vpop.f32.mrb[197].mxu0  ;;  %v3959_v40 = vld [vmem:[%s6172_s22 + $0xb0] sm:$0xff] }
 0x53b   : > { %4038 = vst [vmem:[%s7017_s21 + $0x28] sm:$0xff] %v4006_v50  ;;  %v3843_v52 = vadd.f32 %v7005_v45, %v3842_v49  ;;  %v5162_v33 = vpop.f32.mrb[198].mxu0 }
 0x53c   : > { %v3979_v23 = vadd.f32 %v3947_v20, %v3851_v35  ;;  %v3854_v34 = vadd.f32 %v5162_v33, %v7005_v45  ;;  %v3845_v8 = vpop.f32.mrb[199].mxu0  ;;  %v3957_v20 = vld [vmem:[%s6172_s22 + $0xa0] sm:$0xff] }
 0x53d   : > { %v3977_v30 = vadd.f32 %v3945_v17, %v3843_v52  ;;  %v3846_v0 = vadd.f32 %v7005_v45, %v3845_v8  ;;  %v3960_v17 = vld [vmem:[%s6172_s22 + $0xb8] sm:$0xff] }
 0x53e   : > { %v4011_v16 = vmax.f32 %v3979_v23, 0.0  ;;  %v3980_v47 = vadd.f32 %v3948_v11, %v3854_v34  ;;  %v3958_v23 = vld [vmem:[%s6172_s22 + $0xa8] sm:$0xff] }
 0x53f   : > { %v4009_v38 = vmax.f32 %v3977_v30, 0.0  ;;  %v3978_v48 = vadd.f32 %v3946_v4, %v3846_v0 }
 0x540   : > { %4043 = vst [vmem:[%s7017_s21 + $0x50] sm:$0xff] %v4011_v16  ;;  %v4012_v36 = vmax.f32 %v3980_v47, 0.0 }
 0x541   : > { %4041 = vst [vmem:[%s7017_s21 + $0x40] sm:$0xff] %v4009_v38  ;;  %v4010_v1 = vmax.f32 %v3978_v48, 0.0  ;;  %v5165_v28 = vpop.f32.mrb[200].mxu0 }
 0x542   : > { %4044 = vst [vmem:[%s7017_s21 + $0x58] sm:$0xff] %v4012_v36  ;;  %v3867_v7 = vadd.f32 %v5165_v28, %v7005_v45  ;;  %v3858_v54 = vpop.f32.mrb[201].mxu0  ;;  %v3963_v36 = vld [vmem:[%s6172_s22 + $0xd0] sm:$0xff] }
 0x543   : > { %4042 = vst [vmem:[%s7017_s21 + $0x48] sm:$0xff] %v4010_v1  ;;  %v3859_v2 = vadd.f32 %v7005_v45, %v3858_v54  ;;  %v5166_v31 = vpop.f32.mrb[202].mxu0 }
 0x544   : > { %v3983_v26 = vadd.f32 %v3951_v37, %v3867_v7  ;;  %v3870_v59 = vadd.f32 %v5166_v31, %v7005_v45  ;;  %v3861_v53 = vpop.f32.mrb[203].mxu0  ;;  %v3961_v37 = vld [vmem:[%s6172_s22 + $0xc0] sm:$0xff] }
 0x545   : > { %v3981_v5 = vadd.f32 %v3949_v10, %v3859_v2  ;;  %v3862_v58 = vadd.f32 %v7005_v45, %v3861_v53  ;;  %v3964_v10 = vld [vmem:[%s6172_s22 + $0xd8] sm:$0xff] }
 0x546   : > { %v4015_v14 = vmax.f32 %v3983_v26, 0.0  ;;  %v3984_v9 = vadd.f32 %v3952_v24, %v3870_v59  ;;  %v3962_v26 = vld [vmem:[%s6172_s22 + $0xc8] sm:$0xff] }
 0x547   : > { %v4013_v51 = vmax.f32 %v3981_v5, 0.0  ;;  %v3982_v6 = vadd.f32 %v3950_v56, %v3862_v58 }
 0x548   : > { %4047 = vst [vmem:[%s7017_s21 + $0x70] sm:$0xff] %v4015_v14  ;;  %v4016_v21 = vmax.f32 %v3984_v9, 0.0 }
 0x549   : > { %4045 = vst [vmem:[%s7017_s21 + $0x60] sm:$0xff] %v4013_v51  ;;  %v4014_v42 = vmax.f32 %v3982_v6, 0.0  ;;  %v5169_v43 = vpop.f32.mrb[204].mxu0 }
 0x54a   : > { %4048 = vst [vmem:[%s7017_s21 + $0x78] sm:$0xff] %v4016_v21  ;;  %v3883_v13 = vadd.f32 %v5169_v43, %v7005_v45  ;;  %v3874_v18 = vpop.f32.mrb[205].mxu0  ;;  %v3967_v21 = vld [vmem:[%s6172_s22 + $0xf0] sm:$0xff] }
 0x54b   : > { %4046 = vst [vmem:[%s7017_s21 + $0x68] sm:$0xff] %v4014_v42  ;;  %v3875_v15 = vadd.f32 %v7005_v45, %v3874_v18  ;;  %v5170_v41 = vpop.f32.mrb[206].mxu0 }
 0x54c   : > { %v3987_v46 = vadd.f32 %v3955_v19, %v3883_v13  ;;  %v3886_v44 = vadd.f32 %v5170_v41, %v7005_v45  ;;  %v3877_v63 = vpop.f32.mrb[207].mxu0  ;;  %v3965_v19 = vld [vmem:[%s6172_s22 + $0xe0] sm:$0xff] }
 0x54d   : > { %v3985_v55 = vadd.f32 %v3953_v22, %v3875_v15  ;;  %v3878_v39 = vadd.f32 %v7005_v45, %v3877_v63  ;;  %v3968_v22 = vld [vmem:[%s6172_s22 + $0xf8] sm:$0xff] }
 0x54e   : > { %v4019_v3 = vmax.f32 %v3987_v46, 0.0  ;;  %v3988_v12 = vadd.f32 %v3956_v25, %v3886_v44  ;;  %v3966_v46 = vld [vmem:[%s6172_s22 + $0xe8] sm:$0xff]  ;;  %s5746_s22 = scalar_lea.vmem %s7111_s14, 4096 }
 0x54f   : > { %v4017_v60 = vmax.f32 %v3985_v55, 0.0  ;;  %v3986_v29 = vadd.f32 %v3954_v61, %v3878_v39  ;;  %p5747_p4 = scmp.ne.s32.totalorder %s7111_s14, %s5746_s22  ;;  %p5754_p3 = scmp.lt.s32.totalorder %s5752_s16, %s5746_s22 }
 0x550   : > { %4051 = vst [vmem:[%s7017_s21 + $0x90] sm:$0xff] %v4019_v3  ;;  %v4020_v62 = vmax.f32 %v3988_v12, 0.0 }
 0x551   : > { %4049 = vst [vmem:[%s7017_s21 + $0x80] sm:$0xff] %v4017_v60  ;;  %v4018_v57 = vmax.f32 %v3986_v29, 0.0  ;;  %v5173_v32 = vpop.f32.mrb[208].mxu0  ;;  %p5748_p8 = pnand %p5747_p4, %p6058_p10  ;;  %p5755_p5 = por %p5754_p3, %p5753_p13 }
 0x552   : > { %4052 = vst [vmem:[%s7017_s21 + $0x98] sm:$0xff] %v4020_v62  ;;  %v3899_v50 = vadd.f32 %v5173_v32, %v7005_v45  ;;  %v3890_v27 = vpop.f32.mrb[209].mxu0 }
 0x553   : > { %4050 = vst [vmem:[%s7017_s21 + $0x88] sm:$0xff] %v4018_v57  ;;  %v3891_v35 = vadd.f32 %v7005_v45, %v3890_v27  ;;  %v5174_v49 = vpop.f32.mrb[210].mxu0  ;;  %p5749_p1 = pneg %p5748_p8 }
 0x554   : > { %v3991_v52 = vadd.f32 %v3959_v40, %v3899_v50  ;;  %v3902_v33 = vadd.f32 %v5174_v49, %v7005_v45  ;;  %v3893_v11 = vpop.f32.mrb[211].mxu0 }
 0x555   : > { %v3989_v34 = vadd.f32 %v3957_v20, %v3891_v35  ;;  %v3894_v8 = vadd.f32 %v7005_v45, %v3893_v11  ;;  %p5756_p11 = pnand %p5755_p5, %p5749_p1 }
 0x556   : > { %v4023_v4 = vmax.f32 %v3991_v52, 0.0  ;;  %v3992_v30 = vadd.f32 %v3960_v17, %v3902_v33 }
 0x557   : > { %v4021_v0 = vmax.f32 %v3989_v34, 0.0  ;;  %v3990_v16 = vadd.f32 %v3958_v23, %v3894_v8 }
 0x558   : > { %4055 = vst [vmem:[%s7017_s21 + $0xb0] sm:$0xff] %v4023_v4  ;;  %v4024_v47 = vmax.f32 %v3992_v30, 0.0 }
 0x559   : > { %4053 = vst [vmem:[%s7017_s21 + $0xa0] sm:$0xff] %v4021_v0  ;;  %v4022_v38 = vmax.f32 %v3990_v16, 0.0  ;;  %v5177_v48 = vpop.f32.mrb[212].mxu0 }
 0x55a   : > { %4056 = vst [vmem:[%s7017_s21 + $0xb8] sm:$0xff] %v4024_v47  ;;  %v3915_v1 = vadd.f32 %v5177_v48, %v7005_v45  ;;  %v3906_v28 = vpop.f32.mrb[213].mxu0 }
 0x55b   : > { %4054 = vst [vmem:[%s7017_s21 + $0xa8] sm:$0xff] %v4022_v38  ;;  %v3907_v7 = vadd.f32 %v7005_v45, %v3906_v28  ;;  %v5178_v54 = vpop.f32.mrb[214].mxu0 }
 0x55c   : > { %v3995_v2 = vadd.f32 %v3963_v36, %v3915_v1  ;;  %v3918_v31 = vadd.f32 %v5178_v54, %v7005_v45  ;;  %v3909_v24 = vpop.f32.mrb[215].mxu0 }
 0x55d   : > { %v3993_v59 = vadd.f32 %v3961_v37, %v3907_v7  ;;  %v3910_v53 = vadd.f32 %v7005_v45, %v3909_v24 }
 0x55e   : > { %v4027_v56 = vmax.f32 %v3995_v2, 0.0  ;;  %v3996_v5 = vadd.f32 %v3964_v10, %v3918_v31 }
 0x55f   : > { %v4025_v58 = vmax.f32 %v3993_v59, 0.0  ;;  %v3994_v14 = vadd.f32 %v3962_v26, %v3910_v53 }
 0x560   : > { %4059 = vst [vmem:[%s7017_s21 + $0xd0] sm:$0xff] %v4027_v56  ;;  %v4028_v9 = vmax.f32 %v3996_v5, 0.0 }
 0x561   : > { %4057 = vst [vmem:[%s7017_s21 + $0xc0] sm:$0xff] %v4025_v58  ;;  %v4026_v51 = vmax.f32 %v3994_v14, 0.0  ;;  %v5181_v6 = vpop.f32.mrb[160].mxu1 }
 0x562   : > { %4060 = vst [vmem:[%s7017_s21 + $0xd8] sm:$0xff] %v4028_v9  ;;  %v3931_v42 = vadd.f32 %v5181_v6, %v7005_v45  ;;  %v3922_v43 = vpop.f32.mrb[161].mxu1 }
 0x563   : > { %4058 = vst [vmem:[%s7017_s21 + $0xc8] sm:$0xff] %v4026_v51  ;;  %v3923_v13 = vadd.f32 %v7005_v45, %v3922_v43  ;;  %v5182_v18 = vpop.f32.mrb[162].mxu1 }
 0x564   : > { %v3999_v15 = vadd.f32 %v3967_v21, %v3931_v42  ;;  %v3934_v41 = vadd.f32 %v5182_v18, %v7005_v45  ;;  %v3925_v25 = vpop.f32.mrb[163].mxu1 }
 0x565   : > { %v3997_v44 = vadd.f32 %v3965_v19, %v3923_v13  ;;  %v3926_v63 = vadd.f32 %v7005_v45, %v3925_v25 }
 0x566   : > { %v4031_v61 = vmax.f32 %v3999_v15, 0.0  ;;  %v4000_v55 = vadd.f32 %v3968_v22, %v3934_v41 }
 0x567   : > { %v4029_v39 = vmax.f32 %v3997_v44, 0.0  ;;  %v3998_v3 = vadd.f32 %v3966_v46, %v3926_v63 }
 0x568   : > { %4063 = vst [vmem:[%s7017_s21 + $0xf0] sm:$0xff] %v4031_v61  ;;  %v4032_v12 = vmax.f32 %v4000_v55, 0.0 }
 0x569   : > { %4061 = vst [vmem:[%s7017_s21 + $0xe0] sm:$0xff] %v4029_v39  ;;  %v4030_v45 = vmax.f32 %v3998_v3, 0.0 }
 0x56a   : > { %4064 = vst [vmem:[%s7017_s21 + $0xf8] sm:$0xff] %v4032_v12 }
 0x56b   : > { %4062 = vst [vmem:[%s7017_s21 + $0xe8] sm:$0xff] %v4030_v45 }
 0x56c   : > { %5759 = shalt.err (!%p5756_p11)
}
 0x56d   : > { %s5760_s17 = scalar_lea.hbm %s7109_s15, 4096  ;;  %s5764_s0 = scalar_lea.hbm %s7247_s4, 8192 }
 0x56e   : > { %p5761_p12 = scmp.ne.s32.totalorder %s7109_s15, %s5760_s17  ;;  %p5765_p9 = scmp.lt.u32.totalorder %s7109_s15, %s7247_s4 }
 0x56f   : > { %p5766_p0 = scmp.lt.u32.totalorder %s5764_s0, %s5760_s17  ;;  %p5768_p4 = scmp.lt.u32.totalorder %s5760_s17, %s7109_s15 }
 0x570   : > { %p5762_p6 = pnand %p5761_p12, %p6058_p10 }
 0x571   : > { %p5767_p2 = por %p5766_p0, %p5765_p9 }
 0x572   : > { %p5763_p7 = pneg %p5762_p6 }
 0x573   : > { %p5769_p8 = por %p5768_p4, %p5767_p2 }
 0x575   : > { %p5770_p1 = pnand %p5769_p8, %p5763_p7 }
 0x577   : > { %5773 = shalt.err (!%p5770_p1)
}
 0x578   : > { %s5855_s23 = smov 128   ;;  %s5856_s6 = smov 8  }
 0x579   : > { %5394 = dma.vmem_to_hbm [thread:$0]  (%p6058_p10), %s7111_s14, 4096, %s7109_s15, %s4066_s12, %s5855_s23, %s5855_s23, %s5856_s6  }
 0x57a PF: > { %s7248_s2 = sld [smem:[#allocation19_spill]]  ;;  %s7249_s24 = sld [smem:[#allocation21_spill]] }
 0x57b   : > { %p7251_p3 = scmp.ge.s32.totalorder %s5840_s10, 2 }
 0x580   : > { %s4097_s30 = sand.u32 1, %s7248_s2   ;;  %p7250_p13 = scmp.ne.s32.totalorder %s7249_s24, 0 }
 0x581   : > { %s4098_s22 = scalar_lea.sflag [#allocation6], %s4097_s30 }
 0x582   : > { %p5414_p5 = pnand %p7251_p3, %p7250_p13 }
 0x584   : > { %5815 = dma.done.wait (!%p5414_p5), %s4098_s22, 4096  }
 0x585   : > { %5817 = vsyncadd (!%p5414_p5), %s4098_s22, 4294963200  ;;  %s28_s10 = sadd.s32 1, %s5840_s10   ;;  %s7252_s27 = smov %s5824_s28 }
 0x586   : > { %p25_p11 = scmp.ge.s32.totalorder %s28_s10, 4   ;;  %s7253_s28 = smov %s5828_s29 }
 0x587   : > { %s7254_s29 = smov %s6077_s19  ;;  %s7255_s30 = smov %s5836_s9 }
 0x588   : > { %s7256_s9 = smov %s7258_s18  ;;  %27 = sbr.rel (!%p25_p11) target bundleno = 15 (0xf), region = 132 }
 0x58f   :  { %4103 = vsyncpa [#allocation5], 1 }
 0x590   :  { %4105 = vsyncpa [#allocation5 + $0x1], 1 }
 0x591   :  { %4106 = vsyncpa [#allocation8], 1 }
 0x592   :  { %4108 = vsyncpa [#allocation8 + $0x1], 1 }
 0x593   :  { %4109 = vsyncpa [#allocation11], 1 }
 0x594   :  { %4110 = vsyncpa [#allocation6], 1 }
 0x595   :  { %4112 = vsyncpa [#allocation6 + $0x1], 1 }

</bundles_post_ra>
